<compile_context>
chip_gen: v7x
topology: tpu7x:2x2x1
jax: 0.10.0
libtpu: 0.0.40
codegen_flags: <defaults>
</compile_context>

<pallas_src>
import functools

import jax
import jax.numpy as jnp
from jax.experimental import pallas as pl
from jax.experimental.pallas import tpu as pltpu


def _round_up(x, m):
    return ((x + m - 1) // m) * m


# ----------------------------------------------------------------------------
# Fused ASPP kernel (all conv branches + projection, rolling carry window).
# ----------------------------------------------------------------------------

def _fused_aspp_kernel(x_ref, pp_ref, w0_ref, wd_ref, bb_ref, wpj_ref,
                       bpj_ref, o_ref, xwin,
                       *, W, Cin, rates, dmax, th, halo_c, n_tiles):
    i = pl.program_id(1)
    Wpc = W + 2 * halo_c          # padded width of one window row
    head = 1                      # guard row so every tap slice start is >= 0
    M = th * Wpc                  # conv evaluated over all padded columns

    logical0 = head * Wpc                      # flat start of logical row 0
    new0 = (head + dmax + th) * Wpc            # flat start of the new-tile rows
    carry_len = (dmax + th) * Wpc

    # ---- maintain the rolling carry window ---------------------------------
    @pl.when(i == 0)
    def _init():
        # Provides the top halo, the left/right column halo, and a clean state
        # whenever the image index n changes.
        xwin[...] = jnp.zeros_like(xwin)

    @pl.when(i > 0)
    def _shift():
        # Carry the last (dmax + th) logical rows up by one tile.  VMEM-only
        # copy; halo columns stay zero because the copied rows already have
        # them.  (Value is loaded before the store, so overlap is safe.)
        carried = xwin[logical0 + th * Wpc:logical0 + th * Wpc + carry_len, :]
        xwin[logical0:logical0 + carry_len, :] = carried

    @pl.when(i < n_tiles)
    def _write_new_tile():
        # Place tile i (prefetched by the BlockSpec pipeline) into the bottom
        # th rows.  Only the W interior columns are written -> halo stays zero.
        for r in range(th):
            dst = new0 + r * Wpc + halo_c
            xwin[dst:dst + W, :] = x_ref[0, r]

    @pl.when(i == n_tiles)
    def _write_bottom_halo():
        # Last step: rows below the image are zero (only dmax rows are read).
        for r in range(dmax):
            dst = new0 + r * Wpc + halo_c
            xwin[dst:dst + W, :] = jnp.zeros((W, Cin), xwin.dtype)

    # ---- compute output tile i - 1 ------------------------------------------
    @pl.when(i > 0)
    def _compute():
        def tap(kh, kw, d):
            # Contiguous sublane slice: no reshape / relayout copy.
            off = (head + dmax + (kh - 1) * d) * Wpc + (kw - 1) * d
            return xwin[off:off + M, :]

        center = tap(1, 1, 0)             # shared by branch 0 and every (1,1) tap
        bb = bb_ref[...]                  # all branch biases, loaded once

        # Branch 0: 1x1 conv (BN scale folded into weights) + ReLU, folded
        # straight into its projection slice.
        b0 = jnp.dot(center, w0_ref[...],
                     preferred_element_type=jnp.float32) + bb[0:1, :]
        b0 = jnp.maximum(b0, 0.0).astype(jnp.bfloat16)
        acc = jnp.dot(b0, wpj_ref[0], preferred_element_type=jnp.float32)

        # Dilated 3x3 branches: 9 contiguous taps per rate, f32 accumulation.
        for ridx, d in enumerate(rates):
            a = None
            for kh in range(3):
                for kw in range(3):
                    op = center if (kh == 1 and kw == 1) else tap(kh, kw, d)
                    c = jnp.dot(op, wd_ref[ridx * 9 + kh * 3 + kw],
                                preferred_element_type=jnp.float32)
                    a = c if a is None else a + c
            br = jnp.maximum(a + bb[ridx + 1:ridx + 2, :], 0.0)
            acc = acc + jnp.dot(br.astype(jnp.bfloat16), wpj_ref[ridx + 1],
                                preferred_element_type=jnp.float32)

        # Pooling branch: per-image constant, already projected -> broadcast add.
        acc = acc + pp_ref[0]

        # Projection BN (scale folded into the wpj slices) + ReLU, bf16 store.
        res = jnp.maximum(acc + bpj_ref[...], 0.0).astype(o_ref.dtype)

        # Slice the W valid columns out of the padded-width result.
        for r in range(th):
            src = r * Wpc + halo_c
            o_ref[0, r] = res[src:src + W, :]


def fused_aspp(x_nhwc, pp, w0, wd, bb, wpj, bproj, *, rates, th, halo_c):
    N, H, W, Cin = x_nhwc.shape
    Cout = w0.shape[-1]
    dmax = max(rates)
    n_rates = len(rates)
    n_tiles = H // th
    Wpc = W + 2 * halo_c
    flat_rows = (1 + dmax + 2 * th + 1) * Wpc   # head/tail guard rows included

    kernel = functools.partial(
        _fused_aspp_kernel, W=W, Cin=Cin, rates=rates, dmax=dmax, th=th,
        halo_c=halo_c, n_tiles=n_tiles)

    return pl.pallas_call(
        kernel,
        out_shape=jax.ShapeDtypeStruct((N, H, W, Cout), jnp.bfloat16),
        grid_spec=pltpu.PrefetchScalarGridSpec(
            num_scalar_prefetch=0,
            grid=(N, n_tiles + 1),
            in_specs=[
                # Input row tiles: auto-prefetched / double-buffered.  The last
                # step re-reads tile n_tiles-1 (clamped index); its data is
                # discarded and replaced by the zero bottom halo.
                pl.BlockSpec((1, th, W, Cin),
                             lambda n, i: (n, jnp.minimum(i, n_tiles - 1), 0, 0)),
                # Per-image, already-projected pooled branch.
                pl.BlockSpec((1, 1, Cout), lambda n, i: (n, 0, 0)),
                # Weights / biases (constant index maps).
                # TODO(synk): pipeline_mode=pl.Buffered(1) + a Cin grid axis
                # before scaling to Cin=2048/Cout=256 (v7x 64 MiB VMEM).
                pl.BlockSpec((Cin, Cout), lambda n, i: (0, 0)),
                pl.BlockSpec((n_rates * 9, Cin, Cout), lambda n, i: (0, 0, 0)),
                pl.BlockSpec((1 + n_rates, Cout), lambda n, i: (0, 0)),
                pl.BlockSpec((1 + n_rates, Cout, Cout), lambda n, i: (0, 0, 0)),
                pl.BlockSpec((1, Cout), lambda n, i: (0, 0)),
            ],
            # Output tile i-1 is produced at step i; the block index repeats
            # between steps 0 and 1, so the block is only written back once.
            out_specs=pl.BlockSpec(
                (1, th, W, Cout),
                lambda n, i: (n, jnp.maximum(i - 1, 0), 0, 0)),
            scratch_shapes=[pltpu.VMEM((flat_rows, Cin), jnp.bfloat16)],
        ),
        compiler_params=pltpu.CompilerParams(
            dimension_semantics=("parallel", "arbitrary"),
            vmem_limit_bytes=32 * 1024 * 1024),
    )(x_nhwc, pp, w0, wd, bb, wpj, bproj)


# ----------------------------------------------------------------------------
# Parameter construction (deterministic, synthetic; eval-mode BN folded).
# ----------------------------------------------------------------------------

def _fold_bn(key, c):
    k1, k2, k3, k4 = jax.random.split(key, 4)
    gamma = jax.random.uniform(k1, (c,), jnp.float32, 0.5, 1.5)
    beta = 0.1 * jax.random.normal(k2, (c,), jnp.float32)
    mean = 0.1 * jax.random.normal(k3, (c,), jnp.float32)
    var = jax.random.uniform(k4, (c,), jnp.float32, 0.5, 1.5)
    scale = gamma / jnp.sqrt(var + 1e-5)
    bias = beta - mean * scale
    return scale, bias


def init_aspp_params(key, in_channels, atrous_rates, out_channels):
    Cin, Cout = in_channels, out_channels
    rates = tuple(atrous_rates)
    nb = 2 + len(rates)
    keys = iter(jax.random.split(key, 8 + 2 * len(rates)))
    p = {}

    # Branch 0: 1x1 conv; fold BN scale into the (Cin, Cout) weight.
    w0 = 0.1 * jax.random.normal(next(keys), (Cout, Cin), jnp.float32)
    s0, b0 = _fold_bn(next(keys), Cout)
    p["w0"] = (w0.T * s0[None, :]).astype(jnp.bfloat16)
    biases = [b0]

    # Dilated 3x3 branches: (Cout, Cin, 3, 3) -> (9, Cin, Cout), BN folded.
    wd_list = []
    for _ in rates:
        w = 0.1 * jax.random.normal(next(keys), (Cout, Cin, 3, 3), jnp.float32)
        s, b = _fold_bn(next(keys), Cout)
        wcol = jnp.transpose(w, (2, 3, 1, 0)).reshape(9, Cin, Cout) * s[None, None, :]
        wd_list.append(wcol)
        biases.append(b)
    p["wd"] = jnp.concatenate(wd_list, axis=0).astype(jnp.bfloat16)
    p["bb"] = jnp.stack(biases, axis=0)                       # (1+n_rates, Cout) f32

    # Pooling branch 1x1 conv, BN folded (used in the XLA pooled path).
    wp = 0.1 * jax.random.normal(next(keys), (Cout, Cin), jnp.float32)
    sp, bp = _fold_bn(next(keys), Cout)
    p["wp"] = (wp.T * sp[None, :]).astype(jnp.bfloat16)
    p["bp"] = bp.reshape(1, Cout)

    # Projection 1x1 conv over the concatenated branches; fold its BN scale,
    # split into per-branch (Cout, Cout) slices so the concat never exists.
    wproj = 0.1 * jax.random.normal(next(keys), (Cout, nb * Cout), jnp.float32)
    sproj, bproj = _fold_bn(next(keys), Cout)
    wproj_t = wproj.T * sproj[None, :]                        # (nb*Cout, Cout)
    conv_slices = [wproj_t[b * Cout:(b + 1) * Cout] for b in range(nb - 1)]
    p["wpj"] = jnp.stack(conv_slices, axis=0).astype(jnp.bfloat16)
    p["wpj_pool"] = wproj_t[(nb - 1) * Cout:].astype(jnp.bfloat16)
    p["bproj"] = bproj.reshape(1, Cout)
    return p


# ----------------------------------------------------------------------------
# Forward pass.
# ----------------------------------------------------------------------------

def aspp_forward(x_nchw, params, atrous_rates, out_channels, tile_h=8):
    N, Cin, H, W = x_nchw.shape
    rates = tuple(atrous_rates)
    dmax = max(rates)
    Cout = out_channels

    # Row-tile: must divide H and be >= dmax so the carried window covers the halo.
    th = tile_h
    if H % th != 0 or th < dmax:
        th = next(t for t in range(max(dmax, 1), H + 1) if H % t == 0)
    assert H % th == 0 and dmax <= th
    # TODO(synk): replace the divisibility requirement with a pl.cdiv grid and
    # masked tail rows for arbitrary H at production sizes.

    halo_c = _round_up(dmax, 8)      # column halo, sublane-aligned

    x = jnp.transpose(x_nchw, (0, 2, 3, 1)).astype(jnp.bfloat16)    # NHWC bf16

    # Pooling branch (AdaptiveAvgPool2d(1) -> 1x1 conv -> BN -> ReLU -> bilinear
    # upsample of a 1x1 map == broadcast): a tiny (N, Cin) computation done in
    # plain XLA and pre-multiplied by its projection slice, so the fused kernel
    # only adds a per-image (1, Cout) constant.
    pooled = jnp.mean(x_nchw, axis=(2, 3))                          # (N, Cin) f32
    pb = jnp.dot(pooled.astype(jnp.bfloat16), params["wp"],
                 preferred_element_type=jnp.float32) + params["bp"]
    pb = jnp.maximum(pb, 0.0)
    pp = jnp.dot(pb.astype(jnp.bfloat16), params["wpj_pool"],
                 preferred_element_type=jnp.float32).reshape(N, 1, Cout)

    out = fused_aspp(x, pp, params["w0"], params["wd"], params["bb"],
                     params["wpj"], params["bproj"],
                     rates=rates, th=th, halo_c=halo_c)             # (N,H,W,Cout) bf16

    # Dropout(0.5): identity in eval mode.
    return jnp.transpose(out, (0, 3, 1, 2)).astype(jnp.float32)     # NCHW f32


# ----------------------------------------------------------------------------
# Main
# ----------------------------------------------------------------------------

if __name__ == "__main__":
    N, Cin, H, W = 2, 4, 16, 16
    out_channels = 32
    atrous_rates = (2, 4)

    key = jax.random.PRNGKey(0)
    kx, kp = jax.random.split(key)
    x = jax.random.normal(kx, (N, Cin, H, W), jnp.float32)
    params = init_aspp_params(kp, Cin, atrous_rates, out_channels)

    fwd = jax.jit(lambda xx, pr: aspp_forward(xx, pr, atrous_rates, out_channels))
    y = jax.block_until_ready(fwd(x, params))

    assert y.shape == (N, out_channels, H, W)
    assert bool(jnp.all(jnp.isfinite(y)))
    print("KERNEL_OK")
</pallas_src>

<mosaic_0001>
module attributes {stable_mosaic.version = 11 : i64} {
  func.func @_fused_aspp_kernel(%arg0: i32, %arg1: i32, %arg2: memref<1x8x16x4xbf16, #tpu.memory_space<vmem>>, %arg3: memref<1x1x32xf32, #tpu.memory_space<vmem>>, %arg4: memref<4x32xbf16, #tpu.memory_space<vmem>>, %arg5: memref<18x4x32xbf16, #tpu.memory_space<vmem>>, %arg6: memref<3x32xf32, #tpu.memory_space<vmem>>, %arg7: memref<3x32x32xbf16, #tpu.memory_space<vmem>>, %arg8: memref<1x32xf32, #tpu.memory_space<vmem>>, %arg9: memref<1x8x16x32xbf16, #tpu.memory_space<vmem>>, %arg10: memref<704x4xbf16, #tpu.memory_space<vmem>>) attributes {dimension_semantics = [#tpu.dimension_semantics<parallel>, #tpu.dimension_semantics<arbitrary>], iteration_bounds = array<i64: 2, 3>, scalar_prefetch = 0 : i64, scratch_operands = 1 : i64, tpu.core_type = #tpu.core_type<tc>, window_params = [{transform_indices = @transform_0, window_bounds = array<i64: 1, 8, 16, 4>}, {transform_indices = @transform_1, window_bounds = array<i64: 1, 1, 32>}, {pipeline_mode = #tpu.pipeline_mode<synchronous>, transform_indices = @transform_2, window_bounds = array<i64: 4, 32>}, {pipeline_mode = #tpu.pipeline_mode<synchronous>, transform_indices = @transform_3, window_bounds = array<i64: 18, 4, 32>}, {pipeline_mode = #tpu.pipeline_mode<synchronous>, transform_indices = @transform_4, window_bounds = array<i64: 3, 32>}, {pipeline_mode = #tpu.pipeline_mode<synchronous>, transform_indices = @transform_5, window_bounds = array<i64: 3, 32, 32>}, {pipeline_mode = #tpu.pipeline_mode<synchronous>, transform_indices = @transform_6, window_bounds = array<i64: 1, 32>}, {transform_indices = @transform_7, window_bounds = array<i64: 1, 8, 16, 32>}]} {
    %c0_i32 = arith.constant 0 : i32
    %0 = arith.cmpi eq, %arg1, %c0_i32 : i32
    %1 = arith.extui %0 : i1 to i32
    %c0_i32_0 = arith.constant 0 : i32
    %2 = arith.cmpi ne, %1, %c0_i32_0 : i32
    scf.if %2 {
      %cst = arith.constant 0.000000e+00 : bf16
      %15 = vector.broadcast %cst : bf16 to vector<704x4xbf16>
      %c0 = arith.constant 0 : index
      %c0_8 = arith.constant 0 : index
      %16 = vector.load %arg10[%c0, %c0_8] : memref<704x4xbf16, #tpu.memory_space<vmem>>, vector<704x4xbf16>
      tpu.vector_store %arg10[%c0, %c0_8], %15 {strides = array<i32>} : memref<704x4xbf16, #tpu.memory_space<vmem>>, vector<704x4xbf16>,
    } else {
    }
    %c0_i32_1 = arith.constant 0 : i32
    %3 = arith.cmpi sgt, %arg1, %c0_i32_1 : i32
    %4 = arith.extui %3 : i1 to i32
    %c0_i32_2 = arith.constant 0 : i32
    %5 = arith.cmpi ne, %4, %c0_i32_2 : i32
    scf.if %5 {
      %c288 = arith.constant 288 : index
      %c0 = arith.constant 0 : index
      %15 = vector.load %arg10[%c288, %c0] : memref<704x4xbf16, #tpu.memory_space<vmem>>, vector<384x4xbf16>
      %c32 = arith.constant 32 : index
      %c0_8 = arith.constant 0 : index
      %16 = vector.load %arg10[%c32, %c0_8] : memref<704x4xbf16, #tpu.memory_space<vmem>>, vector<384x4xbf16>
      tpu.vector_store %arg10[%c32, %c0_8], %15 {strides = array<i32>} : memref<704x4xbf16, #tpu.memory_space<vmem>>, vector<384x4xbf16>,
    } else {
    }
    %c2_i32 = arith.constant 2 : i32
    %6 = arith.cmpi slt, %arg1, %c2_i32 : i32
    %7 = arith.extui %6 : i1 to i32
    %c0_i32_3 = arith.constant 0 : i32
    %8 = arith.cmpi ne, %7, %c0_i32_3 : i32
    scf.if %8 {
      %c0 = arith.constant 0 : index
      %c0_8 = arith.constant 0 : index
      %c0_9 = arith.constant 0 : index
      %c0_10 = arith.constant 0 : index
      %15 = vector.load %arg2[%c0, %c0_8, %c0_9, %c0_10] : memref<1x8x16x4xbf16, #tpu.memory_space<vmem>>, vector<1x1x16x4xbf16>
      %16 = vector.shape_cast %15 : vector<1x1x16x4xbf16> to vector<16x4xbf16>
      %c424 = arith.constant 424 : index
      %c0_11 = arith.constant 0 : index
      %17 = vector.load %arg10[%c424, %c0_11] : memref<704x4xbf16, #tpu.memory_space<vmem>>, vector<16x4xbf16>
      tpu.vector_store %arg10[%c424, %c0_11], %16 {strides = array<i32>} : memref<704x4xbf16, #tpu.memory_space<vmem>>, vector<16x4xbf16>,
      %c0_12 = arith.constant 0 : index
      %c1 = arith.constant 1 : index
      %c0_13 = arith.constant 0 : index
      %c0_14 = arith.constant 0 : index
      %18 = vector.load %arg2[%c0_12, %c1, %c0_13, %c0_14] : memref<1x8x16x4xbf16, #tpu.memory_space<vmem>>, vector<1x1x16x4xbf16>
      %19 = vector.shape_cast %18 : vector<1x1x16x4xbf16> to vector<16x4xbf16>
      %c456 = arith.constant 456 : index
      %c0_15 = arith.constant 0 : index
      %20 = vector.load %arg10[%c456, %c0_15] : memref<704x4xbf16, #tpu.memory_space<vmem>>, vector<16x4xbf16>
      tpu.vector_store %arg10[%c456, %c0_15], %19 {strides = array<i32>} : memref<704x4xbf16, #tpu.memory_space<vmem>>, vector<16x4xbf16>,
      %c0_16 = arith.constant 0 : index
      %c2 = arith.constant 2 : index
      %c0_17 = arith.constant 0 : index
      %c0_18 = arith.constant 0 : index
      %21 = vector.load %arg2[%c0_16, %c2, %c0_17, %c0_18] : memref<1x8x16x4xbf16, #tpu.memory_space<vmem>>, vector<1x1x16x4xbf16>
      %22 = vector.shape_cast %21 : vector<1x1x16x4xbf16> to vector<16x4xbf16>
      %c488 = arith.constant 488 : index
      %c0_19 = arith.constant 0 : index
      %23 = vector.load %arg10[%c488, %c0_19] : memref<704x4xbf16, #tpu.memory_space<vmem>>, vector<16x4xbf16>
      tpu.vector_store %arg10[%c488, %c0_19], %22 {strides = array<i32>} : memref<704x4xbf16, #tpu.memory_space<vmem>>, vector<16x4xbf16>,
      %c0_20 = arith.constant 0 : index
      %c3 = arith.constant 3 : index
      %c0_21 = arith.constant 0 : index
      %c0_22 = arith.constant 0 : index
      %24 = vector.load %arg2[%c0_20, %c3, %c0_21, %c0_22] : memref<1x8x16x4xbf16, #tpu.memory_space<vmem>>, vector<1x1x16x4xbf16>
      %25 = vector.shape_cast %24 : vector<1x1x16x4xbf16> to vector<16x4xbf16>
      %c520 = arith.constant 520 : index
      %c0_23 = arith.constant 0 : index
      %26 = vector.load %arg10[%c520, %c0_23] : memref<704x4xbf16, #tpu.memory_space<vmem>>, vector<16x4xbf16>
      tpu.vector_store %arg10[%c520, %c0_23], %25 {strides = array<i32>} : memref<704x4xbf16, #tpu.memory_space<vmem>>, vector<16x4xbf16>,
      %c0_24 = arith.constant 0 : index
      %c4 = arith.constant 4 : index
      %c0_25 = arith.constant 0 : index
      %c0_26 = arith.constant 0 : index
      %27 = vector.load %arg2[%c0_24, %c4, %c0_25, %c0_26] : memref<1x8x16x4xbf16, #tpu.memory_space<vmem>>, vector<1x1x16x4xbf16>
      %28 = vector.shape_cast %27 : vector<1x1x16x4xbf16> to vector<16x4xbf16>
      %c552 = arith.constant 552 : index
      %c0_27 = arith.constant 0 : index
      %29 = vector.load %arg10[%c552, %c0_27] : memref<704x4xbf16, #tpu.memory_space<vmem>>, vector<16x4xbf16>
      tpu.vector_store %arg10[%c552, %c0_27], %28 {strides = array<i32>} : memref<704x4xbf16, #tpu.memory_space<vmem>>, vector<16x4xbf16>,
      %c0_28 = arith.constant 0 : index
      %c5 = arith.constant 5 : index
      %c0_29 = arith.constant 0 : index
      %c0_30 = arith.constant 0 : index
      %30 = vector.load %arg2[%c0_28, %c5, %c0_29, %c0_30] : memref<1x8x16x4xbf16, #tpu.memory_space<vmem>>, vector<1x1x16x4xbf16>
      %31 = vector.shape_cast %30 : vector<1x1x16x4xbf16> to vector<16x4xbf16>
      %c584 = arith.constant 584 : index
      %c0_31 = arith.constant 0 : index
      %32 = vector.load %arg10[%c584, %c0_31] : memref<704x4xbf16, #tpu.memory_space<vmem>>, vector<16x4xbf16>
      tpu.vector_store %arg10[%c584, %c0_31], %31 {strides = array<i32>} : memref<704x4xbf16, #tpu.memory_space<vmem>>, vector<16x4xbf16>,
      %c0_32 = arith.constant 0 : index
      %c6 = arith.constant 6 : index
      %c0_33 = arith.constant 0 : index
      %c0_34 = arith.constant 0 : index
      %33 = vector.load %arg2[%c0_32, %c6, %c0_33, %c0_34] : memref<1x8x16x4xbf16, #tpu.memory_space<vmem>>, vector<1x1x16x4xbf16>
      %34 = vector.shape_cast %33 : vector<1x1x16x4xbf16> to vector<16x4xbf16>
      %c616 = arith.constant 616 : index
      %c0_35 = arith.constant 0 : index
      %35 = vector.load %arg10[%c616, %c0_35] : memref<704x4xbf16, #tpu.memory_space<vmem>>, vector<16x4xbf16>
      tpu.vector_store %arg10[%c616, %c0_35], %34 {strides = array<i32>} : memref<704x4xbf16, #tpu.memory_space<vmem>>, vector<16x4xbf16>,
      %c0_36 = arith.constant 0 : index
      %c7 = arith.constant 7 : index
      %c0_37 = arith.constant 0 : index
      %c0_38 = arith.constant 0 : index
      %36 = vector.load %arg2[%c0_36, %c7, %c0_37, %c0_38] : memref<1x8x16x4xbf16, #tpu.memory_space<vmem>>, vector<1x1x16x4xbf16>
      %37 = vector.shape_cast %36 : vector<1x1x16x4xbf16> to vector<16x4xbf16>
      %c648 = arith.constant 648 : index
      %c0_39 = arith.constant 0 : index
      %38 = vector.load %arg10[%c648, %c0_39] : memref<704x4xbf16, #tpu.memory_space<vmem>>, vector<16x4xbf16>
      tpu.vector_store %arg10[%c648, %c0_39], %37 {strides = array<i32>} : memref<704x4xbf16, #tpu.memory_space<vmem>>, vector<16x4xbf16>,
    } else {
    }
    %c2_i32_4 = arith.constant 2 : i32
    %9 = arith.cmpi eq, %arg1, %c2_i32_4 : i32
    %10 = arith.extui %9 : i1 to i32
    %c0_i32_5 = arith.constant 0 : i32
    %11 = arith.cmpi ne, %10, %c0_i32_5 : i32
    scf.if %11 {
      %cst = arith.constant 0.000000e+00 : bf16
      %15 = vector.broadcast %cst : bf16 to vector<16x4xbf16>
      %c424 = arith.constant 424 : index
      %c0 = arith.constant 0 : index
      %16 = vector.load %arg10[%c424, %c0] : memref<704x4xbf16, #tpu.memory_space<vmem>>, vector<16x4xbf16>
      tpu.vector_store %arg10[%c424, %c0], %15 {strides = array<i32>} : memref<704x4xbf16, #tpu.memory_space<vmem>>, vector<16x4xbf16>,
      %cst_8 = arith.constant 0.000000e+00 : bf16
      %17 = vector.broadcast %cst_8 : bf16 to vector<16x4xbf16>
      %c456 = arith.constant 456 : index
      %c0_9 = arith.constant 0 : index
      %18 = vector.load %arg10[%c456, %c0_9] : memref<704x4xbf16, #tpu.memory_space<vmem>>, vector<16x4xbf16>
      tpu.vector_store %arg10[%c456, %c0_9], %17 {strides = array<i32>} : memref<704x4xbf16, #tpu.memory_space<vmem>>, vector<16x4xbf16>,
      %cst_10 = arith.constant 0.000000e+00 : bf16
      %19 = vector.broadcast %cst_10 : bf16 to vector<16x4xbf16>
      %c488 = arith.constant 488 : index
      %c0_11 = arith.constant 0 : index
      %20 = vector.load %arg10[%c488, %c0_11] : memref<704x4xbf16, #tpu.memory_space<vmem>>, vector<16x4xbf16>
      tpu.vector_store %arg10[%c488, %c0_11], %19 {strides = array<i32>} : memref<704x4xbf16, #tpu.memory_space<vmem>>, vector<16x4xbf16>,
      %cst_12 = arith.constant 0.000000e+00 : bf16
      %21 = vector.broadcast %cst_12 : bf16 to vector<16x4xbf16>
      %c520 = arith.constant 520 : index
      %c0_13 = arith.constant 0 : index
      %22 = vector.load %arg10[%c520, %c0_13] : memref<704x4xbf16, #tpu.memory_space<vmem>>, vector<16x4xbf16>
      tpu.vector_store %arg10[%c520, %c0_13], %21 {strides = array<i32>} : memref<704x4xbf16, #tpu.memory_space<vmem>>, vector<16x4xbf16>,
    } else {
    }
    %c0_i32_6 = arith.constant 0 : i32
    %12 = arith.cmpi sgt, %arg1, %c0_i32_6 : i32
    %13 = arith.extui %12 : i1 to i32
    %c0_i32_7 = arith.constant 0 : i32
    %14 = arith.cmpi ne, %13, %c0_i32_7 : i32
    scf.if %14 {
      %c160 = arith.constant 160 : index
      %c0 = arith.constant 0 : index
      %15 = vector.load %arg10[%c160, %c0] : memref<704x4xbf16, #tpu.memory_space<vmem>>, vector<256x4xbf16>
      %c0_8 = arith.constant 0 : index
      %c0_9 = arith.constant 0 : index
      %16 = vector.load %arg6[%c0_8, %c0_9] : memref<3x32xf32, #tpu.memory_space<vmem>>, vector<3x32xf32>
      %c0_10 = arith.constant 0 : index
      %c0_11 = arith.constant 0 : index
      %17 = vector.load %arg4[%c0_10, %c0_11] : memref<4x32xbf16, #tpu.memory_space<vmem>>, vector<4x32xbf16>
      %cst = arith.constant dense<0.000000e+00> : vector<256x32xf32>
      %18 = tpu.matmul %15, %17, %cst {dimension_numbers = #tpu.dot_dimension_numbers<[1], [0], [0], [1], [0, 0, 1, 1], [], []>} : vector<256x4xbf16>, vector<4x32xbf16>, vector<256x32xf32> -> vector<256x32xf32>
      %19 = vector.extract_strided_slice %16 {offsets = [0, 0], sizes = [1, 32], strides = [1, 1]} : vector<3x32xf32> to vector<1x32xf32>
      %20 = vector.broadcast %19 : vector<1x32xf32> to vector<256x32xf32>
      %21 = arith.addf %18, %20 : vector<256x32xf32>
      %cst_12 = arith.constant 0.000000e+00 : f32
      %22 = vector.broadcast %cst_12 : f32 to vector<256x32xf32>
      %23 = arith.maximumf %21, %22 : vector<256x32xf32>
      %24 = arith.truncf %23 : vector<256x32xf32> to vector<256x32xbf16>
      %c0_13 = arith.constant 0 : index
      %c0_14 = arith.constant 0 : index
      %c0_15 = arith.constant 0 : index
      %25 = vector.load %arg7[%c0_13, %c0_14, %c0_15] : memref<3x32x32xbf16, #tpu.memory_space<vmem>>, vector<1x32x32xbf16>
      %26 = vector.shape_cast %25 : vector<1x32x32xbf16> to vector<32x32xbf16>
      %cst_16 = arith.constant dense<0.000000e+00> : vector<256x32xf32>
      %27 = tpu.matmul %24, %26, %cst_16 {dimension_numbers = #tpu.dot_dimension_numbers<[1], [0], [0], [1], [0, 0, 1, 1], [], []>} : vector<256x32xbf16>, vector<32x32xbf16>, vector<256x32xf32> -> vector<256x32xf32>
      %c94 = arith.constant 94 : index
      %c0_17 = arith.constant 0 : index
      %28 = vector.load %arg10[%c94, %c0_17] : memref<704x4xbf16, #tpu.memory_space<vmem>>, vector<256x4xbf16>
      %c0_18 = arith.constant 0 : index
      %c0_19 = arith.constant 0 : index
      %c0_20 = arith.constant 0 : index
      %29 = vector.load %arg5[%c0_18, %c0_19, %c0_20] : memref<18x4x32xbf16, #tpu.memory_space<vmem>>, vector<1x4x32xbf16>
      %30 = vector.shape_cast %29 : vector<1x4x32xbf16> to vector<4x32xbf16>
      %cst_21 = arith.constant dense<0.000000e+00> : vector<256x32xf32>
      %31 = tpu.matmul %28, %30, %cst_21 {dimension_numbers = #tpu.dot_dimension_numbers<[1], [0], [0], [1], [0, 0, 1, 1], [], []>} : vector<256x4xbf16>, vector<4x32xbf16>, vector<256x32xf32> -> vector<256x32xf32>
      %c96 = arith.constant 96 : index
      %c0_22 = arith.constant 0 : index
      %32 = vector.load %arg10[%c96, %c0_22] : memref<704x4xbf16, #tpu.memory_space<vmem>>, vector<256x4xbf16>
      %c1 = arith.constant 1 : index
      %c0_23 = arith.constant 0 : index
      %c0_24 = arith.constant 0 : index
      %33 = vector.load %arg5[%c1, %c0_23, %c0_24] : memref<18x4x32xbf16, #tpu.memory_space<vmem>>, vector<1x4x32xbf16>
      %34 = vector.shape_cast %33 : vector<1x4x32xbf16> to vector<4x32xbf16>
      %cst_25 = arith.constant dense<0.000000e+00> : vector<256x32xf32>
      %35 = tpu.matmul %32, %34, %cst_25 {dimension_numbers = #tpu.dot_dimension_numbers<[1], [0], [0], [1], [0, 0, 1, 1], [], []>} : vector<256x4xbf16>, vector<4x32xbf16>, vector<256x32xf32> -> vector<256x32xf32>
      %36 = arith.addf %31, %35 : vector<256x32xf32>
      %c98 = arith.constant 98 : index
      %c0_26 = arith.constant 0 : index
      %37 = vector.load %arg10[%c98, %c0_26] : memref<704x4xbf16, #tpu.memory_space<vmem>>, vector<256x4xbf16>
      %c2 = arith.constant 2 : index
      %c0_27 = arith.constant 0 : index
      %c0_28 = arith.constant 0 : index
      %38 = vector.load %arg5[%c2, %c0_27, %c0_28] : memref<18x4x32xbf16, #tpu.memory_space<vmem>>, vector<1x4x32xbf16>
      %39 = vector.shape_cast %38 : vector<1x4x32xbf16> to vector<4x32xbf16>
      %cst_29 = arith.constant dense<0.000000e+00> : vector<256x32xf32>
      %40 = tpu.matmul %37, %39, %cst_29 {dimension_numbers = #tpu.dot_dimension_numbers<[1], [0], [0], [1], [0, 0, 1, 1], [], []>} : vector<256x4xbf16>, vector<4x32xbf16>, vector<256x32xf32> -> vector<256x32xf32>
      %41 = arith.addf %36, %40 : vector<256x32xf32>
      %c158 = arith.constant 158 : index
      %c0_30 = arith.constant 0 : index
      %42 = vector.load %arg10[%c158, %c0_30] : memref<704x4xbf16, #tpu.memory_space<vmem>>, vector<256x4xbf16>
      %c3 = arith.constant 3 : index
      %c0_31 = arith.constant 0 : index
      %c0_32 = arith.constant 0 : index
      %43 = vector.load %arg5[%c3, %c0_31, %c0_32] : memref<18x4x32xbf16, #tpu.memory_space<vmem>>, vector<1x4x32xbf16>
      %44 = vector.shape_cast %43 : vector<1x4x32xbf16> to vector<4x32xbf16>
      %cst_33 = arith.constant dense<0.000000e+00> : vector<256x32xf32>
      %45 = tpu.matmul %42, %44, %cst_33 {dimension_numbers = #tpu.dot_dimension_numbers<[1], [0], [0], [1], [0, 0, 1, 1], [], []>} : vector<256x4xbf16>, vector<4x32xbf16>, vector<256x32xf32> -> vector<256x32xf32>
      %46 = arith.addf %41, %45 : vector<256x32xf32>
      %c4 = arith.constant 4 : index
      %c0_34 = arith.constant 0 : index
      %c0_35 = arith.constant 0 : index
      %47 = vector.load %arg5[%c4, %c0_34, %c0_35] : memref<18x4x32xbf16, #tpu.memory_space<vmem>>, vector<1x4x32xbf16>
      %48 = vector.shape_cast %47 : vector<1x4x32xbf16> to vector<4x32xbf16>
      %cst_36 = arith.constant dense<0.000000e+00> : vector<256x32xf32>
      %49 = tpu.matmul %15, %48, %cst_36 {dimension_numbers = #tpu.dot_dimension_numbers<[1], [0], [0], [1], [0, 0, 1, 1], [], []>} : vector<256x4xbf16>, vector<4x32xbf16>, vector<256x32xf32> -> vector<256x32xf32>
      %50 = arith.addf %46, %49 : vector<256x32xf32>
      %c162 = arith.constant 162 : index
      %c0_37 = arith.constant 0 : index
      %51 = vector.load %arg10[%c162, %c0_37] : memref<704x4xbf16, #tpu.memory_space<vmem>>, vector<256x4xbf16>
      %c5 = arith.constant 5 : index
      %c0_38 = arith.constant 0 : index
      %c0_39 = arith.constant 0 : index
      %52 = vector.load %arg5[%c5, %c0_38, %c0_39] : memref<18x4x32xbf16, #tpu.memory_space<vmem>>, vector<1x4x32xbf16>
      %53 = vector.shape_cast %52 : vector<1x4x32xbf16> to vector<4x32xbf16>
      %cst_40 = arith.constant dense<0.000000e+00> : vector<256x32xf32>
      %54 = tpu.matmul %51, %53, %cst_40 {dimension_numbers = #tpu.dot_dimension_numbers<[1], [0], [0], [1], [0, 0, 1, 1], [], []>} : vector<256x4xbf16>, vector<4x32xbf16>, vector<256x32xf32> -> vector<256x32xf32>
      %55 = arith.addf %50, %54 : vector<256x32xf32>
      %c222 = arith.constant 222 : index
      %c0_41 = arith.constant 0 : index
      %56 = vector.load %arg10[%c222, %c0_41] : memref<704x4xbf16, #tpu.memory_space<vmem>>, vector<256x4xbf16>
      %c6 = arith.constant 6 : index
      %c0_42 = arith.constant 0 : index
      %c0_43 = arith.constant 0 : index
      %57 = vector.load %arg5[%c6, %c0_42, %c0_43] : memref<18x4x32xbf16, #tpu.memory_space<vmem>>, vector<1x4x32xbf16>
      %58 = vector.shape_cast %57 : vector<1x4x32xbf16> to vector<4x32xbf16>
      %cst_44 = arith.constant dense<0.000000e+00> : vector<256x32xf32>
      %59 = tpu.matmul %56, %58, %cst_44 {dimension_numbers = #tpu.dot_dimension_numbers<[1], [0], [0], [1], [0, 0, 1, 1], [], []>} : vector<256x4xbf16>, vector<4x32xbf16>, vector<256x32xf32> -> vector<256x32xf32>
      %60 = arith.addf %55, %59 : vector<256x32xf32>
      %c224 = arith.constant 224 : index
      %c0_45 = arith.constant 0 : index
      %61 = vector.load %arg10[%c224, %c0_45] : memref<704x4xbf16, #tpu.memory_space<vmem>>, vector<256x4xbf16>
      %c7 = arith.constant 7 : index
      %c0_46 = arith.constant 0 : index
      %c0_47 = arith.constant 0 : index
      %62 = vector.load %arg5[%c7, %c0_46, %c0_47] : memref<18x4x32xbf16, #tpu.memory_space<vmem>>, vector<1x4x32xbf16>
      %63 = vector.shape_cast %62 : vector<1x4x32xbf16> to vector<4x32xbf16>
      %cst_48 = arith.constant dense<0.000000e+00> : vector<256x32xf32>
      %64 = tpu.matmul %61, %63, %cst_48 {dimension_numbers = #tpu.dot_dimension_numbers<[1], [0], [0], [1], [0, 0, 1, 1], [], []>} : vector<256x4xbf16>, vector<4x32xbf16>, vector<256x32xf32> -> vector<256x32xf32>
      %65 = arith.addf %60, %64 : vector<256x32xf32>
      %c226 = arith.constant 226 : index
      %c0_49 = arith.constant 0 : index
      %66 = vector.load %arg10[%c226, %c0_49] : memref<704x4xbf16, #tpu.memory_space<vmem>>, vector<256x4xbf16>
      %c8 = arith.constant 8 : index
      %c0_50 = arith.constant 0 : index
      %c0_51 = arith.constant 0 : index
      %67 = vector.load %arg5[%c8, %c0_50, %c0_51] : memref<18x4x32xbf16, #tpu.memory_space<vmem>>, vector<1x4x32xbf16>
      %68 = vector.shape_cast %67 : vector<1x4x32xbf16> to vector<4x32xbf16>
      %cst_52 = arith.constant dense<0.000000e+00> : vector<256x32xf32>
      %69 = tpu.matmul %66, %68, %cst_52 {dimension_numbers = #tpu.dot_dimension_numbers<[1], [0], [0], [1], [0, 0, 1, 1], [], []>} : vector<256x4xbf16>, vector<4x32xbf16>, vector<256x32xf32> -> vector<256x32xf32>
      %70 = arith.addf %65, %69 : vector<256x32xf32>
      %71 = vector.extract_strided_slice %16 {offsets = [1, 0], sizes = [1, 32], strides = [1, 1]} : vector<3x32xf32> to vector<1x32xf32>
      %72 = vector.broadcast %71 : vector<1x32xf32> to vector<256x32xf32>
      %73 = arith.addf %70, %72 : vector<256x32xf32>
      %cst_53 = arith.constant 0.000000e+00 : f32
      %74 = vector.broadcast %cst_53 : f32 to vector<256x32xf32>
      %75 = arith.maximumf %73, %74 : vector<256x32xf32>
      %76 = arith.truncf %75 : vector<256x32xf32> to vector<256x32xbf16>
      %c1_54 = arith.constant 1 : index
      %c0_55 = arith.constant 0 : index
      %c0_56 = arith.constant 0 : index
      %77 = vector.load %arg7[%c1_54, %c0_55, %c0_56] : memref<3x32x32xbf16, #tpu.memory_space<vmem>>, vector<1x32x32xbf16>
      %78 = vector.shape_cast %77 : vector<1x32x32xbf16> to vector<32x32xbf16>
      %cst_57 = arith.constant dense<0.000000e+00> : vector<256x32xf32>
      %79 = tpu.matmul %76, %78, %cst_57 {dimension_numbers = #tpu.dot_dimension_numbers<[1], [0], [0], [1], [0, 0, 1, 1], [], []>} : vector<256x32xbf16>, vector<32x32xbf16>, vector<256x32xf32> -> vector<256x32xf32>
      %80 = arith.addf %27, %79 : vector<256x32xf32>
      %c28 = arith.constant 28 : index
      %c0_58 = arith.constant 0 : index
      %81 = vector.load %arg10[%c28, %c0_58] : memref<704x4xbf16, #tpu.memory_space<vmem>>, vector<256x4xbf16>
      %c9 = arith.constant 9 : index
      %c0_59 = arith.constant 0 : index
      %c0_60 = arith.constant 0 : index
      %82 = vector.load %arg5[%c9, %c0_59, %c0_60] : memref<18x4x32xbf16, #tpu.memory_space<vmem>>, vector<1x4x32xbf16>
      %83 = vector.shape_cast %82 : vector<1x4x32xbf16> to vector<4x32xbf16>
      %cst_61 = arith.constant dense<0.000000e+00> : vector<256x32xf32>
      %84 = tpu.matmul %81, %83, %cst_61 {dimension_numbers = #tpu.dot_dimension_numbers<[1], [0], [0], [1], [0, 0, 1, 1], [], []>} : vector<256x4xbf16>, vector<4x32xbf16>, vector<256x32xf32> -> vector<256x32xf32>
      %c32 = arith.constant 32 : index
      %c0_62 = arith.constant 0 : index
      %85 = vector.load %arg10[%c32, %c0_62] : memref<704x4xbf16, #tpu.memory_space<vmem>>, vector<256x4xbf16>
      %c10 = arith.constant 10 : index
      %c0_63 = arith.constant 0 : index
      %c0_64 = arith.constant 0 : index
      %86 = vector.load %arg5[%c10, %c0_63, %c0_64] : memref<18x4x32xbf16, #tpu.memory_space<vmem>>, vector<1x4x32xbf16>
      %87 = vector.shape_cast %86 : vector<1x4x32xbf16> to vector<4x32xbf16>
      %cst_65 = arith.constant dense<0.000000e+00> : vector<256x32xf32>
      %88 = tpu.matmul %85, %87, %cst_65 {dimension_numbers = #tpu.dot_dimension_numbers<[1], [0], [0], [1], [0, 0, 1, 1], [], []>} : vector<256x4xbf16>, vector<4x32xbf16>, vector<256x32xf32> -> vector<256x32xf32>
      %89 = arith.addf %84, %88 : vector<256x32xf32>
      %c36 = arith.constant 36 : index
      %c0_66 = arith.constant 0 : index
      %90 = vector.load %arg10[%c36, %c0_66] : memref<704x4xbf16, #tpu.memory_space<vmem>>, vector<256x4xbf16>
      %c11 = arith.constant 11 : index
      %c0_67 = arith.constant 0 : index
      %c0_68 = arith.constant 0 : index
      %91 = vector.load %arg5[%c11, %c0_67, %c0_68] : memref<18x4x32xbf16, #tpu.memory_space<vmem>>, vector<1x4x32xbf16>
      %92 = vector.shape_cast %91 : vector<1x4x32xbf16> to vector<4x32xbf16>
      %cst_69 = arith.constant dense<0.000000e+00> : vector<256x32xf32>
      %93 = tpu.matmul %90, %92, %cst_69 {dimension_numbers = #tpu.dot_dimension_numbers<[1], [0], [0], [1], [0, 0, 1, 1], [], []>} : vector<256x4xbf16>, vector<4x32xbf16>, vector<256x32xf32> -> vector<256x32xf32>
      %94 = arith.addf %89, %93 : vector<256x32xf32>
      %c156 = arith.constant 156 : index
      %c0_70 = arith.constant 0 : index
      %95 = vector.load %arg10[%c156, %c0_70] : memref<704x4xbf16, #tpu.memory_space<vmem>>, vector<256x4xbf16>
      %c12 = arith.constant 12 : index
      %c0_71 = arith.constant 0 : index
      %c0_72 = arith.constant 0 : index
      %96 = vector.load %arg5[%c12, %c0_71, %c0_72] : memref<18x4x32xbf16, #tpu.memory_space<vmem>>, vector<1x4x32xbf16>
      %97 = vector.shape_cast %96 : vector<1x4x32xbf16> to vector<4x32xbf16>
      %cst_73 = arith.constant dense<0.000000e+00> : vector<256x32xf32>
      %98 = tpu.matmul %95, %97, %cst_73 {dimension_numbers = #tpu.dot_dimension_numbers<[1], [0], [0], [1], [0, 0, 1, 1], [], []>} : vector<256x4xbf16>, vector<4x32xbf16>, vector<256x32xf32> -> vector<256x32xf32>
      %99 = arith.addf %94, %98 : vector<256x32xf32>
      %c13 = arith.constant 13 : index
      %c0_74 = arith.constant 0 : index
      %c0_75 = arith.constant 0 : index
      %100 = vector.load %arg5[%c13, %c0_74, %c0_75] : memref<18x4x32xbf16, #tpu.memory_space<vmem>>, vector<1x4x32xbf16>
      %101 = vector.shape_cast %100 : vector<1x4x32xbf16> to vector<4x32xbf16>
      %cst_76 = arith.constant dense<0.000000e+00> : vector<256x32xf32>
      %102 = tpu.matmul %15, %101, %cst_76 {dimension_numbers = #tpu.dot_dimension_numbers<[1], [0], [0], [1], [0, 0, 1, 1], [], []>} : vector<256x4xbf16>, vector<4x32xbf16>, vector<256x32xf32> -> vector<256x32xf32>
      %103 = arith.addf %99, %102 : vector<256x32xf32>
      %c164 = arith.constant 164 : index
      %c0_77 = arith.constant 0 : index
      %104 = vector.load %arg10[%c164, %c0_77] : memref<704x4xbf16, #tpu.memory_space<vmem>>, vector<256x4xbf16>
      %c14 = arith.constant 14 : index
      %c0_78 = arith.constant 0 : index
      %c0_79 = arith.constant 0 : index
      %105 = vector.load %arg5[%c14, %c0_78, %c0_79] : memref<18x4x32xbf16, #tpu.memory_space<vmem>>, vector<1x4x32xbf16>
      %106 = vector.shape_cast %105 : vector<1x4x32xbf16> to vector<4x32xbf16>
      %cst_80 = arith.constant dense<0.000000e+00> : vector<256x32xf32>
      %107 = tpu.matmul %104, %106, %cst_80 {dimension_numbers = #tpu.dot_dimension_numbers<[1], [0], [0], [1], [0, 0, 1, 1], [], []>} : vector<256x4xbf16>, vector<4x32xbf16>, vector<256x32xf32> -> vector<256x32xf32>
      %108 = arith.addf %103, %107 : vector<256x32xf32>
      %c284 = arith.constant 284 : index
      %c0_81 = arith.constant 0 : index
      %109 = vector.load %arg10[%c284, %c0_81] : memref<704x4xbf16, #tpu.memory_space<vmem>>, vector<256x4xbf16>
      %c15 = arith.constant 15 : index
      %c0_82 = arith.constant 0 : index
      %c0_83 = arith.constant 0 : index
      %110 = vector.load %arg5[%c15, %c0_82, %c0_83] : memref<18x4x32xbf16, #tpu.memory_space<vmem>>, vector<1x4x32xbf16>
      %111 = vector.shape_cast %110 : vector<1x4x32xbf16> to vector<4x32xbf16>
      %cst_84 = arith.constant dense<0.000000e+00> : vector<256x32xf32>
      %112 = tpu.matmul %109, %111, %cst_84 {dimension_numbers = #tpu.dot_dimension_numbers<[1], [0], [0], [1], [0, 0, 1, 1], [], []>} : vector<256x4xbf16>, vector<4x32xbf16>, vector<256x32xf32> -> vector<256x32xf32>
      %113 = arith.addf %108, %112 : vector<256x32xf32>
      %c288 = arith.constant 288 : index
      %c0_85 = arith.constant 0 : index
      %114 = vector.load %arg10[%c288, %c0_85] : memref<704x4xbf16, #tpu.memory_space<vmem>>, vector<256x4xbf16>
      %c16 = arith.constant 16 : index
      %c0_86 = arith.constant 0 : index
      %c0_87 = arith.constant 0 : index
      %115 = vector.load %arg5[%c16, %c0_86, %c0_87] : memref<18x4x32xbf16, #tpu.memory_space<vmem>>, vector<1x4x32xbf16>
      %116 = vector.shape_cast %115 : vector<1x4x32xbf16> to vector<4x32xbf16>
      %cst_88 = arith.constant dense<0.000000e+00> : vector<256x32xf32>
      %117 = tpu.matmul %114, %116, %cst_88 {dimension_numbers = #tpu.dot_dimension_numbers<[1], [0], [0], [1], [0, 0, 1, 1], [], []>} : vector<256x4xbf16>, vector<4x32xbf16>, vector<256x32xf32> -> vector<256x32xf32>
      %118 = arith.addf %113, %117 : vector<256x32xf32>
      %c292 = arith.constant 292 : index
      %c0_89 = arith.constant 0 : index
      %119 = vector.load %arg10[%c292, %c0_89] : memref<704x4xbf16, #tpu.memory_space<vmem>>, vector<256x4xbf16>
      %c17 = arith.constant 17 : index
      %c0_90 = arith.constant 0 : index
      %c0_91 = arith.constant 0 : index
      %120 = vector.load %arg5[%c17, %c0_90, %c0_91] : memref<18x4x32xbf16, #tpu.memory_space<vmem>>, vector<1x4x32xbf16>
      %121 = vector.shape_cast %120 : vector<1x4x32xbf16> to vector<4x32xbf16>
      %cst_92 = arith.constant dense<0.000000e+00> : vector<256x32xf32>
      %122 = tpu.matmul %119, %121, %cst_92 {dimension_numbers = #tpu.dot_dimension_numbers<[1], [0], [0], [1], [0, 0, 1, 1], [], []>} : vector<256x4xbf16>, vector<4x32xbf16>, vector<256x32xf32> -> vector<256x32xf32>
      %123 = arith.addf %118, %122 : vector<256x32xf32>
      %124 = vector.extract_strided_slice %16 {offsets = [2, 0], sizes = [1, 32], strides = [1, 1]} : vector<3x32xf32> to vector<1x32xf32>
      %125 = vector.broadcast %124 : vector<1x32xf32> to vector<256x32xf32>
      %126 = arith.addf %123, %125 : vector<256x32xf32>
      %cst_93 = arith.constant 0.000000e+00 : f32
      %127 = vector.broadcast %cst_93 : f32 to vector<256x32xf32>
      %128 = arith.maximumf %126, %127 : vector<256x32xf32>
      %129 = arith.truncf %128 : vector<256x32xf32> to vector<256x32xbf16>
      %c2_94 = arith.constant 2 : index
      %c0_95 = arith.constant 0 : index
      %c0_96 = arith.constant 0 : index
      %130 = vector.load %arg7[%c2_94, %c0_95, %c0_96] : memref<3x32x32xbf16, #tpu.memory_space<vmem>>, vector<1x32x32xbf16>
      %131 = vector.shape_cast %130 : vector<1x32x32xbf16> to vector<32x32xbf16>
      %cst_97 = arith.constant dense<0.000000e+00> : vector<256x32xf32>
      %132 = tpu.matmul %129, %131, %cst_97 {dimension_numbers = #tpu.dot_dimension_numbers<[1], [0], [0], [1], [0, 0, 1, 1], [], []>} : vector<256x32xbf16>, vector<32x32xbf16>, vector<256x32xf32> -> vector<256x32xf32>
      %133 = arith.addf %80, %132 : vector<256x32xf32>
      %c0_98 = arith.constant 0 : index
      %c0_99 = arith.constant 0 : index
      %c0_100 = arith.constant 0 : index
      %134 = vector.load %arg3[%c0_98, %c0_99, %c0_100] : memref<1x1x32xf32, #tpu.memory_space<vmem>>, vector<1x1x32xf32>
      %135 = vector.shape_cast %134 : vector<1x1x32xf32> to vector<1x32xf32>
      %136 = vector.broadcast %135 : vector<1x32xf32> to vector<256x32xf32>
      %137 = arith.addf %133, %136 : vector<256x32xf32>
      %c0_101 = arith.constant 0 : index
      %c0_102 = arith.constant 0 : index
      %138 = vector.load %arg8[%c0_101, %c0_102] : memref<1x32xf32, #tpu.memory_space<vmem>>, vector<1x32xf32>
      %139 = vector.broadcast %138 : vector<1x32xf32> to vector<256x32xf32>
      %140 = arith.addf %137, %139 : vector<256x32xf32>
      %cst_103 = arith.constant 0.000000e+00 : f32
      %141 = vector.broadcast %cst_103 : f32 to vector<256x32xf32>
      %142 = arith.maximumf %140, %141 : vector<256x32xf32>
      %143 = arith.truncf %142 : vector<256x32xf32> to vector<256x32xbf16>
      %144 = vector.extract_strided_slice %143 {offsets = [8, 0], sizes = [16, 32], strides = [1, 1]} : vector<256x32xbf16> to vector<16x32xbf16>
      %c0_104 = arith.constant 0 : index
      %c0_105 = arith.constant 0 : index
      %c0_106 = arith.constant 0 : index
      %c0_107 = arith.constant 0 : index
      %145 = vector.load %arg9[%c0_104, %c0_105, %c0_106, %c0_107] : memref<1x8x16x32xbf16, #tpu.memory_space<vmem>>, vector<1x1x16x32xbf16>
      %146 = vector.shape_cast %145 : vector<1x1x16x32xbf16> to vector<16x32xbf16>
      %147 = vector.shape_cast %144 : vector<16x32xbf16> to vector<1x1x16x32xbf16>
      tpu.vector_store %arg9[%c0_104, %c0_105, %c0_106, %c0_107], %147 {strides = array<i32>} : memref<1x8x16x32xbf16, #tpu.memory_space<vmem>>, vector<1x1x16x32xbf16>,
      %148 = vector.extract_strided_slice %143 {offsets = [40, 0], sizes = [16, 32], strides = [1, 1]} : vector<256x32xbf16> to vector<16x32xbf16>
      %c0_108 = arith.constant 0 : index
      %c1_109 = arith.constant 1 : index
      %c0_110 = arith.constant 0 : index
      %c0_111 = arith.constant 0 : index
      %149 = vector.load %arg9[%c0_108, %c1_109, %c0_110, %c0_111] : memref<1x8x16x32xbf16, #tpu.memory_space<vmem>>, vector<1x1x16x32xbf16>
      %150 = vector.shape_cast %149 : vector<1x1x16x32xbf16> to vector<16x32xbf16>
      %151 = vector.shape_cast %148 : vector<16x32xbf16> to vector<1x1x16x32xbf16>
      tpu.vector_store %arg9[%c0_108, %c1_109, %c0_110, %c0_111], %151 {strides = array<i32>} : memref<1x8x16x32xbf16, #tpu.memory_space<vmem>>, vector<1x1x16x32xbf16>,
      %152 = vector.extract_strided_slice %143 {offsets = [72, 0], sizes = [16, 32], strides = [1, 1]} : vector<256x32xbf16> to vector<16x32xbf16>
      %c0_112 = arith.constant 0 : index
      %c2_113 = arith.constant 2 : index
      %c0_114 = arith.constant 0 : index
      %c0_115 = arith.constant 0 : index
      %153 = vector.load %arg9[%c0_112, %c2_113, %c0_114, %c0_115] : memref<1x8x16x32xbf16, #tpu.memory_space<vmem>>, vector<1x1x16x32xbf16>
      %154 = vector.shape_cast %153 : vector<1x1x16x32xbf16> to vector<16x32xbf16>
      %155 = vector.shape_cast %152 : vector<16x32xbf16> to vector<1x1x16x32xbf16>
      tpu.vector_store %arg9[%c0_112, %c2_113, %c0_114, %c0_115], %155 {strides = array<i32>} : memref<1x8x16x32xbf16, #tpu.memory_space<vmem>>, vector<1x1x16x32xbf16>,
      %156 = vector.extract_strided_slice %143 {offsets = [104, 0], sizes = [16, 32], strides = [1, 1]} : vector<256x32xbf16> to vector<16x32xbf16>
      %c0_116 = arith.constant 0 : index
      %c3_117 = arith.constant 3 : index
      %c0_118 = arith.constant 0 : index
      %c0_119 = arith.constant 0 : index
      %157 = vector.load %arg9[%c0_116, %c3_117, %c0_118, %c0_119] : memref<1x8x16x32xbf16, #tpu.memory_space<vmem>>, vector<1x1x16x32xbf16>
      %158 = vector.shape_cast %157 : vector<1x1x16x32xbf16> to vector<16x32xbf16>
      %159 = vector.shape_cast %156 : vector<16x32xbf16> to vector<1x1x16x32xbf16>
      tpu.vector_store %arg9[%c0_116, %c3_117, %c0_118, %c0_119], %159 {strides = array<i32>} : memref<1x8x16x32xbf16, #tpu.memory_space<vmem>>, vector<1x1x16x32xbf16>,
      %160 = vector.extract_strided_slice %143 {offsets = [136, 0], sizes = [16, 32], strides = [1, 1]} : vector<256x32xbf16> to vector<16x32xbf16>
      %c0_120 = arith.constant 0 : index
      %c4_121 = arith.constant 4 : index
      %c0_122 = arith.constant 0 : index
      %c0_123 = arith.constant 0 : index
      %161 = vector.load %arg9[%c0_120, %c4_121, %c0_122, %c0_123] : memref<1x8x16x32xbf16, #tpu.memory_space<vmem>>, vector<1x1x16x32xbf16>
      %162 = vector.shape_cast %161 : vector<1x1x16x32xbf16> to vector<16x32xbf16>
      %163 = vector.shape_cast %160 : vector<16x32xbf16> to vector<1x1x16x32xbf16>
      tpu.vector_store %arg9[%c0_120, %c4_121, %c0_122, %c0_123], %163 {strides = array<i32>} : memref<1x8x16x32xbf16, #tpu.memory_space<vmem>>, vector<1x1x16x32xbf16>,
      %164 = vector.extract_strided_slice %143 {offsets = [168, 0], sizes = [16, 32], strides = [1, 1]} : vector<256x32xbf16> to vector<16x32xbf16>
      %c0_124 = arith.constant 0 : index
      %c5_125 = arith.constant 5 : index
      %c0_126 = arith.constant 0 : index
      %c0_127 = arith.constant 0 : index
      %165 = vector.load %arg9[%c0_124, %c5_125, %c0_126, %c0_127] : memref<1x8x16x32xbf16, #tpu.memory_space<vmem>>, vector<1x1x16x32xbf16>
      %166 = vector.shape_cast %165 : vector<1x1x16x32xbf16> to vector<16x32xbf16>
      %167 = vector.shape_cast %164 : vector<16x32xbf16> to vector<1x1x16x32xbf16>
      tpu.vector_store %arg9[%c0_124, %c5_125, %c0_126, %c0_127], %167 {strides = array<i32>} : memref<1x8x16x32xbf16, #tpu.memory_space<vmem>>, vector<1x1x16x32xbf16>,
      %168 = vector.extract_strided_slice %143 {offsets = [200, 0], sizes = [16, 32], strides = [1, 1]} : vector<256x32xbf16> to vector<16x32xbf16>
      %c0_128 = arith.constant 0 : index
      %c6_129 = arith.constant 6 : index
      %c0_130 = arith.constant 0 : index
      %c0_131 = arith.constant 0 : index
      %169 = vector.load %arg9[%c0_128, %c6_129, %c0_130, %c0_131] : memref<1x8x16x32xbf16, #tpu.memory_space<vmem>>, vector<1x1x16x32xbf16>
      %170 = vector.shape_cast %169 : vector<1x1x16x32xbf16> to vector<16x32xbf16>
      %171 = vector.shape_cast %168 : vector<16x32xbf16> to vector<1x1x16x32xbf16>
      tpu.vector_store %arg9[%c0_128, %c6_129, %c0_130, %c0_131], %171 {strides = array<i32>} : memref<1x8x16x32xbf16, #tpu.memory_space<vmem>>, vector<1x1x16x32xbf16>,
      %172 = vector.extract_strided_slice %143 {offsets = [232, 0], sizes = [16, 32], strides = [1, 1]} : vector<256x32xbf16> to vector<16x32xbf16>
      %c0_132 = arith.constant 0 : index
      %c7_133 = arith.constant 7 : index
      %c0_134 = arith.constant 0 : index
      %c0_135 = arith.constant 0 : index
      %173 = vector.load %arg9[%c0_132, %c7_133, %c0_134, %c0_135] : memref<1x8x16x32xbf16, #tpu.memory_space<vmem>>, vector<1x1x16x32xbf16>
      %174 = vector.shape_cast %173 : vector<1x1x16x32xbf16> to vector<16x32xbf16>
      %175 = vector.shape_cast %172 : vector<16x32xbf16> to vector<1x1x16x32xbf16>
      tpu.vector_store %arg9[%c0_132, %c7_133, %c0_134, %c0_135], %175 {strides = array<i32>} : memref<1x8x16x32xbf16, #tpu.memory_space<vmem>>, vector<1x1x16x32xbf16>,
    } else {
    }
    return
  }
  func.func @transform_0(%arg0: i32, %arg1: i32) -> (i32, i32, i32, i32) {
    %c1_i32 = arith.constant 1 : i32
    %0 = arith.minsi %arg1, %c1_i32 : i32
    %c0_i32 = arith.constant 0 : i32
    %c0_i32_0 = arith.constant 0 : i32
    %c0_i32_1 = arith.constant 0 : i32
    return %arg0, %0, %c0_i32, %c0_i32_0 : i32, i32, i32, i32
  }
  func.func @transform_1(%arg0: i32, %arg1: i32) -> (i32, i32, i32) {
    %c0_i32 = arith.constant 0 : i32
    %c0_i32_0 = arith.constant 0 : i32
    %c0_i32_1 = arith.constant 0 : i32
    return %arg0, %c0_i32, %c0_i32_0 : i32, i32, i32
  }
  func.func @transform_2(%arg0: i32, %arg1: i32) -> (i32, i32) {
    %c0_i32 = arith.constant 0 : i32
    %c0_i32_0 = arith.constant 0 : i32
    %c0_i32_1 = arith.constant 0 : i32
    return %c0_i32, %c0_i32_0 : i32, i32
  }
  func.func @transform_3(%arg0: i32, %arg1: i32) -> (i32, i32, i32) {
    %c0_i32 = arith.constant 0 : i32
    %c0_i32_0 = arith.constant 0 : i32
    %c0_i32_1 = arith.constant 0 : i32
    %c0_i32_2 = arith.constant 0 : i32
    return %c0_i32, %c0_i32_0, %c0_i32_1 : i32, i32, i32
  }
  func.func @transform_4(%arg0: i32, %arg1: i32) -> (i32, i32) {
    %c0_i32 = arith.constant 0 : i32
    %c0_i32_0 = arith.constant 0 : i32
    %c0_i32_1 = arith.constant 0 : i32
    return %c0_i32, %c0_i32_0 : i32, i32
  }
  func.func @transform_5(%arg0: i32, %arg1: i32) -> (i32, i32, i32) {
    %c0_i32 = arith.constant 0 : i32
    %c0_i32_0 = arith.constant 0 : i32
    %c0_i32_1 = arith.constant 0 : i32
    %c0_i32_2 = arith.constant 0 : i32
    return %c0_i32, %c0_i32_0, %c0_i32_1 : i32, i32, i32
  }
  func.func @transform_6(%arg0: i32, %arg1: i32) -> (i32, i32) {
    %c0_i32 = arith.constant 0 : i32
    %c0_i32_0 = arith.constant 0 : i32
    %c0_i32_1 = arith.constant 0 : i32
    return %c0_i32, %c0_i32_0 : i32, i32
  }
  func.func @transform_7(%arg0: i32, %arg1: i32) -> (i32, i32, i32, i32) {
    %c1_i32 = arith.constant 1 : i32
    %0 = arith.subi %arg1, %c1_i32 : i32
    %c0_i32 = arith.constant 0 : i32
    %1 = arith.maxsi %0, %c0_i32 : i32
    %c0_i32_0 = arith.constant 0 : i32
    %c0_i32_1 = arith.constant 0 : i32
    %c0_i32_2 = arith.constant 0 : i32
    return %arg0, %1, %c0_i32_0, %c0_i32_1 : i32, i32, i32, i32
  }
}

</mosaic_0001>

<bundles_post_ra>
// kernel: _lambda_.1
= control target key start
LH: loop header
LB: loop body
LE: loop exit
PB: predicated region body
PF: predicated region fallthrough
CT: control target
= control target key end

     0   :  { %s9337_s24 = smov 0   ;;  %s9339_s25 = smov 0   ;;  %s10933_s0 = inlined_call_operand.vmem [shape: bf16[2,16,16,4], index: 0, kind: input, shape index: {}]   ;;  %s10934_s1 = inlined_call_operand.vmem [shape: f32[2,1,32], index: 1, kind: input, shape index: {}]   ;;  %s10935_s2 = inlined_call_operand.vmem [shape: bf16[4,32], index: 2, kind: input, shape index: {}]   ;;  %s10936_s3 = inlined_call_operand.vmem [shape: bf16[18,4,32], index: 3, kind: input, shape index: {}]   ;;  %s10937_s4 = inlined_call_operand.vmem [shape: f32[3,32], index: 4, kind: input, shape index: {}]   ;;  %s10938_s5 = inlined_call_operand.vmem [shape: bf16[3,32,32], index: 5, kind: input, shape index: {}]   ;;  %s10939_s6 = inlined_call_operand.vmem [shape: f32[1,32], index: 6, kind: input, shape index: {}]   ;;  %s10940_s7 = inlined_call_operand.vmem [shape: bf16[2,16,16,32], index: 7, kind: output, shape index: {}]  }
   0x1   :  { %s9341_s26 = smov 0   ;;  %s9343_s27 = smov 0  }
   0x2   :  { %s9345_s28 = smov 0  }
   0x3 LB: > { %s26_s29 = sadd.s32 1, %s9285_s26  ;;  %s29_s30 = sadd.s32 1, %s9289_s27  ;;  %s9293_s28 = sphi %s9345_s28, %s17_s28   ;;  %s9289_s27 = sphi %s9343_s27, %s10948_s27   ;;  %s9285_s26 = sphi %s9341_s26, %s10947_s26   ;;  %s9281_s25 = sphi %s9339_s25, %s10946_s25   ;;  %s9277_s24 = sphi %s9337_s24, %s10945_s24  }
   0x4   : > { %p27_p0 = scmp.ge.s32.totalorder %s26_s29, 3  ;;  %p7034_p1 = scmp.ge.s32.totalorder %s9293_s28, 1 }
   0x5   : > { %p281_p2 = scmp.lt.s32.totalorder %s9293_s28, 7 }
   0x6   : > { %s10950_s29 = smov (%p27_p0, %s26_s29), 0  ;;  %s10952_s30 = smov (!%p27_p0, %s29_s30), %s9289_s27 }
   0x7   : > { %10941 = sst [smem:[#allocation3_spill]] %s10950_s29  ;;  %p282_p3 = pnand %p7034_p1, %p281_p2 }
   0x8   : > { %p31_p4 = scmp.ge.s32.totalorder %s10952_s30, 2  ;;  %p331_p5 = scmp.lt.s32.totalorder (!%p282_p3), %s9277_s24, 1 }
   0x9   : > { %285 = sbr.rel (%p282_p3) target bundleno = 1384 (0x568), region = 48  ;;  %p334_p6 = scmp.lt.s32.totalorder (!%p282_p3), %s9281_s25, 1 }
   0xa   : > { %s10954_s30 = smov (%p31_p4, %s10952_s30), 0  ;;  %s7039_s8 = sadd.s32 (!%p282_p3), 4294967295, %s9277_s24 }
   0xb   : > { %10942 = sst [smem:[#allocation4_spill]] %s10954_s30  ;;  %p350_p7 = scmp.gt.s32.totalorder (!%p282_p3), %s7039_s8, 0 }
   0xc   : > { %p7044_p10 = scmp.ne.s32.totalorder (!%p282_p3), %s9277_s24, 0 }
  0x10   : > { %s332_s9 = scalar_select %p331_p5, %s9277_s24, 1 }
  0x11   : > { %s10956_s25 = smov (!%p334_p6, %s9281_s25), 1  ;;  %s10960_s8 = smov (!%p350_p7, %s7039_s8), 0 }
  0x12   : > { %s7035_s10 = sshll.u32 %s332_s9, 3  ;;  %s7037_s11 = sshll.u32 %s10956_s25, 5  ;;  %vm371_vm0 = vcmask (!%p7044_p10), 31744   ;;  %v9295_v0 = vmov (!%p7044_p10), 0  }
  0x13   : > { %p336_p8 = scmp.lt.s32.totalorder %s7035_s10, 15  ;;  %s348_s14 = scalar_lea.vmem %s10934_s1, %s10956_s25  ;;  %373 = vst.msk [vmem:[#allocation2 + $0x8] sm:$0xff] (!%p7044_p10), %vm371_vm0, %v9295_v0  ;;  %374 = vst.msk [vmem:[#allocation2 + $0x10] sm:$0xff] (!%p7044_p10), %vm371_vm0, %v9295_v0 }
  0x14   : > { %s7040_s17 = sshll.u32 %s10960_s8, 3  ;;  %375 = vst.msk [vmem:[#allocation2 + $0x18] sm:$0xff] (!%p7044_p10), %vm371_vm0, %v9295_v0  ;;  %376 = vst.msk [vmem:[#allocation2 + $0x20] sm:$0xff] (!%p7044_p10), %vm371_vm0, %v9295_v0 }
  0x15   : > { %s10958_s10 = smov (!%p336_p8, %s7035_s10), 15  ;;  %p355_p9 = scmp.lt.s32.totalorder %s7040_s17, 15  ;;  %377 = vst.msk [vmem:[#allocation2 + $0x28] sm:$0xff] (!%p7044_p10), %vm371_vm0, %v9295_v0  ;;  %378 = vst.msk [vmem:[#allocation2 + $0x30] sm:$0xff] (!%p7044_p10), %vm371_vm0, %v9295_v0 }
  0x16   : > { %s7036_s15 = sshll.u32 %s10958_s10, 1  ;;  %370 = sbr.rel (%p7044_p10) target bundleno = 40 (0x28), region = 52  ;;  %379 = vst.msk [vmem:[#allocation2 + $0x38] sm:$0xff] (!%p7044_p10), %vm371_vm0, %v9295_v0  ;;  %380 = vst.msk [vmem:[#allocation2 + $0x40] sm:$0xff] (!%p7044_p10), %vm371_vm0, %v9295_v0 }
  0x17   : > { %s340_s16 = sadd.s32 %s7037_s11, %s7036_s15  ;;  %s10962_s17 = smov (!%p355_p9, %s7040_s17), 15  ;;  %381 = vst.msk [vmem:[#allocation2 + $0x48] sm:$0xff] (!%p7044_p10), %vm371_vm0, %v9295_v0  ;;  %382 = vst.msk [vmem:[#allocation2 + $0x50] sm:$0xff] (!%p7044_p10), %vm371_vm0, %v9295_v0 }
  0x18   : > { %s7038_s18 = sshll.u32 %s340_s16, 2  ;;  %s7041_s22 = sshll.u32 %s10962_s17, 1  ;;  %383 = vst.msk [vmem:[#allocation2 + $0x58] sm:$0xff] (!%p7044_p10), %vm371_vm0, %v9295_v0  ;;  %384 = vst.msk [vmem:[#allocation2 + $0x60] sm:$0xff] (!%p7044_p10), %vm371_vm0, %v9295_v0 }
  0x19   : > { %s9382_s21 = scalar_lea.vmem %s10933_s0, %s7038_s18  ;;  %s359_s23 = sadd.s32 %s7041_s22, %s7037_s11  ;;  %385 = vst.msk [vmem:[#allocation2 + $0x68] sm:$0xff] (!%p7044_p10), %vm371_vm0, %v9295_v0  ;;  %386 = vst.msk [vmem:[#allocation2 + $0x70] sm:$0xff] (!%p7044_p10), %vm371_vm0, %v9295_v0 }
  0x1a   : > { %s7043_s9 = sshll.u32 %s359_s23, 2  ;;  %387 = vst.msk [vmem:[#allocation2 + $0x78] sm:$0xff] (!%p7044_p10), %vm371_vm0, %v9295_v0  ;;  %388 = vst.msk [vmem:[#allocation2 + $0x80] sm:$0xff] (!%p7044_p10), %vm371_vm0, %v9295_v0 }
  0x1b   : > { %s9387_s12 = scalar_lea.vmem %s10940_s7, %s7043_s9  ;;  %389 = vst.msk [vmem:[#allocation2 + $0x88] sm:$0xff] (!%p7044_p10), %vm371_vm0, %v9295_v0  ;;  %390 = vst.msk [vmem:[#allocation2 + $0x90] sm:$0xff] (!%p7044_p10), %vm371_vm0, %v9295_v0 }
  0x1c   : > { %391 = vst.msk [vmem:[#allocation2 + $0x98] sm:$0xff] (!%p7044_p10), %vm371_vm0, %v9295_v0  ;;  %392 = vst.msk [vmem:[#allocation2 + $0xa0] sm:$0xff] (!%p7044_p10), %vm371_vm0, %v9295_v0 }
  0x1d   : > { %393 = vst.msk [vmem:[#allocation2 + $0xa8] sm:$0xff] %vm371_vm0, %v9295_v0  ;;  %394 = vst.msk [vmem:[#allocation2 + $0xb0] sm:$0xff] %vm371_vm0, %v9295_v0 }
  0x1e   : > { %395 = vst.msk [vmem:[#allocation2 + $0xb8] sm:$0xff] %vm371_vm0, %v9295_v0  ;;  %396 = vst.msk [vmem:[#allocation2 + $0xc0] sm:$0xff] %vm371_vm0, %v9295_v0 }
  0x1f   : > { %397 = vst.msk [vmem:[#allocation2 + $0xc8] sm:$0xff] %vm371_vm0, %v9295_v0  ;;  %398 = vst.msk [vmem:[#allocation2 + $0xd0] sm:$0xff] %vm371_vm0, %v9295_v0 }
  0x20   : > { %399 = vst.msk [vmem:[#allocation2 + $0xd8] sm:$0xff] %vm371_vm0, %v9295_v0  ;;  %400 = vst.msk [vmem:[#allocation2 + $0xe0] sm:$0xff] %vm371_vm0, %v9295_v0 }
  0x21   : > { %401 = vst.msk [vmem:[#allocation2 + $0xe8] sm:$0xff] %vm371_vm0, %v9295_v0  ;;  %402 = vst.msk [vmem:[#allocation2 + $0xf0] sm:$0xff] %vm371_vm0, %v9295_v0 }
  0x22   : > { %403 = vst.msk [vmem:[#allocation2 + $0xf8] sm:$0xff] %vm371_vm0, %v9295_v0  ;;  %404 = vst.msk [vmem:[#allocation2 + $0x100] sm:$0xff] %vm371_vm0, %v9295_v0 }
  0x23   : > { %405 = vst.msk [vmem:[#allocation2 + $0x108] sm:$0xff] %vm371_vm0, %v9295_v0  ;;  %406 = vst.msk [vmem:[#allocation2 + $0x110] sm:$0xff] %vm371_vm0, %v9295_v0 }
  0x24   : > { %407 = vst.msk [vmem:[#allocation2 + $0x118] sm:$0xff] %vm371_vm0, %v9295_v0  ;;  %408 = vst.msk [vmem:[#allocation2 + $0x120] sm:$0xff] %vm371_vm0, %v9295_v0 }
  0x25   : > { %409 = vst.msk [vmem:[#allocation2 + $0x128] sm:$0xff] %vm371_vm0, %v9295_v0  ;;  %410 = vst.msk [vmem:[#allocation2 + $0x130] sm:$0xff] %vm371_vm0, %v9295_v0 }
  0x26   : > { %411 = vst.msk [vmem:[#allocation2 + $0x138] sm:$0xff] %vm371_vm0, %v9295_v0  ;;  %412 = vst.msk [vmem:[#allocation2 + $0x140] sm:$0xff] %vm371_vm0, %v9295_v0 }
  0x27   : > { %413 = vst.msk [vmem:[#allocation2 + $0x148] sm:$0xff] %vm371_vm0, %v9295_v0 }
  0x28 PF: > { %p7045_p11 = scmp.le.s32.totalorder %s9277_s24, 0 }
  0x29   : > { %vm444_vm1 = vcmask (!%p7045_p11), 31744   ;;  %v425_v6 = vld [vmem:[#allocation2 + $0xb8] sm:$0xff] (!%p7045_p11)  ;;  %v426_v7 = vld [vmem:[#allocation2 + $0xc0] sm:$0xff] (!%p7045_p11)  ;;  %v427_v8 = vld [vmem:[#allocation2 + $0xc8] sm:$0xff] (!%p7045_p11) }
  0x2a   : > { %419 = sbr.rel (%p7045_p11) target bundleno = 54 (0x36), region = 56  ;;  %450 = vst.msk [vmem:[#allocation2 + $0x38] sm:$0xff] (!%p7045_p11), %vm444_vm1, %v425_v6  ;;  %v428_v9 = vld [vmem:[#allocation2 + $0xd0] sm:$0xff] (!%p7045_p11)  ;;  %451 = vst.msk [vmem:[#allocation2 + $0x40] sm:$0xff] (!%p7045_p11), %vm444_vm1, %v426_v7  ;;  %v429_v10 = vld [vmem:[#allocation2 + $0xd8] sm:$0xff] (!%p7045_p11) }
  0x2b   : > { %452 = vst.msk [vmem:[#allocation2 + $0x48] sm:$0xff] (!%p7045_p11), %vm444_vm1, %v427_v8  ;;  %453 = vst.msk [vmem:[#allocation2 + $0x50] sm:$0xff] (!%p7045_p11), %vm444_vm1, %v428_v9  ;;  %v430_v11 = vld [vmem:[#allocation2 + $0xe0] sm:$0xff] (!%p7045_p11)  ;;  %v431_v12 = vld [vmem:[#allocation2 + $0xe8] sm:$0xff] (!%p7045_p11) }
  0x2c   : > { %454 = vst.msk [vmem:[#allocation2 + $0x58] sm:$0xff] (!%p7045_p11), %vm444_vm1, %v429_v10  ;;  %455 = vst.msk [vmem:[#allocation2 + $0x60] sm:$0xff] (!%p7045_p11), %vm444_vm1, %v430_v11  ;;  %v432_v13 = vld [vmem:[#allocation2 + $0xf0] sm:$0xff] (!%p7045_p11)  ;;  %v433_v14 = vld [vmem:[#allocation2 + $0xf8] sm:$0xff] (!%p7045_p11) }
  0x2d   : > { %v420_v1 = vld [vmem:[#allocation2 + $0x90] sm:$0xff] (!%p7045_p11)  ;;  %456 = vst.msk [vmem:[#allocation2 + $0x68] sm:$0xff] (!%p7045_p11), %vm444_vm1, %v431_v12  ;;  %v434_v15 = vld [vmem:[#allocation2 + $0x100] sm:$0xff] (!%p7045_p11)  ;;  %457 = vst.msk [vmem:[#allocation2 + $0x70] sm:$0xff] (!%p7045_p11), %vm444_vm1, %v432_v13 }
  0x2e   : > { %v421_v2 = vld [vmem:[#allocation2 + $0x98] sm:$0xff] (!%p7045_p11)  ;;  %v422_v3 = vld [vmem:[#allocation2 + $0xa0] sm:$0xff] (!%p7045_p11)  ;;  %445 = vst.msk [vmem:[#allocation2 + $0x10] sm:$0xff] (!%p7045_p11), %vm444_vm1, %v420_v1  ;;  %458 = vst.msk [vmem:[#allocation2 + $0x78] sm:$0xff] (!%p7045_p11), %vm444_vm1, %v433_v14 }
  0x2f   : > { %446 = vst.msk [vmem:[#allocation2 + $0x18] sm:$0xff] (!%p7045_p11), %vm444_vm1, %v421_v2  ;;  %447 = vst.msk [vmem:[#allocation2 + $0x20] sm:$0xff] (!%p7045_p11), %vm444_vm1, %v422_v3  ;;  %v423_v4 = vld [vmem:[#allocation2 + $0xa8] sm:$0xff] (!%p7045_p11)  ;;  %v424_v5 = vld [vmem:[#allocation2 + $0xb0] sm:$0xff] (!%p7045_p11) }
  0x30   : > { %448 = vst.msk [vmem:[#allocation2 + $0x28] sm:$0xff] (!%p7045_p11), %vm444_vm1, %v423_v4  ;;  %449 = vst.msk [vmem:[#allocation2 + $0x30] sm:$0xff] (!%p7045_p11), %vm444_vm1, %v424_v5  ;;  %v435_v16 = vld [vmem:[#allocation2 + $0x108] sm:$0xff] (!%p7045_p11)  ;;  %v436_v17 = vld [vmem:[#allocation2 + $0x110] sm:$0xff] (!%p7045_p11) }
  0x31   : > { %459 = vst.msk [vmem:[#allocation2 + $0x80] sm:$0xff] %vm444_vm1, %v434_v15  ;;  %v437_v18 = vld [vmem:[#allocation2 + $0x118] sm:$0xff]  ;;  %460 = vst.msk [vmem:[#allocation2 + $0x88] sm:$0xff] %vm444_vm1, %v435_v16  ;;  %v438_v19 = vld [vmem:[#allocation2 + $0x120] sm:$0xff] }
  0x32   : > { %461 = vst.msk [vmem:[#allocation2 + $0x90] sm:$0xff] %vm444_vm1, %v436_v17  ;;  %462 = vst.msk [vmem:[#allocation2 + $0x98] sm:$0xff] %vm444_vm1, %v437_v18  ;;  %v439_v20 = vld [vmem:[#allocation2 + $0x128] sm:$0xff]  ;;  %v440_v21 = vld [vmem:[#allocation2 + $0x130] sm:$0xff] }
  0x33   : > { %463 = vst.msk [vmem:[#allocation2 + $0xa0] sm:$0xff] %vm444_vm1, %v438_v19  ;;  %464 = vst.msk [vmem:[#allocation2 + $0xa8] sm:$0xff] %vm444_vm1, %v439_v20  ;;  %v441_v22 = vld [vmem:[#allocation2 + $0x138] sm:$0xff]  ;;  %v442_v23 = vld [vmem:[#allocation2 + $0x140] sm:$0xff] }
  0x34   : > { %465 = vst.msk [vmem:[#allocation2 + $0xb0] sm:$0xff] %vm444_vm1, %v440_v21  ;;  %v443_v24 = vld [vmem:[#allocation2 + $0x148] sm:$0xff]  ;;  %466 = vst.msk [vmem:[#allocation2 + $0xb8] sm:$0xff] %vm444_vm1, %v441_v22 }
  0x35   : > { %467 = vst.msk [vmem:[#allocation2 + $0xc0] sm:$0xff] %vm444_vm1, %v442_v23  ;;  %468 = vst.msk [vmem:[#allocation2 + $0xc8] sm:$0xff] %vm444_vm1, %v443_v24 }
  0x36 PF: > { %p7046_p12 = scmp.ge.s32.totalorder %s9277_s24, 2 }
  0x37   : > { %v9216_v25 = vld [vmem:[%s9382_s21] ss:$0 sps:$4 sm:$0xff] (!%p7046_p12)   ;;  %vm483_vm2 = vcmask (!%p7046_p12), 31748   ;;  %vm485_vm3 = vcmask (!%p7046_p12), 27648   ;;  %v9217_v26 = vld [vmem:[%s9382_s21 + $0x4] ss:$0 sps:$4 sm:$0xff] (!%p7046_p12)  }
  0x38   : > { %472 = sbr.rel (%p7046_p12) target bundleno = 68 (0x44), region = 60  ;;  %484 = vst.msk [vmem:[#allocation2 + $0xd0] sm:$0xf0] (!%p7046_p12), %vm483_vm2, %v9216_v25  ;;  %v9218_v27 = vld [vmem:[%s9382_s21 + $0x8] ss:$0 sps:$4 sm:$0xff] (!%p7046_p12)  }
  0x39   : > { %v9219_v28 = vld [vmem:[%s9382_s21 + $0xc] ss:$0 sps:$4 sm:$0xff] (!%p7046_p12)   ;;  %486 = vst.msk [vmem:[#allocation2 + $0xd8] sm:$0xf] (!%p7046_p12), %vm485_vm3, %v9217_v26  ;;  %v9220_v29 = vld [vmem:[%s9382_s21 + $0x10] ss:$0 sps:$4 sm:$0xff] (!%p7046_p12)  }
  0x3a   : > { %498 = vst.msk [vmem:[#allocation2 + $0xe0] sm:$0xf0] (!%p7046_p12), %vm483_vm2, %v9218_v27  ;;  %v9221_v30 = vld [vmem:[%s9382_s21 + $0x14] ss:$0 sps:$4 sm:$0xff] (!%p7046_p12)   ;;  %v9222_v31 = vld [vmem:[%s9382_s21 + $0x18] ss:$0 sps:$4 sm:$0xff] (!%p7046_p12)  }
  0x3b   : > { %499 = vst.msk [vmem:[#allocation2 + $0xe8] sm:$0xf] (!%p7046_p12), %vm485_vm3, %v9219_v28  ;;  %v9223_v32 = vld [vmem:[%s9382_s21 + $0x1c] ss:$0 sps:$4 sm:$0xff] (!%p7046_p12)   ;;  %512 = vst.msk [vmem:[#allocation2 + $0xf8] sm:$0xf] (!%p7046_p12), %vm485_vm3, %v9221_v30 }
  0x3c   : > { %511 = vst.msk [vmem:[#allocation2 + $0xf0] sm:$0xf0] (!%p7046_p12), %vm483_vm2, %v9220_v29  ;;  %524 = vst.msk [vmem:[#allocation2 + $0x100] sm:$0xf0] (!%p7046_p12), %vm483_vm2, %v9222_v31  ;;  %v9224_v33 = vld [vmem:[%s9382_s21 + $0x20] ss:$0 sps:$4 sm:$0xff] (!%p7046_p12)  }
  0x3d   : > { %v9225_v34 = vld [vmem:[%s9382_s21 + $0x24] ss:$0 sps:$4 sm:$0xff] (!%p7046_p12)   ;;  %525 = vst.msk [vmem:[#allocation2 + $0x108] sm:$0xf] (!%p7046_p12), %vm485_vm3, %v9223_v32  ;;  %v9226_v35 = vld [vmem:[%s9382_s21 + $0x28] ss:$0 sps:$4 sm:$0xff] (!%p7046_p12)  }
  0x3e   : > { %537 = vst.msk [vmem:[#allocation2 + $0x110] sm:$0xf0] (!%p7046_p12), %vm483_vm2, %v9224_v33  ;;  %v9227_v36 = vld [vmem:[%s9382_s21 + $0x2c] ss:$0 sps:$4 sm:$0xff] (!%p7046_p12)   ;;  %v9228_v37 = vld [vmem:[%s9382_s21 + $0x30] ss:$0 sps:$4 sm:$0xff] (!%p7046_p12)  }
  0x3f   : > { %538 = vst.msk [vmem:[#allocation2 + $0x118] sm:$0xf] %vm485_vm3, %v9225_v34  ;;  %v9229_v38 = vld [vmem:[%s9382_s21 + $0x34] ss:$0 sps:$4 sm:$0xff]   ;;  %551 = vst.msk [vmem:[#allocation2 + $0x128] sm:$0xf] %vm485_vm3, %v9227_v36 }
  0x40   : > { %550 = vst.msk [vmem:[#allocation2 + $0x120] sm:$0xf0] %vm483_vm2, %v9226_v35  ;;  %563 = vst.msk [vmem:[#allocation2 + $0x130] sm:$0xf0] %vm483_vm2, %v9228_v37  ;;  %v9230_v39 = vld [vmem:[%s9382_s21 + $0x38] ss:$0 sps:$4 sm:$0xff]  }
  0x41   : > { %v9231_v40 = vld [vmem:[%s9382_s21 + $0x3c] ss:$0 sps:$4 sm:$0xff]   ;;  %564 = vst.msk [vmem:[#allocation2 + $0x138] sm:$0xf] %vm485_vm3, %v9229_v38 }
  0x42   : > { %576 = vst.msk [vmem:[#allocation2 + $0x140] sm:$0xf0] %vm483_vm2, %v9230_v39 }
  0x43   : > { %577 = vst.msk [vmem:[#allocation2 + $0x148] sm:$0xf] %vm485_vm3, %v9231_v40 }
  0x44 PF: > { %p7077_p13 = scmp.ne.s32.totalorder %s9277_s24, 2 }
  0x45   : > { %vm582_vm4 = vcmask (!%p7077_p13), 31748   ;;  %vm584_vm5 = vcmask (!%p7077_p13), 27648   ;;  %v9296_v41 = vmov (!%p7077_p13), 0  }
  0x46   : > { %581 = sbr.rel (%p7077_p13) target bundleno = 77 (0x4d), region = 64  ;;  %583 = vst.msk [vmem:[#allocation2 + $0xd0] sm:$0xf0] (!%p7077_p13), %vm582_vm4, %v9296_v41  ;;  %586 = vst.msk [vmem:[#allocation2 + $0xe0] sm:$0xf0] (!%p7077_p13), %vm582_vm4, %v9296_v41 }
  0x47   : > { %588 = vst.msk [vmem:[#allocation2 + $0xf0] sm:$0xf0] (!%p7077_p13), %vm582_vm4, %v9296_v41  ;;  %590 = vst.msk [vmem:[#allocation2 + $0x100] sm:$0xf0] (!%p7077_p13), %vm582_vm4, %v9296_v41 }
  0x48   : > { %585 = vst.msk [vmem:[#allocation2 + $0xd8] sm:$0xf] (!%p7077_p13), %vm584_vm5, %v9296_v41  ;;  %587 = vst.msk [vmem:[#allocation2 + $0xe8] sm:$0xf] (!%p7077_p13), %vm584_vm5, %v9296_v41 }
  0x49   : > { %589 = vst.msk [vmem:[#allocation2 + $0xf8] sm:$0xf] (!%p7077_p13), %vm584_vm5, %v9296_v41  ;;  %591 = vst.msk [vmem:[#allocation2 + $0x108] sm:$0xf] (!%p7077_p13), %vm584_vm5, %v9296_v41 }
  0x4d PF: > { %594 = sbr.rel (%p7045_p11) target bundleno = 1384 (0x568), region = 68  ;;  %v612_v42 = vld [vmem:[%s10935_s2] sm:$0x3] (!%p7045_p11)  ;;  %vm666_vm6 = vcmask (!%p7045_p11), 1041408   ;;  %v7095_v43 = vld [vmem:[%s10936_s3 + $0x2] sm:$0x3] (!%p7045_p11) }
  0x4e   : > { %v9500_v44 = vld [vmem:[#allocation2 + $0x50] sm:$0xff] (!%p7045_p11)  ;;  %9155 = vmatprep.subr.msk.bf16.mxu0 (!%p7045_p11), %vm666_vm6, %v612_v42  ;;  %9156 = vmatprep.subr.msk.bf16.mxu1 (!%p7045_p11), %vm666_vm6, %v7095_v43  ;;  %v668_v45 = vsel (!%p7045_p11), %vm666_vm6, %v612_v42, 0  ;;  %v953_v46 = vsel (!%p7045_p11), %vm666_vm6, %v7095_v43, 0  ;;  %vm617_vm7 = vcmask (!%p7045_p11), 31744   ;;  %v9508_v48 = vld [vmem:[#allocation2 + $0x58] sm:$0xff] (!%p7045_p11)  ;;  %v9516_v50 = vld [vmem:[#allocation2 + $0x60] sm:$0xff] (!%p7045_p11) }
  0x4f   : > { %v9506_v47 = vld [vmem:[#allocation2 + $0x30] sm:$0xff] (!%p7045_p11)  ;;  %7890 = vmatpush3.bf16.msra.mxu0 (!%p7045_p11), %v668_v45  ;;  %7924 = vmatpush3.bf16.msra.mxu1 (!%p7045_p11), %v953_v46  ;;  %v9510_v49 = vld [vmem:[#allocation2 + $0x38] sm:$0xff] (!%p7045_p11)  ;;  %v9518_v51 = vld [vmem:[#allocation2 + $0x40] sm:$0xff] (!%p7045_p11)  ;;  %vm1133_vm8 = vcmask (!%p7045_p11), 1040384   ;;  %v9638_v18 = vrot.slane (!%p7045_p11), %v9500_v44, 7  ;;  %v1717_v21 = vrot.slane (!%p7045_p11), %v9508_v48, 7 }
  0x50   : > { %7891 = vmatprep.mubr.msk.bf16.mxu0 (!%p7045_p11), %vm617_vm7, %v9500_v44  ;;  %7925 = vmatprep.mubr.msk.bf16.mxu1 (!%p7045_p11), %vm617_vm7, %v9506_v47  ;;  %v900_v52 = vld [vmem:[%s10936_s3] sm:$0x3] (!%p7045_p11)  ;;  %v9531_v53 = vld [vmem:[#allocation2 + $0x68] sm:$0xff] (!%p7045_p11)  ;;  %v9537_v56 = vld [vmem:[#allocation2 + $0x70] sm:$0xff] (!%p7045_p11)  ;;  %v1135_v6 = vrot.slane (!%p7045_p11), %v9506_v47, 7  ;;  %v1137_v11 = vrot.slane (!%p7045_p11), %v9510_v49, 7 }
  0x51   : > { %9157 = vmatprep.subr.msk.bf16.mxu1 (!%p7045_p11), %vm666_vm6, %v900_v52  ;;  %v1216_v54 = vsel (!%p7045_p11), %vm666_vm6, %v900_v52, 0  ;;  %v9535_v55 = vld [vmem:[#allocation2 + $0x48] sm:$0xff] (!%p7045_p11)  ;;  %v7128_v57 = vld [vmem:[%s10936_s3 + $0x4] sm:$0x3] (!%p7045_p11)  ;;  %v9551_v58 = vld [vmem:[#allocation2 + $0x78] sm:$0xff] (!%p7045_p11)  ;;  %v1139_v12 = vrot.slane (!%p7045_p11), %v9518_v51, 7  ;;  %v9650_v23 = vsel (!%p7045_p11), %vm1133_vm8, %v9638_v18, %v1717_v21 }
  0x52   : > { %7892 = vmatmul.mubr.msk.bf16.vlgmr.msra.gmra.mrb[0].mxu0 (!%p7045_p11), %vm617_vm7, %v9508_v48  ;;  %7926 = vmatmul.mubr.msk.bf16.vlgmr.msra.gmra.mrb[0].mxu1 (!%p7045_p11), %vm617_vm7, %v9510_v49  ;;  %v9553_v59 = vld [vmem:[#allocation2 + $0x80] sm:$0xff] (!%p7045_p11)  ;;  %v9563_v60 = vld [vmem:[#allocation2 + $0x88] sm:$0xff] (!%p7045_p11)  ;;  %v9565_v61 = vld [vmem:[#allocation2 + $0x90] sm:$0xff] (!%p7045_p11)  ;;  %v1138_v13 = vsel (!%p7045_p11), %vm1133_vm8, %v1135_v6, %v1137_v11  ;;  %v1498_v15 = vsel (!%p7045_p11), %vm666_vm6, %v7128_v57, 0  ;;  %v1141_v17 = vrot.slane (!%p7045_p11), %v9535_v55, 7  ;;  %v1147_v22 = vrot.slane (!%p7045_p11), %v9516_v50, 7 }
  0x53   : > { %7895 = vmatprep.mubr.msk.bf16.mxu0 (!%p7045_p11), %vm617_vm7, %v9516_v50  ;;  %7929 = vmatprep.mubr.msk.bf16.mxu1 (!%p7045_p11), %vm617_vm7, %v9518_v51  ;;  %v9232_v62 = vld [vmem:[%s10938_s5] sm:$0xff] (!%p7045_p11)   ;;  %v9578_v63 = vld [vmem:[#allocation2 + $0x98] sm:$0xff] (!%p7045_p11)  ;;  %v9590_v1 = vld [vmem:[#allocation2 + $0xa8] sm:$0xff] (!%p7045_p11)  ;;  %v1140_v14 = vsel (!%p7045_p11), %vm1133_vm8, %v1137_v11, %v1139_v12  ;;  %v1149_v25 = vrot.slane (!%p7045_p11), %v9531_v53, 7  ;;  %v1151_v26 = vrot.slane (!%p7045_p11), %v9537_v56, 7  ;;  %v1153_v29 = vrot.slane (!%p7045_p11), %v9551_v58, 7 }
  0x54   : > { %7958 = vmatpush3.bf16.msra.mxu1 %v1216_v54  ;;  %8265 = vmatprep.subr.bf16.mxu0 %v9232_v62  ;;  %v9580_v0 = vld [vmem:[#allocation2 + $0xa0] sm:$0xff]  ;;  %v9592_v2 = vld [vmem:[#allocation2 + $0xb0] sm:$0xff]  ;;  %v9602_v3 = vld [vmem:[#allocation2 + $0xb8] sm:$0xff]  ;;  %v1142_v19 = vsel %vm1133_vm8, %v1139_v12, %v1141_v17  ;;  %v1144_v20 = vsel %vm1133_vm8, %v1141_v17, %v9638_v18  ;;  %v9653_v24 = vsel %vm1133_vm8, %v1717_v21, %v1147_v22  ;;  %v1155_v30 = vrot.slane %v9553_v59, 7 }
  0x55   : > { %9158 = vmatprep.subr.msk.bf16.mxu1 %vm666_vm6, %v7128_v57  ;;  %8266 = vmatpush3.bf16.msra.mxu0 %v9232_v62  ;;  %v9604_v4 = vld [vmem:[#allocation2 + $0xc0] sm:$0xff]  ;;  %v883_v5 = vld [vmem:[#allocation2 + $0x28] sm:$0x80]  ;;  %v9662_v27 = vsel %vm1133_vm8, %v1147_v22, %v1149_v25  ;;  %v9665_v28 = vsel %vm1133_vm8, %v1149_v25, %v1151_v26  ;;  %v9674_v31 = vsel %vm1133_vm8, %v1151_v26, %v1153_v29  ;;  %v1157_v33 = vrot.slane %v9563_v60, 7  ;;  %v9688_v35 = vld [vmem:[%s10936_s3 + $0x14] sm:$0x3] }
  0x56   : > { %v1134_v7 = vrot.slane %v883_v5, 7  ;;  %v9615_v8 = vld [vmem:[#allocation2 + $0xc8] sm:$0xff]  ;;  %v7145_v16 = vld [vmem:[%s10936_s3 + $0x6] sm:$0x3]  ;;  %v9677_v32 = vsel %vm1133_vm8, %v1153_v29, %v1155_v30  ;;  %v1159_v34 = vrot.slane %v9565_v61, 7  ;;  %v1161_v38 = vrot.slane %v9578_v63, 7 }
  0x57   : > { %v9233_v10 = vld [vmem:[%s10938_s5 + $0x8] sm:$0xff]   ;;  %v9693_v36 = vsel %vm1133_vm8, %v1155_v30, %v1157_v33  ;;  %v9704_v39 = vrot.slane %v9580_v0, 7  ;;  %v1379_v43 = vld [vmem:[#allocation2 + $0x30] sm:$0xfe]  ;;  %v1417_v52 = vrot.slane %v9510_v49, 1  ;;  %vm1415_vm9 = vcmask 1046528  }
  0x58   : > { %v1136_v9 = vsel %vm1133_vm8, %v1134_v7, %v1135_v6  ;;  %8267 = vmatprep.subr.bf16.mxu0 %v9233_v10  ;;  %v9696_v37 = vsel %vm1133_vm8, %v1157_v33, %v1159_v34  ;;  %v9707_v40 = vsel %vm1133_vm8, %v1159_v34, %v1161_v38  ;;  %v899_v42 = vld [vmem:[#allocation2 + $0xa8] sm:$0x7f]  ;;  %v1416_v46 = vrot.slane %v1379_v43, 1 }
  0x59   : > { %8268 = vmatpush3.bf16.msra.mxu0 %v9233_v10  ;;  %v9711_v41 = vsel %vm1133_vm8, %v1161_v38, %v9704_v39  ;;  %v1165_v45 = vrot.slane %v899_v42, 7  ;;  %v1419_v62 = vrot.slane %v9518_v51, 1  ;;  %v1421_v5 = vrot.slane %v9535_v55, 1  ;;  %v7162_v10 = vld [vmem:[%s10936_s3 + $0x8] sm:$0x3] }
  0x5a   : > { %7896 = vmatmul.mubr.msk.bf16.gmra.mrb[4].mxu0 %vm617_vm7, %v9531_v53  ;;  %7930 = vmatmul.mubr.msk.bf16.gmra.mrb[4].mxu1 %vm617_vm7, %v9535_v55  ;;  %v1418_v57 = vsel %vm1415_vm9, %v1416_v46, %v1417_v52  ;;  %v1423_v11 = vrot.slane %v9500_v44, 1  ;;  %v9735_v12 = vrot.slane %v9508_v48, 1  ;;  %v1433_v21 = vrot.slane %v9551_v58, 1 }
  0x5b   : > { %7899 = vmatprep.mubr.msk.bf16.mxu0 %vm617_vm7, %v9537_v56  ;;  %7933 = vmatprep.mubr.msk.bf16.mxu1 %vm617_vm7, %v9500_v44  ;;  %v1166_v54 = vsel %vm1133_vm8, %v9704_v39, %v1165_v45  ;;  %v1420_v6 = vsel %vm1415_vm9, %v1417_v52, %v1419_v62  ;;  %v1422_v7 = vsel %vm1415_vm9, %v1419_v62, %v1421_v5  ;;  %v1435_v26 = vrot.slane %v9553_v59, 1  ;;  %v1693_v62 = vld [vmem:[#allocation2 + $0x48] sm:$0x80] }
  0x5c   : > { %9165 = vmatprep.subr.msk.bf16.mxu0 %vm666_vm6, %v9688_v35  ;;  %v1437_v29 = vrot.slane %v9563_v60, 1  ;;  %v1439_v34 = vrot.slane %v9565_v61, 1  ;;  %v1441_v38 = vrot.slane %v9578_v63, 1  ;;  %v1443_v45 = vrot.slane %v9580_v0, 1 }
  0x5d   : > { %v9771_v30 = vsel %vm1415_vm9, %v1433_v21, %v1435_v26  ;;  %v9794_v46 = vrot.slane %v9590_v1, 1  ;;  %vm3476_vm10 = vcmask 261120   ;;  %vm4440_vm11 = vcmask 1045504  }
  0x5e   : > { %v9774_v33 = vsel %vm1415_vm9, %v1435_v26, %v1437_v29  ;;  %v9783_v42 = vsel %vm1415_vm9, %v1437_v29, %v1439_v34  ;;  %v9786_v43 = vsel %vm1415_vm9, %v1439_v34, %v1441_v38  ;;  %v9797_v52 = vsel %vm1415_vm9, %v1441_v38, %v1443_v45 }
  0x5f   : > { %vm6831_vm12 = vcmask 257024  }
  0x62   : > { %7900 = vmatmul.mubr.msk.bf16.gmra.mrb[8].mxu0 %vm617_vm7, %v9551_v58  ;;  %7934 = vmatmul.mubr.msk.bf16.gmra.mrb[8].mxu1 %vm617_vm7, %v9508_v48 }
  0x63   : > { %7903 = vmatprep.mubr.msk.bf16.mxu0 %vm617_vm7, %v9553_v59  ;;  %7937 = vmatprep.mubr.msk.bf16.mxu1 %vm617_vm7, %v9516_v50 }
  0x6a   : > { %7904 = vmatmul.mubr.msk.bf16.gmra.mrb[12].mxu0 %vm617_vm7, %v9563_v60  ;;  %7938 = vmatmul.mubr.msk.bf16.gmra.mrb[12].mxu1 %vm617_vm7, %v9531_v53 }
  0x6b   : > { %7907 = vmatprep.mubr.msk.bf16.mxu0 %vm617_vm7, %v9565_v61  ;;  %7941 = vmatprep.mubr.msk.bf16.mxu1 %vm617_vm7, %v9537_v56 }
  0x72   : > { %7908 = vmatmul.mubr.msk.bf16.gmra.mrb[16].mxu0 %vm617_vm7, %v9578_v63  ;;  %7942 = vmatmul.mubr.msk.bf16.gmra.mrb[16].mxu1 %vm617_vm7, %v9551_v58 }
  0x73   : > { %7911 = vmatprep.mubr.msk.bf16.mxu0 %vm617_vm7, %v9580_v0  ;;  %7945 = vmatprep.mubr.msk.bf16.mxu1 %vm617_vm7, %v9553_v59 }
  0x7a   : > { %7912 = vmatmul.mubr.msk.bf16.gmra.mrb[20].mxu0 %vm617_vm7, %v9590_v1  ;;  %7946 = vmatmul.mubr.msk.bf16.gmra.mrb[20].mxu1 %vm617_vm7, %v9563_v60 }
  0x7b   : > { %7915 = vmatprep.mubr.msk.bf16.mxu0 %vm617_vm7, %v9592_v2  ;;  %7949 = vmatprep.mubr.msk.bf16.mxu1 %vm617_vm7, %v9565_v61 }
  0x82   : > { %7916 = vmatmul.mubr.msk.bf16.gmra.mrb[24].mxu0 %vm617_vm7, %v9602_v3  ;;  %7950 = vmatmul.mubr.msk.bf16.gmra.mrb[24].mxu1 %vm617_vm7, %v9578_v63 }
  0x83   : > { %7919 = vmatprep.mubr.msk.bf16.mxu0 %vm617_vm7, %v9604_v4  ;;  %7953 = vmatprep.mubr.msk.bf16.mxu1 %vm617_vm7, %v9580_v0 }
  0x8a   : > { %7920 = vmatmul.mubr.msk.bf16.gmra.mrb[28].mxu0 %vm617_vm7, %v9615_v8  ;;  %7954 = vmatmul.mubr.msk.bf16.gmra.mrb[28].mxu1 %vm617_vm7, %v9590_v1 }
  0x8b   : > { %7959 = vmatprep.mubr.msk.bf16.mxu1 %vm617_vm7, %v1136_v9  ;;  %v1796_v9 = vsel %vm666_vm6, %v7145_v16, 0 }
  0x92   : > { %7960 = vmatmul.mubr.msk.bf16.vlgmr.msra.gmra.mrb[0].mxu1 %vm617_vm7, %v1138_v13  ;;  %v1424_v13 = vsel %vm1415_vm9, %v1421_v5, %v1423_v11 }
  0x93   : > { %7963 = vmatprep.mubr.msk.bf16.mxu1 %vm617_vm7, %v1140_v14  ;;  %7992 = vmatpush3.bf16.msra.mxu1 %v1498_v15  ;;  %v1426_v14 = vsel %vm1415_vm9, %v1423_v11, %v9735_v12  ;;  %v1427_v15 = vrot.slane %v9516_v50, 1  ;;  %v1994_v11 = vsel %vm666_vm6, %v7162_v10, 0 }
  0x94   : > { %9159 = vmatprep.subr.msk.bf16.mxu1 %vm666_vm6, %v7145_v16  ;;  %v1429_v16 = vrot.slane %v9531_v53, 1 }
  0x95   : > { %v9747_v17 = vsel %vm1415_vm9, %v9735_v12, %v1427_v15 }
  0x9a   : > { %7964 = vmatmul.mubr.msk.bf16.gmra.mrb[4].mxu1 %vm617_vm7, %v1142_v19  ;;  %v9750_v19 = vsel %vm1415_vm9, %v1427_v15, %v1429_v16 }
  0x9b   : > { %7967 = vmatprep.mubr.msk.bf16.mxu1 %vm617_vm7, %v1144_v20  ;;  %v1431_v20 = vrot.slane %v9537_v56, 1 }
  0x9d   : > { %v9759_v22 = vsel %vm1415_vm9, %v1429_v16, %v1431_v20  ;;  %v9762_v25 = vsel %vm1415_vm9, %v1431_v20, %v1433_v21 }
  0xa2   : > { %7968 = vmatmul.mubr.msk.bf16.gmra.mrb[8].mxu1 %vm617_vm7, %v9650_v23 }
  0xa3   : > { %7971 = vmatprep.mubr.msk.bf16.mxu1 %vm617_vm7, %v9653_v24 }
  0xaa   : > { %7972 = vmatmul.mubr.msk.bf16.gmra.mrb[12].mxu1 %vm617_vm7, %v9662_v27 }
  0xab   : > { %7975 = vmatprep.mubr.msk.bf16.mxu1 %vm617_vm7, %v9665_v28 }
  0xb2   : > { %7976 = vmatmul.mubr.msk.bf16.gmra.mrb[16].mxu1 %vm617_vm7, %v9674_v31 }
  0xb3   : > { %7979 = vmatprep.mubr.msk.bf16.mxu1 %vm617_vm7, %v9677_v32 }
  0xba   : > { %7980 = vmatmul.mubr.msk.bf16.gmra.mrb[20].mxu1 %vm617_vm7, %v9693_v36 }
  0xbb   : > { %7983 = vmatprep.mubr.msk.bf16.mxu1 %vm617_vm7, %v9696_v37 }
  0xc2   : > { %7984 = vmatmul.mubr.msk.bf16.gmra.mrb[24].mxu1 %vm617_vm7, %v9707_v40 }
  0xc3   : > { %7987 = vmatprep.mubr.msk.bf16.mxu1 %vm617_vm7, %v9711_v41 }
  0xca   : > { %7988 = vmatmul.mubr.msk.bf16.gmra.mrb[28].mxu1 %vm617_vm7, %v1166_v54  ;;  %v9801_v54 = vsel %vm1415_vm9, %v1443_v45, %v9794_v46 }
  0xcb   : > { %7993 = vmatprep.mubr.msk.bf16.mxu1 %vm617_vm7, %v1418_v57  ;;  %v1395_v57 = vld [vmem:[#allocation2 + $0xb0] sm:$0x1] }
  0xcc   : > { %v1447_v5 = vrot.slane %v1395_v57, 1 }
  0xd2   : > { %7994 = vmatmul.mubr.msk.bf16.vlgmr.msra.gmra.mrb[0].mxu1 %vm617_vm7, %v1420_v6  ;;  %v1714_v6 = vrot.slane %v1693_v62, 7 }
  0xd3   : > { %7997 = vmatprep.mubr.msk.bf16.mxu1 %vm617_vm7, %v1422_v7  ;;  %8026 = vmatpush3.bf16.msra.mxu1 %v1796_v9  ;;  %v1448_v7 = vsel %vm1415_vm9, %v9794_v46, %v1447_v5 }
  0xd4   : > { %9160 = vmatprep.subr.msk.bf16.mxu1 %vm666_vm6, %v7162_v10  ;;  %v1716_v9 = vsel %vm1133_vm8, %v1714_v6, %v9638_v18  ;;  %v613_v18 = vlaneseq }
  0xd6   : > { %v9827_v10 = vshrl.u32 %v613_v18, 7 }
  0xda   : > { %7998 = vmatmul.mubr.msk.bf16.gmra.mrb[4].mxu1 %vm617_vm7, %v1424_v13  ;;  %v9817_v13 = vld [vmem:[%s10936_s3 + $0xa] sm:$0x3] }
  0xdb   : > { %8001 = vmatprep.mubr.msk.bf16.mxu1 %vm617_vm7, %v1426_v14  ;;  %v615_v14 = vsub.s32 0, %v9827_v10 }
  0xe2   : > { %8002 = vmatmul.mubr.msk.bf16.gmra.mrb[8].mxu1 %vm617_vm7, %v9747_v17 }
  0xe3   : > { %8005 = vmatprep.mubr.msk.bf16.mxu1 %vm617_vm7, %v9750_v19 }
  0xea   : > { %8006 = vmatmul.mubr.msk.bf16.gmra.mrb[12].mxu1 %vm617_vm7, %v9759_v22 }
  0xeb   : > { %8009 = vmatprep.mubr.msk.bf16.mxu1 %vm617_vm7, %v9762_v25 }
  0xf2   : > { %8010 = vmatmul.mubr.msk.bf16.gmra.mrb[16].mxu1 %vm617_vm7, %v9771_v30 }
  0xf3   : > { %8013 = vmatprep.mubr.msk.bf16.mxu1 %vm617_vm7, %v9774_v33 }
  0xfa   : > { %8014 = vmatmul.mubr.msk.bf16.gmra.mrb[20].mxu1 %vm617_vm7, %v9783_v42 }
  0xfb   : > { %8017 = vmatprep.mubr.msk.bf16.mxu1 %vm617_vm7, %v9786_v43 }
 0x102   : > { %8018 = vmatmul.mubr.msk.bf16.gmra.mrb[24].mxu1 %vm617_vm7, %v9797_v52 }
 0x103   : > { %8021 = vmatprep.mubr.msk.bf16.mxu1 %vm617_vm7, %v9801_v54 }
 0x10a   : > { %8022 = vmatmul.mubr.msk.bf16.gmra.mrb[28].mxu1 %vm617_vm7, %v1448_v7  ;;  %v3978_v7 = vsel %vm666_vm6, %v9688_v35, 0 }
 0x10b   : > { %8027 = vmatprep.mubr.msk.bf16.mxu1 %vm617_vm7, %v1716_v9 }
 0x112   : > { %8028 = vmatmul.mubr.msk.bf16.vlgmr.msra.gmra.mrb[0].mxu1 %vm617_vm7, %v9650_v23  ;;  %v611_v23 = vld [vmem:[%s10937_s4] sm:$0x7] }
 0x113   : > { %8031 = vmatprep.mubr.msk.bf16.mxu1 %vm617_vm7, %v9653_v24  ;;  %8060 = vmatpush3.bf16.msra.mxu1 %v1994_v11  ;;  %v9837_v24 = vrot.slane %v611_v23, %v615_v14 }
 0x114   : > { %9161 = vmatprep.subr.msk.bf16.mxu1 %vm666_vm6, %v9817_v13 }
 0x11a   : > { %8032 = vmatmul.mubr.msk.bf16.gmra.mrb[4].mxu1 %vm617_vm7, %v9662_v27 }
 0x11b   : > { %8035 = vmatprep.mubr.msk.bf16.mxu1 %vm617_vm7, %v9665_v28 }
 0x122   : > { %8036 = vmatmul.mubr.msk.bf16.gmra.mrb[8].mxu1 %vm617_vm7, %v9674_v31 }
 0x123   : > { %8039 = vmatprep.mubr.msk.bf16.mxu1 %vm617_vm7, %v9677_v32 }
 0x125   : > { %v7893_v27 = vpop.f32.mrb[0].mxu0 }
 0x126   : > { %v713_v15 = vadd.f32 %v7893_v27, %v9837_v24  ;;  %v704_v16 = vpop.f32.mrb[1].mxu0 }
 0x127   : > { %v705_v28 = vadd.f32 %v704_v16, %v9837_v24  ;;  %v7894_v20 = vpop.f32.mrb[2].mxu0  ;;  %v1737_v16 = vrot.slane %v9590_v1, 7 }
 0x128   : > { %v716_v21 = vadd.f32 %v7894_v20, %v9837_v24  ;;  %v707_v26 = vpop.f32.mrb[3].mxu0  ;;  %v833_v34 = vmax.f32 %v713_v15, 0.0  ;;  %v1739_v20 = vrot.slane %v9592_v2, 7 }
 0x129   : > { %v708_v29 = vadd.f32 %v707_v26, %v9837_v24  ;;  %v831_v31 = vmax.f32 %v705_v28, 0.0 }
 0x12a   : > { %v834_v38 = vmax.f32 %v716_v21, 0.0  ;;  %8040 = vmatmul.mubr.msk.bf16.gmra.mrb[12].mxu1 %vm617_vm7, %v9693_v36  ;;  %v9857_v36 = vld [vmem:[%s10936_s3 + $0x12] sm:$0x3] }
 0x12b   : > { %v832_v45 = vmax.f32 %v708_v29, 0.0  ;;  %8043 = vmatprep.mubr.msk.bf16.mxu1 %vm617_vm7, %v9696_v37 }
 0x12c   : > { %v864_v32 = vpack.c.bf16 %v834_v38, %v833_v34 }
 0x12d   : > { %v863_v57 = vpack.c.bf16 %v832_v45, %v831_v31  ;;  %v7897_v62 = vpop.f32.mrb[4].mxu0  ;;  %v1738_v31 = vsel %vm1133_vm8, %v9704_v39, %v1737_v16 }
 0x12e   : > { %v729_v5 = vadd.f32 %v7897_v62, %v9837_v24  ;;  %v720_v6 = vpop.f32.mrb[5].mxu0 }
 0x12f   : > { %v721_v9 = vadd.f32 %v720_v6, %v9837_v24  ;;  %v7898_v11 = vpop.f32.mrb[6].mxu0  ;;  %8269 = vmatprep.mubr.msk.bf16.mxu0 %vm3476_vm10, %v863_v57 }
 0x130   : > { %v732_v37 = vadd.f32 %v7898_v11, %v9837_v24  ;;  %v723_v18 = vpop.f32.mrb[7].mxu0  ;;  %8270 = vmatmul.mubr.msk.bf16.vlgmr.msra.gmra.mrb[32].mxu0 %vm3476_vm10, %v864_v32  ;;  %v837_v23 = vmax.f32 %v729_v5, 0.0  ;;  %v1740_v32 = vsel %vm1133_vm8, %v1737_v16, %v1739_v20  ;;  %v1743_v11 = vrot.slane %v9604_v4, 7 }
 0x131   : > { %v724_v14 = vadd.f32 %v723_v18, %v9837_v24  ;;  %8302 = vmatpush3.bf16.msra.mxu0 %v3978_v7  ;;  %v835_v27 = vmax.f32 %v721_v9, 0.0  ;;  %v1741_v9 = vrot.slane %v9602_v3, 7 }
 0x132   : > { %v838_v35 = vmax.f32 %v732_v37, 0.0  ;;  %8044 = vmatmul.mubr.msk.bf16.gmra.mrb[16].mxu1 %vm617_vm7, %v9707_v40  ;;  %9166 = vmatprep.subr.msk.bf16.mxu0 %vm666_vm6, %v9857_v36 }
 0x133   : > { %v836_v15 = vmax.f32 %v724_v14, 0.0  ;;  %8047 = vmatprep.mubr.msk.bf16.mxu1 %vm617_vm7, %v9711_v41 }
 0x134   : > { %v866_v28 = vpack.c.bf16 %v838_v35, %v837_v23 }
 0x135   : > { %v865_v21 = vpack.c.bf16 %v836_v15, %v835_v27  ;;  %v7901_v26 = vpop.f32.mrb[8].mxu0  ;;  %v1742_v15 = vsel %vm1133_vm8, %v1739_v20, %v1741_v9 }
 0x136   : > { %v745_v29 = vadd.f32 %v7901_v26, %v9837_v24  ;;  %v736_v34 = vpop.f32.mrb[9].mxu0  ;;  %v1694_v26 = vld [vmem:[#allocation2 + $0xc8] sm:$0x7f] }
 0x137   : > { %v737_v40 = vadd.f32 %v736_v34, %v9837_v24  ;;  %v7902_v38 = vpop.f32.mrb[10].mxu0  ;;  %8273 = vmatprep.mubr.msk.bf16.mxu0 %vm3476_vm10, %v865_v21  ;;  %v1744_v21 = vsel %vm1133_vm8, %v1741_v9, %v1743_v11 }
 0x138   : > { %v748_v41 = vadd.f32 %v7902_v38, %v9837_v24  ;;  %v739_v45 = vpop.f32.mrb[11].mxu0  ;;  %8274 = vmatmul.mubr.msk.bf16.gmra.mrb[36].mxu0 %vm3476_vm10, %v866_v28  ;;  %v841_v62 = vmax.f32 %v745_v29, 0.0 }
 0x139   : > { %v740_v57 = vadd.f32 %v739_v45, %v9837_v24  ;;  %v839_v6 = vmax.f32 %v737_v40, 0.0 }
 0x13a   : > { %v842_v5 = vmax.f32 %v748_v41, 0.0  ;;  %8048 = vmatmul.mubr.msk.bf16.gmra.mrb[20].mxu1 %vm617_vm7, %v1738_v31  ;;  %v1745_v41 = vrot.slane %v1694_v26, 7 }
 0x13b   : > { %v840_v7 = vmax.f32 %v740_v57, 0.0  ;;  %8051 = vmatprep.mubr.msk.bf16.mxu1 %vm617_vm7, %v1740_v32 }
 0x13c   : > { %v868_v39 = vpack.c.bf16 %v842_v5, %v841_v62 }
 0x13d   : > { %v867_v37 = vpack.c.bf16 %v840_v7, %v839_v6  ;;  %v7905_v18 = vpop.f32.mrb[12].mxu0  ;;  %v1746_v7 = vsel %vm1133_vm8, %v1743_v11, %v1745_v41 }
 0x13e   : > { %v761_v14 = vadd.f32 %v7905_v18, %v9837_v24  ;;  %v752_v23 = vpop.f32.mrb[13].mxu0 }
 0x13f   : > { %v753_v35 = vadd.f32 %v752_v23, %v9837_v24  ;;  %v7906_v27 = vpop.f32.mrb[14].mxu0  ;;  %8277 = vmatprep.mubr.msk.bf16.mxu0 %vm3476_vm10, %v867_v37 }
 0x140   : > { %v764_v16 = vadd.f32 %v7906_v27, %v9837_v24  ;;  %v755_v28 = vpop.f32.mrb[15].mxu0  ;;  %8278 = vmatmul.mubr.msk.bf16.gmra.mrb[40].mxu0 %vm3476_vm10, %v868_v39  ;;  %v845_v34 = vmax.f32 %v761_v14, 0.0 }
 0x141   : > { %v756_v29 = vadd.f32 %v755_v28, %v9837_v24  ;;  %v843_v38 = vmax.f32 %v753_v35, 0.0 }
 0x142   : > { %v846_v40 = vmax.f32 %v764_v16, 0.0  ;;  %8052 = vmatmul.mubr.msk.bf16.gmra.mrb[24].mxu1 %vm617_vm7, %v1742_v15 }
 0x143   : > { %v844_v31 = vmax.f32 %v756_v29, 0.0  ;;  %8055 = vmatprep.mubr.msk.bf16.mxu1 %vm617_vm7, %v1744_v21 }
 0x144   : > { %v870_v20 = vpack.c.bf16 %v846_v40, %v845_v34  ;;  %v2307_v40 = vsel %vm666_vm6, %v9817_v13, 0 }
 0x145   : > { %v869_v45 = vpack.c.bf16 %v844_v31, %v843_v38  ;;  %v7909_v32 = vpop.f32.mrb[16].mxu0  ;;  %v9914_v31 = vld [vmem:[%s10936_s3 + $0xc] sm:$0x3] }
 0x146   : > { %v777_v57 = vadd.f32 %v7909_v32, %v9837_v24  ;;  %v768_v62 = vpop.f32.mrb[17].mxu0 }
 0x147   : > { %v769_v5 = vadd.f32 %v768_v62, %v9837_v24  ;;  %v7910_v6 = vpop.f32.mrb[18].mxu0  ;;  %8281 = vmatprep.mubr.msk.bf16.mxu0 %vm3476_vm10, %v869_v45 }
 0x148   : > { %v780_v9 = vadd.f32 %v7910_v6, %v9837_v24  ;;  %v771_v39 = vpop.f32.mrb[19].mxu0  ;;  %8282 = vmatmul.mubr.msk.bf16.gmra.mrb[44].mxu0 %vm3476_vm10, %v870_v20  ;;  %v849_v18 = vmax.f32 %v777_v57, 0.0 }
 0x149   : > { %v772_v37 = vadd.f32 %v771_v39, %v9837_v24  ;;  %v847_v23 = vmax.f32 %v769_v5, 0.0 }
 0x14a   : > { %v850_v14 = vmax.f32 %v780_v9, 0.0  ;;  %8056 = vmatmul.mubr.msk.bf16.gmra.mrb[28].mxu1 %vm617_vm7, %v1746_v7 }
 0x14b   : > { %v848_v35 = vmax.f32 %v772_v37, 0.0  ;;  %8061 = vmatprep.mubr.msk.bf16.mxu1 %vm617_vm7, %v9500_v44 }
 0x14c   : > { %v872_v27 = vpack.c.bf16 %v850_v14, %v849_v18 }
 0x14d   : > { %v871_v15 = vpack.c.bf16 %v848_v35, %v847_v23  ;;  %v7913_v16 = vpop.f32.mrb[20].mxu0 }
 0x14e   : > { %v793_v11 = vadd.f32 %v7913_v16, %v9837_v24  ;;  %v784_v28 = vpop.f32.mrb[21].mxu0 }
 0x14f   : > { %v785_v21 = vadd.f32 %v784_v28, %v9837_v24  ;;  %v7914_v26 = vpop.f32.mrb[22].mxu0  ;;  %8285 = vmatprep.mubr.msk.bf16.mxu0 %vm3476_vm10, %v871_v15 }
 0x150   : > { %v796_v29 = vadd.f32 %v7914_v26, %v9837_v24  ;;  %v787_v34 = vpop.f32.mrb[23].mxu0  ;;  %8286 = vmatmul.mubr.msk.bf16.gmra.mrb[48].mxu0 %vm3476_vm10, %v872_v27  ;;  %v853_v41 = vmax.f32 %v793_v11, 0.0 }
 0x151   : > { %v788_v38 = vadd.f32 %v787_v34, %v9837_v24  ;;  %v851_v45 = vmax.f32 %v785_v21, 0.0 }
 0x152   : > { %v854_v20 = vmax.f32 %v796_v29, 0.0  ;;  %8062 = vmatmul.mubr.msk.bf16.vlgmr.msra.gmra.mrb[0].mxu1 %vm617_vm7, %v9508_v48 }
 0x153   : > { %v852_v32 = vmax.f32 %v788_v38, 0.0  ;;  %8065 = vmatprep.mubr.msk.bf16.mxu1 %vm617_vm7, %v9516_v50  ;;  %8094 = vmatpush3.bf16.msra.mxu1 %v2307_v40 }
 0x154   : > { %v874_v57 = vpack.c.bf16 %v854_v20, %v853_v41  ;;  %9162 = vmatprep.subr.msk.bf16.mxu1 %vm666_vm6, %v9914_v31 }
 0x155   : > { %v873_v13 = vpack.c.bf16 %v852_v32, %v851_v45  ;;  %v7917_v62 = vpop.f32.mrb[24].mxu0 }
 0x156   : > { %v809_v5 = vadd.f32 %v7917_v62, %v9837_v24  ;;  %v800_v6 = vpop.f32.mrb[25].mxu0  ;;  %v3908_v62 = vld [vmem:[#allocation2 + $0x10] sm:$0xff] }
 0x157   : > { %v801_v7 = vadd.f32 %v800_v6, %v9837_v24  ;;  %v7918_v9 = vpop.f32.mrb[26].mxu0  ;;  %8289 = vmatprep.mubr.msk.bf16.mxu0 %vm3476_vm10, %v873_v13  ;;  %v9953_v6 = vld [vmem:[#allocation2 + $0x20] sm:$0xff] }
 0x158   : > { %v812_v39 = vadd.f32 %v7918_v9, %v9837_v24  ;;  %v803_v37 = vpop.f32.mrb[27].mxu0  ;;  %8290 = vmatmul.mubr.msk.bf16.gmra.mrb[52].mxu0 %vm3476_vm10, %v874_v57  ;;  %v857_v14 = vmax.f32 %v809_v5, 0.0  ;;  %v4241_v5 = vsel %vm666_vm6, %v9857_v36, 0  ;;  %v2620_v36 = vsel %vm666_vm6, %v9914_v31, 0 }
 0x159   : > { %v804_v18 = vadd.f32 %v803_v37, %v9837_v24  ;;  %v855_v35 = vmax.f32 %v801_v7, 0.0  ;;  %v7321_v7 = vld [vmem:[%s10936_s3 + $0x16] sm:$0x3]  ;;  %v4164_v9 = vrot.slane %v9953_v6, 6 }
 0x15a   : > { %v858_v23 = vmax.f32 %v812_v39, 0.0  ;;  %8066 = vmatmul.mubr.msk.bf16.gmra.mrb[4].mxu1 %vm617_vm7, %v9531_v53 }
 0x15b   : > { %v856_v27 = vmax.f32 %v804_v18, 0.0  ;;  %8069 = vmatprep.mubr.msk.bf16.mxu1 %vm617_vm7, %v9537_v56  ;;  %v2250_v18 = vrot.slane %v9602_v3, 1 }
 0x15c   : > { %v876_v15 = vpack.c.bf16 %v858_v23, %v857_v14 }
 0x15d   : > { %v875_v16 = vpack.c.bf16 %v856_v27, %v855_v35  ;;  %v7921_v11 = vpop.f32.mrb[28].mxu0  ;;  %v4170_v35 = vrot.slane %v9510_v49, 6 }
 0x15e   : > { %v825_v28 = vadd.f32 %v7921_v11, %v9837_v24  ;;  %v816_v21 = vpop.f32.mrb[29].mxu0  ;;  %v2502_v11 = vld [vmem:[#allocation2 + $0x68] sm:$0x80] }
 0x15f   : > { %v817_v26 = vadd.f32 %v816_v21, %v9837_v24  ;;  %v7922_v29 = vpop.f32.mrb[30].mxu0  ;;  %8293 = vmatprep.mubr.msk.bf16.mxu0 %vm3476_vm10, %v875_v16  ;;  %v2205_v16 = vld [vmem:[#allocation2 + $0xd0] sm:$0x1]  ;;  %v2538_v21 = vrot.slane %v2502_v11, 7 }
 0x160   : > { %v828_v34 = vadd.f32 %v7922_v29, %v9837_v24  ;;  %v819_v40 = vpop.f32.mrb[31].mxu0  ;;  %8294 = vmatmul.mubr.msk.bf16.gmra.mrb[56].mxu0 %vm3476_vm10, %v876_v15  ;;  %v861_v41 = vmax.f32 %v825_v28, 0.0  ;;  %v10077_v28 = vld [vmem:[#allocation2 + $0x70] sm:$0xff] }
 0x161   : > { %v820_v38 = vadd.f32 %v819_v40, %v9837_v24  ;;  %v859_v45 = vmax.f32 %v817_v26, 0.0  ;;  %v9949_v24 = vld [vmem:[#allocation2 + $0x18] sm:$0xff]  ;;  %v2539_v26 = vrot.slane %v10077_v28, 7 }
 0x162   : > { %v862_v20 = vmax.f32 %v828_v34, 0.0  ;;  %8070 = vmatmul.mubr.msk.bf16.gmra.mrb[8].mxu1 %vm617_vm7, %v9551_v58  ;;  %v10091_v40 = vld [vmem:[#allocation2 + $0x78] sm:$0xff] }
 0x163   : > { %v860_v32 = vmax.f32 %v820_v38, 0.0  ;;  %8073 = vmatprep.mubr.msk.bf16.mxu1 %vm617_vm7, %v9553_v59  ;;  %v4727_v38 = vrot.slane %v9508_v48, 6 }
 0x164   : > { %v878_v57 = vpack.c.bf16 %v862_v20, %v861_v41  ;;  %v10095_v41 = vld [vmem:[#allocation2 + $0x80] sm:$0xff]  ;;  %v4180_v20 = vrot.slane %v9516_v50, 6 }
 0x165   : > { %v877_v13 = vpack.c.bf16 %v860_v32, %v859_v45  ;;  %v2541_v45 = vrot.slane %v10091_v40, 7  ;;  %v2543_v32 = vrot.slane %v10095_v41, 7 }
 0x167   : > { %8297 = vmatprep.mubr.msk.bf16.mxu0 %vm3476_vm10, %v877_v13  ;;  %v2542_v13 = vsel %vm1133_vm8, %v2539_v26, %v2541_v45 }
 0x168   : > { %8298 = vmatmul.mubr.msk.bf16.gmra.mrb[60].mxu0 %vm3476_vm10, %v878_v57 }
 0x169   : > { %8303 = vmatprep.mubr.msk.bf16.mxu0 %vm617_vm7, %v3908_v62 }
 0x16a   : > { %8074 = vmatmul.mubr.msk.bf16.gmra.mrb[12].mxu1 %vm617_vm7, %v9563_v60 }
 0x16b   : > { %8077 = vmatprep.mubr.msk.bf16.mxu1 %vm617_vm7, %v9565_v61  ;;  %v9967_v61 = vld [vmem:[#allocation2 + $0x28] sm:$0xff] }
 0x16c   : > { %v4166_v37 = vrot.slane %v9967_v61, 6 }
 0x16e   : > { %v4167_v14 = vsel %vm666_vm6, %v4164_v9, %v4166_v37 }
 0x170   : > { %8304 = vmatmul.mubr.msk.bf16.vlgmr.msra.gmra.mrb[64].mxu0 %vm617_vm7, %v9949_v24 }
 0x171   : > { %8336 = vmatpush3.bf16.msra.mxu0 %v4241_v5  ;;  %8307 = vmatprep.mubr.msk.bf16.mxu0 %vm617_vm7, %v9953_v6 }
 0x172   : > { %8078 = vmatmul.mubr.msk.bf16.gmra.mrb[16].mxu1 %vm617_vm7, %v9578_v63  ;;  %9167 = vmatprep.subr.msk.bf16.mxu0 %vm666_vm6, %v7321_v7  ;;  %v2189_v63 = vld [vmem:[#allocation2 + $0x50] sm:$0xfe] }
 0x173   : > { %8081 = vmatprep.mubr.msk.bf16.mxu1 %vm617_vm7, %v9580_v0  ;;  %v2225_v0 = vrot.slane %v2189_v63, 1  ;;  %v10120_v63 = vld [vmem:[#allocation2 + $0x90] sm:$0xff] }
 0x178   : > { %8308 = vmatmul.mubr.msk.bf16.gmra.mrb[68].mxu0 %vm617_vm7, %v9967_v61 }
 0x179   : > { %8311 = vmatprep.mubr.msk.bf16.mxu0 %vm617_vm7, %v9506_v47 }
 0x17a   : > { %8082 = vmatmul.mubr.msk.bf16.gmra.mrb[20].mxu1 %vm617_vm7, %v9590_v1  ;;  %v2227_v1 = vsel %vm1415_vm9, %v2225_v0, %v9735_v12  ;;  %v10003_v12 = vld [vmem:[%s10936_s3 + $0xe] sm:$0x3]  ;;  %v10125_v0 = vld [vmem:[%s10936_s3 + $0x10] sm:$0x3] }
 0x17b   : > { %8085 = vmatprep.mubr.msk.bf16.mxu1 %vm617_vm7, %v9592_v2  ;;  %v2867_v5 = vsel %vm666_vm6, %v10003_v12, 0 }
 0x180   : > { %8312 = vmatmul.mubr.msk.bf16.gmra.mrb[72].mxu0 %vm617_vm7, %v9510_v49 }
 0x181   : > { %8315 = vmatprep.mubr.msk.bf16.mxu0 %vm617_vm7, %v9518_v51 }
 0x182   : > { %8086 = vmatmul.mubr.msk.bf16.gmra.mrb[24].mxu1 %vm617_vm7, %v9602_v3  ;;  %v2254_v3 = vrot.slane %v9615_v8, 1 }
 0x183   : > { %8089 = vmatprep.mubr.msk.bf16.mxu1 %vm617_vm7, %v9604_v4 }
 0x188   : > { %8316 = vmatmul.mubr.msk.bf16.gmra.mrb[76].mxu0 %vm617_vm7, %v9535_v55 }
 0x189   : > { %8319 = vmatprep.mubr.msk.bf16.mxu0 %vm617_vm7, %v9500_v44 }
 0x18a   : > { %8090 = vmatmul.mubr.msk.bf16.gmra.mrb[28].mxu1 %vm617_vm7, %v9615_v8  ;;  %v2256_v8 = vrot.slane %v2205_v16, 1  ;;  %v4446_v16 = vrot.slane %v9967_v61, 2  ;;  %v10205_v61 = vld [vmem:[%s10936_s3 + $0x1a] sm:$0x3] }
 0x18b   : > { %8095 = vmatprep.mubr.msk.bf16.mxu1 %vm617_vm7, %v2227_v1  ;;  %v4184_v1 = vrot.slane %v9537_v56, 6 }
 0x18c   : > { %v2257_v34 = vsel %vm1415_vm9, %v2254_v3, %v2256_v8 }
 0x190   : > { %8320 = vmatmul.mubr.msk.bf16.gmra.mrb[80].mxu0 %vm617_vm7, %v9508_v48  ;;  %v10107_v48 = vsel %vm666_vm6, %v4727_v38, %v4180_v20 }
 0x191   : > { %8323 = vmatprep.mubr.msk.bf16.mxu0 %vm617_vm7, %v9516_v50  ;;  %v2544_v50 = vsel %vm1133_vm8, %v2541_v45, %v2543_v32 }
 0x192   : > { %8096 = vmatmul.mubr.msk.bf16.vlgmr.msra.gmra.mrb[0].mxu1 %vm617_vm7, %v9747_v17  ;;  %v3907_v17 = vld [vmem:[#allocation2 + $0x8] sm:$0xc0] }
 0x193   : > { %8099 = vmatprep.mubr.msk.bf16.mxu1 %vm617_vm7, %v9750_v19  ;;  %8128 = vmatpush3.bf16.msra.mxu1 %v2620_v36  ;;  %v4160_v19 = vrot.slane %v3908_v62, 6  ;;  %v4159_v31 = vrot.slane %v3907_v17, 6  ;;  %v10113_v62 = vld [vmem:[#allocation2 + $0x88] sm:$0xff] }
 0x194   : > { %9163 = vmatprep.subr.msk.bf16.mxu1 %vm666_vm6, %v10003_v12  ;;  %v2545_v36 = vrot.slane %v10113_v62, 7 }
 0x198   : > { %8324 = vmatmul.mubr.msk.bf16.gmra.mrb[84].mxu0 %vm617_vm7, %v9531_v53 }
 0x199   : > { %8327 = vmatprep.mubr.msk.bf16.mxu0 %vm617_vm7, %v9537_v56  ;;  %v2546_v56 = vsel %vm1133_vm8, %v2543_v32, %v2545_v36 }
 0x19a   : > { %8100 = vmatmul.mubr.msk.bf16.gmra.mrb[4].mxu1 %vm617_vm7, %v9759_v22  ;;  %v4161_v22 = vsel %vm666_vm6, %v4159_v31, %v4160_v19  ;;  %v10144_v31 = vld [vmem:[#allocation2 + $0x98] sm:$0xff] }
 0x19b   : > { %8103 = vmatprep.mubr.msk.bf16.mxu1 %vm617_vm7, %v9762_v25  ;;  %v4162_v25 = vrot.slane %v9949_v24, 6 }
 0x19d   : > { %v4165_v39 = vsel %vm666_vm6, %v4162_v25, %v4164_v9  ;;  %v10152_v9 = vrot.slane %v9553_v59, 6 }
 0x1a0   : > { %8328 = vmatmul.mubr.msk.bf16.gmra.mrb[88].mxu0 %vm617_vm7, %v9551_v58 }
 0x1a1   : > { %8331 = vmatprep.mubr.msk.bf16.mxu0 %vm617_vm7, %v9553_v59  ;;  %v4404_v59 = vld [vmem:[#allocation2 + $0x10] sm:$0xfc] }
 0x1a2   : > { %8104 = vmatmul.mubr.msk.bf16.gmra.mrb[8].mxu1 %vm617_vm7, %v9771_v30  ;;  %v4163_v30 = vsel %vm666_vm6, %v4160_v19, %v4162_v25  ;;  %v10149_v25 = vld [vmem:[#allocation2 + $0xa0] sm:$0xff] }
 0x1a3   : > { %8107 = vmatprep.mubr.msk.bf16.mxu1 %vm617_vm7, %v9774_v33  ;;  %v4523_v33 = vsel %vm666_vm6, %v7321_v7, 0  ;;  %v4182_v7 = vrot.slane %v9531_v53, 6  ;;  %v2547_v53 = vrot.slane %v10120_v63, 7 }
 0x1a5   : > { %v10135_v12 = vsel %vm666_vm6, %v4180_v20, %v4182_v7  ;;  %v10138_v17 = vsel %vm666_vm6, %v4182_v7, %v4184_v1  ;;  %v2548_v19 = vsel %vm1133_vm8, %v2545_v36, %v2547_v53 }
 0x1a8   : > { %8332 = vmatmul.mubr.msk.bf16.gmra.mrb[92].mxu0 %vm617_vm7, %v9563_v60  ;;  %v10043_v60 = vld [vmem:[%s10936_s3 + $0x18] sm:$0x3] }
 0x1a9   : > { %8337 = vmatprep.mubr.msk.bf16.mxu0 %vm617_vm7, %v4161_v22  ;;  %v4186_v22 = vrot.slane %v9551_v58, 6 }
 0x1aa   : > { %8108 = vmatmul.mubr.msk.bf16.gmra.mrb[12].mxu1 %vm617_vm7, %v9783_v42  ;;  %v4168_v42 = vrot.slane %v9506_v47, 6 }
 0x1ab   : > { %8111 = vmatprep.mubr.msk.bf16.mxu1 %vm617_vm7, %v9786_v43  ;;  %v2248_v43 = vrot.slane %v9592_v2, 1  ;;  %v2252_v2 = vrot.slane %v9604_v4, 1  ;;  %v10080_v4 = vrot.slane %v9500_v44, 6  ;;  %v2540_v44 = vsel %vm1133_vm8, %v2538_v21, %v2539_v26 }
 0x1ac   : > { %v4169_v23 = vsel %vm666_vm6, %v4166_v37, %v4168_v42  ;;  %v10163_v58 = vsel %vm666_vm6, %v4186_v22, %v10152_v9  ;;  %v3923_v37 = vld [vmem:[#allocation2 + $0x88] sm:$0x3f]  ;;  %v4806_v21 = vsel %vm666_vm6, %v10043_v60, 0 }
 0x1ad   : > { %v2249_v47 = vsel %vm1415_vm9, %v9794_v46, %v2248_v43  ;;  %v4171_v46 = vsel %vm666_vm6, %v4168_v42, %v4170_v35  ;;  %v2253_v15 = vsel %vm1415_vm9, %v2250_v18, %v2252_v2  ;;  %v2255_v49 = vsel %vm1415_vm9, %v2252_v2, %v2254_v3 }
 0x1ae   : > { %v10104_v57 = vsel %vm666_vm6, %v10080_v4, %v4727_v38  ;;  %v10212_v38 = vld [vmem:[#allocation2 + $0xd0] sm:$0xff] }
 0x1af   : > { %v2563_v32 = vrot.slane %v10212_v38, 7 }
 0x1b0   : > { %8338 = vmatmul.mubr.msk.bf16.vlgmr.msra.gmra.mrb[64].mxu0 %vm617_vm7, %v4163_v30  ;;  %v2549_v30 = vrot.slane %v10144_v31, 7 }
 0x1b1   : > { %8370 = vmatpush3.bf16.msra.mxu0 %v4523_v33  ;;  %8341 = vmatprep.mubr.msk.bf16.mxu0 %vm617_vm7, %v4165_v39  ;;  %v2551_v33 = vrot.slane %v10149_v25, 7  ;;  %v10159_v39 = vsel %vm666_vm6, %v4184_v1, %v4186_v22  ;;  %v4411_v1 = vld [vmem:[#allocation2 + $0x48] sm:$0xff] }
 0x1b2   : > { %8112 = vmatmul.mubr.msk.bf16.gmra.mrb[16].mxu1 %vm617_vm7, %v9797_v52  ;;  %9168 = vmatprep.subr.msk.bf16.mxu0 %vm666_vm6, %v10043_v60  ;;  %v2251_v52 = vsel %vm1415_vm9, %v2248_v43, %v2250_v18  ;;  %v2550_v42 = vsel %vm1133_vm8, %v2547_v53, %v2549_v30  ;;  %v10169_v18 = vld [vmem:[#allocation2 + $0xa8] sm:$0xff]  ;;  %v10225_v53 = vld [vmem:[#allocation2 + $0xd8] sm:$0xff]  ;;  %v4454_v22 = vrot.slane %v4411_v1, 2 }
 0x1b3   : > { %8115 = vmatprep.mubr.msk.bf16.mxu1 %vm617_vm7, %v9801_v54  ;;  %v4172_v54 = vrot.slane %v9518_v51, 6  ;;  %v4174_v51 = vrot.slane %v9535_v55, 6  ;;  %v2552_v43 = vsel %vm1133_vm8, %v2549_v30, %v2551_v33  ;;  %v2565_v30 = vrot.slane %v10225_v53, 7 }
 0x1b5   : > { %v4173_v27 = vsel %vm666_vm6, %v4170_v35, %v4172_v54  ;;  %v4175_v29 = vsel %vm666_vm6, %v4172_v54, %v4174_v51  ;;  %v4177_v55 = vsel %vm666_vm6, %v4174_v51, %v10080_v4  ;;  %v2553_v35 = vrot.slane %v10169_v18, 7 }
 0x1b8   : > { %8342 = vmatmul.mubr.msk.bf16.gmra.mrb[68].mxu0 %vm617_vm7, %v4167_v14  ;;  %v4190_v14 = vrot.slane %v3923_v37, 6 }
 0x1b9   : > { %8345 = vmatprep.mubr.msk.bf16.mxu0 %vm617_vm7, %v4169_v23  ;;  %v10173_v23 = vld [vmem:[#allocation2 + $0xb0] sm:$0xff] }
 0x1ba   : > { %8116 = vmatmul.mubr.msk.bf16.gmra.mrb[20].mxu1 %vm617_vm7, %v2249_v47  ;;  %v4441_v47 = vrot.slane %v4404_v59, 2  ;;  %v2555_v54 = vrot.slane %v10173_v23, 7  ;;  %v4191_v2 = vsel %vm666_vm6, %v10152_v9, %v4190_v14  ;;  %v4412_v59 = vld [vmem:[#allocation2 + $0x50] sm:$0xff]  ;;  %v4413_v14 = vld [vmem:[#allocation2 + $0x58] sm:$0xff] }
 0x1bb   : > { %8119 = vmatprep.mubr.msk.bf16.mxu1 %vm617_vm7, %v2251_v52  ;;  %v4442_v52 = vrot.slane %v9949_v24, 2  ;;  %v4444_v24 = vrot.slane %v9953_v6, 2  ;;  %v4408_v6 = vld [vmem:[#allocation2 + $0x30] sm:$0xff] }
 0x1bc   : > { %v4448_v60 = vrot.slane %v4408_v6, 2 }
 0x1bd   : > { %v4443_v3 = vsel %vm4440_vm11, %v4441_v47, %v4442_v52  ;;  %v4445_v8 = vsel %vm4440_vm11, %v4442_v52, %v4444_v24  ;;  %v4447_v26 = vsel %vm4440_vm11, %v4444_v24, %v4446_v16  ;;  %v2518_v52 = vld [vmem:[#allocation2 + $0xe8] sm:$0x7f] }
 0x1c0   : > { %8346 = vmatmul.mubr.msk.bf16.gmra.mrb[72].mxu0 %vm617_vm7, %v4171_v46  ;;  %v2554_v46 = vsel %vm1133_vm8, %v2551_v33, %v2553_v35 }
 0x1c1   : > { %8349 = vmatprep.mubr.msk.bf16.mxu0 %vm617_vm7, %v4173_v27  ;;  %v2556_v27 = vsel %vm1133_vm8, %v2553_v35, %v2555_v54  ;;  %v4456_v35 = vrot.slane %v4412_v59, 2 }
 0x1c2   : > { %8120 = vmatmul.mubr.msk.bf16.gmra.mrb[24].mxu1 %vm617_vm7, %v2253_v15  ;;  %v10186_v15 = vld [vmem:[#allocation2 + $0xb8] sm:$0xff] }
 0x1c3   : > { %8123 = vmatprep.mubr.msk.bf16.mxu1 %vm617_vm7, %v2255_v49  ;;  %v10190_v49 = vld [vmem:[#allocation2 + $0xc0] sm:$0xff]  ;;  %v2557_v51 = vrot.slane %v10186_v15, 7  ;;  %v4457_v24 = vsel %vm4440_vm11, %v4454_v22, %v4456_v35 }
 0x1c4   : > { %v2559_v11 = vrot.slane %v10190_v49, 7 }
 0x1c8   : > { %8350 = vmatmul.mubr.msk.bf16.gmra.mrb[76].mxu0 %vm617_vm7, %v4175_v29  ;;  %v2558_v29 = vsel %vm1133_vm8, %v2555_v54, %v2557_v51  ;;  %v4458_v54 = vrot.slane %v4413_v14, 2  ;;  %v4420_v14 = vld [vmem:[#allocation2 + $0x90] sm:$0x3] }
 0x1c9   : > { %8353 = vmatprep.mubr.msk.bf16.mxu0 %vm617_vm7, %v4177_v55  ;;  %v4409_v55 = vld [vmem:[#allocation2 + $0x38] sm:$0xff] }
 0x1ca   : > { %8124 = vmatmul.mubr.msk.bf16.gmra.mrb[28].mxu1 %vm617_vm7, %v2257_v34  ;;  %v2560_v34 = vsel %vm1133_vm8, %v2557_v51, %v2559_v11  ;;  %v4450_v20 = vrot.slane %v4409_v55, 2  ;;  %v4459_v51 = vsel %vm4440_vm11, %v4456_v35, %v4458_v54 }
 0x1cb   : > { %8129 = vmatprep.mubr.msk.bf16.mxu1 %vm617_vm7, %v2540_v44  ;;  %v10209_v44 = vld [vmem:[#allocation2 + $0xc8] sm:$0xff] }
 0x1cc   : > { %v2561_v45 = vrot.slane %v10209_v44, 7 }
 0x1ce   : > { %v2562_v7 = vsel %vm1133_vm8, %v2559_v11, %v2561_v45  ;;  %v2564_v36 = vsel %vm1133_vm8, %v2561_v45, %v2563_v32  ;;  %v4414_v11 = vld [vmem:[#allocation2 + $0x60] sm:$0xff] }
 0x1d0   : > { %8354 = vmatmul.mubr.msk.bf16.gmra.mrb[80].mxu0 %vm617_vm7, %v10104_v57 }
 0x1d1   : > { %8357 = vmatprep.mubr.msk.bf16.mxu0 %vm617_vm7, %v10107_v48 }
 0x1d2   : > { %8130 = vmatmul.mubr.msk.bf16.vlgmr.msra.gmra.mrb[0].mxu1 %vm617_vm7, %v2542_v13  ;;  %v4449_v13 = vsel %vm4440_vm11, %v4446_v16, %v4448_v60 }
 0x1d3   : > { %8133 = vmatprep.mubr.msk.bf16.mxu1 %vm617_vm7, %v2544_v50  ;;  %8162 = vmatpush3.bf16.msra.mxu1 %v2867_v5  ;;  %v4451_v50 = vsel %vm4440_vm11, %v4448_v60, %v4450_v20  ;;  %v4410_v5 = vld [vmem:[#allocation2 + $0x40] sm:$0xff] }
 0x1d4   : > { %9164 = vmatprep.subr.msk.bf16.mxu1 %vm666_vm6, %v10125_v0 }
 0x1d8   : > { %8358 = vmatmul.mubr.msk.bf16.gmra.mrb[84].mxu0 %vm617_vm7, %v10135_v12 }
 0x1d9   : > { %8361 = vmatprep.mubr.msk.bf16.mxu0 %vm617_vm7, %v10138_v17 }
 0x1da   : > { %8134 = vmatmul.mubr.msk.bf16.gmra.mrb[4].mxu1 %vm617_vm7, %v2546_v56  ;;  %v4452_v56 = vrot.slane %v4410_v5, 2 }
 0x1db   : > { %8137 = vmatprep.mubr.msk.bf16.mxu1 %vm617_vm7, %v2548_v19  ;;  %v10228_v19 = vld [vmem:[#allocation2 + $0xe0] sm:$0xff] }
 0x1dc   : > { %v2567_v33 = vrot.slane %v10228_v19, 7  ;;  %v4453_v37 = vsel %vm4440_vm11, %v4450_v20, %v4452_v56 }
 0x1de   : > { %v2568_v47 = vsel %vm1133_vm8, %v2565_v30, %v2567_v33 }
 0x1e0   : > { %8362 = vmatmul.mubr.msk.bf16.gmra.mrb[88].mxu0 %vm617_vm7, %v10159_v39 }
 0x1e1   : > { %8365 = vmatprep.mubr.msk.bf16.mxu0 %vm617_vm7, %v10163_v58 }
 0x1e2   : > { %8138 = vmatmul.mubr.msk.bf16.gmra.mrb[8].mxu1 %vm617_vm7, %v2550_v42  ;;  %v4455_v42 = vsel %vm4440_vm11, %v4452_v56, %v4454_v22  ;;  %v4470_v22 = vrot.slane %v10113_v62, 2 }
 0x1e3   : > { %8141 = vmatprep.mubr.msk.bf16.mxu1 %vm617_vm7, %v2552_v43  ;;  %v2566_v43 = vsel %vm1133_vm8, %v2563_v32, %v2565_v30  ;;  %v3180_v32 = vsel %vm666_vm6, %v10125_v0, 0 }
 0x1e8   : > { %8366 = vmatmul.mubr.msk.bf16.gmra.mrb[92].mxu0 %vm617_vm7, %v4191_v2 }
 0x1e9   : > { %8371 = vmatprep.mubr.msk.bf16.mxu0 %vm617_vm7, %v4443_v3  ;;  %v2569_v3 = vrot.slane %v2518_v52, 7  ;;  %v4472_v52 = vrot.slane %v4420_v14, 2 }
 0x1ea   : > { %8142 = vmatmul.mubr.msk.bf16.gmra.mrb[12].mxu1 %vm617_vm7, %v2554_v46 }
 0x1eb   : > { %8145 = vmatprep.mubr.msk.bf16.mxu1 %vm617_vm7, %v2556_v27 }
 0x1f0   : > { %8372 = vmatmul.mubr.msk.bf16.vlgmr.msra.gmra.mrb[64].mxu0 %vm617_vm7, %v4445_v8  ;;  %v2570_v8 = vsel %vm1133_vm8, %v2567_v33, %v2569_v3 }
 0x1f1   : > { %8404 = vmatpush3.bf16.msra.mxu0 %v4806_v21  ;;  %8375 = vmatprep.mubr.msk.bf16.mxu0 %vm617_vm7, %v4447_v26  ;;  %v4415_v21 = vld [vmem:[#allocation2 + $0x68] sm:$0xff]  ;;  %v4460_v26 = vrot.slane %v4414_v11, 2 }
 0x1f2   : > { %8146 = vmatmul.mubr.msk.bf16.gmra.mrb[16].mxu1 %vm617_vm7, %v2558_v29  ;;  %9169 = vmatprep.subr.msk.bf16.mxu0 %vm666_vm6, %v10205_v61  ;;  %v4462_v6 = vrot.slane %v4415_v21, 2 }
 0x1f3   : > { %8149 = vmatprep.mubr.msk.bf16.mxu1 %vm617_vm7, %v2560_v34  ;;  %v4461_v60 = vsel %vm4440_vm11, %v4458_v54, %v4460_v26 }
 0x1f4   : > { %v4463_v45 = vsel %vm4440_vm11, %v4460_v26, %v4462_v6 }
 0x1f8   : > { %8376 = vmatmul.mubr.msk.bf16.gmra.mrb[68].mxu0 %vm617_vm7, %v4449_v13  ;;  %v4464_v13 = vrot.slane %v10077_v28, 2 }
 0x1f9   : > { %8379 = vmatprep.mubr.msk.bf16.mxu0 %vm617_vm7, %v4451_v50  ;;  %v4466_v50 = vrot.slane %v10091_v40, 2 }
 0x1fa   : > { %8150 = vmatmul.mubr.msk.bf16.gmra.mrb[20].mxu1 %vm617_vm7, %v2562_v7 }
 0x1fb   : > { %8153 = vmatprep.mubr.msk.bf16.mxu1 %vm617_vm7, %v2564_v36  ;;  %v4465_v36 = vsel %vm4440_vm11, %v4462_v6, %v4464_v13  ;;  %v4467_v56 = vsel %vm4440_vm11, %v4464_v13, %v4466_v50  ;;  %v5004_v6 = vsel %vm666_vm6, %v10205_v61, 0  ;;  %v3062_v13 = vld [vmem:[#allocation2 + $0x70] sm:$0xfe] }
 0x200   : > { %8380 = vmatmul.mubr.msk.bf16.gmra.mrb[72].mxu0 %vm617_vm7, %v4453_v37 }
 0x201   : > { %8383 = vmatprep.mubr.msk.bf16.mxu0 %vm617_vm7, %v4455_v42 }
 0x202   : > { %8154 = vmatmul.mubr.msk.bf16.gmra.mrb[24].mxu1 %vm617_vm7, %v2566_v43 }
 0x203   : > { %v10241_v2 = vpop.f32.mrb[32].mxu0  ;;  %8157 = vmatprep.mubr.msk.bf16.mxu1 %vm617_vm7, %v2568_v47  ;;  %v4718_v47 = vld [vmem:[#allocation2 + $0x48] sm:$0xc0] }
 0x204   : > { %v3780_v46 = vpop.f32.mrb[33].mxu0  ;;  %v4724_v35 = vrot.slane %v4718_v47, 6 }
 0x205   : > { %v8272_v27 = vpop.f32.mrb[34].mxu0 }
 0x206   : > { %v10245_v16 = vpop.f32.mrb[35].mxu0  ;;  %v4473_v27 = vsel %vm4440_vm11, %v4470_v22, %v4472_v52 }
 0x208   : > { %8384 = vmatmul.mubr.msk.bf16.gmra.mrb[76].mxu0 %vm617_vm7, %v4457_v24 }
 0x209   : > { %8387 = vmatprep.mubr.msk.bf16.mxu0 %vm617_vm7, %v4459_v51  ;;  %v4726_v51 = vsel %vm666_vm6, %v4724_v35, %v10080_v4  ;;  %v10318_v4 = vld [vmem:[%s10936_s3 + $0x1c] sm:$0x3]  ;;  %v10386_v35 = vld [vmem:[#allocation2 + $0xa8] sm:$0xff] }
 0x20a   : > { %8158 = vmatmul.mubr.msk.bf16.gmra.mrb[28].mxu1 %vm617_vm7, %v2570_v8 }
 0x20b   : > { %v10252_v29 = vpop.f32.mrb[36].mxu0  ;;  %8163 = vmatprep.mubr.msk.bf16.mxu1 %vm617_vm7, %v10077_v28  ;;  %v4468_v28 = vrot.slane %v10095_v41, 2 }
 0x20c   : > { %v3796_v55 = vpop.f32.mrb[37].mxu0 }
 0x20d   : > { %v8276_v34 = vpop.f32.mrb[38].mxu0  ;;  %v4469_v42 = vsel %vm4440_vm11, %v4466_v50, %v4468_v28  ;;  %v4471_v43 = vsel %vm4440_vm11, %v4468_v28, %v4470_v22  ;;  %v10355_v50 = vld [vmem:[#allocation2 + $0x90] sm:$0xff]  ;;  %v10369_v22 = vld [vmem:[#allocation2 + $0x98] sm:$0xff] }
 0x20e   : > { %v10257_v20 = vpop.f32.mrb[39].mxu0 }
 0x210   : > { %8388 = vmatmul.mubr.msk.bf16.gmra.mrb[80].mxu0 %vm617_vm7, %v4461_v60 }
 0x211   : > { %8391 = vmatprep.mubr.msk.bf16.mxu0 %vm617_vm7, %v4463_v45 }
 0x212   : > { %8164 = vmatmul.mubr.msk.bf16.vlgmr.msra.gmra.mrb[0].mxu1 %vm617_vm7, %v10091_v40 }
 0x213   : > { %v10268_v5 = vpop.f32.mrb[40].mxu0  ;;  %8167 = vmatprep.mubr.msk.bf16.mxu1 %vm617_vm7, %v10095_v41  ;;  %8196 = vmatpush3.bf16.msra.mxu1 %v3180_v32 }
 0x214   : > { %v3812_v7 = vpop.f32.mrb[41].mxu0 }
 0x215   : > { %v8280_v1 = vpop.f32.mrb[42].mxu0  ;;  %v4741_v7 = vrot.slane %v10355_v50, 6 }
 0x216   : > { %v10273_v0 = vpop.f32.mrb[43].mxu0  ;;  %v3098_v1 = vrot.slane %v3062_v13, 1  ;;  %v3111_v13 = vrot.slane %v10169_v18, 1 }
 0x218   : > { %8392 = vmatmul.mubr.msk.bf16.gmra.mrb[84].mxu0 %vm617_vm7, %v4465_v36 }
 0x219   : > { %8395 = vmatprep.mubr.msk.bf16.mxu0 %vm617_vm7, %v4467_v56  ;;  %v10364_v56 = vld [vmem:[#allocation2 + $0xe8] sm:$0xff] }
 0x21a   : > { %8168 = vmatmul.mubr.msk.bf16.gmra.mrb[4].mxu1 %vm617_vm7, %v10113_v62 }
 0x21b   : > { %v10282_v30 = vpop.f32.mrb[44].mxu0  ;;  %8171 = vmatprep.mubr.msk.bf16.mxu1 %vm617_vm7, %v10120_v63 }
 0x21c   : > { %v3828_v33 = vpop.f32.mrb[45].mxu0 }
 0x21d   : > { %v8284_v37 = vpop.f32.mrb[46].mxu0  ;;  %v4743_v33 = vrot.slane %v10369_v22, 6 }
 0x21e   : > { %v10287_v59 = vpop.f32.mrb[47].mxu0  ;;  %v3101_v37 = vrot.slane %v10095_v41, 1  ;;  %v10390_v41 = vld [vmem:[#allocation2 + $0xb0] sm:$0xff] }
 0x220   : > { %8396 = vmatmul.mubr.msk.bf16.gmra.mrb[88].mxu0 %vm617_vm7, %v4469_v42  ;;  %v3103_v42 = vrot.slane %v10113_v62, 1  ;;  %v4749_v62 = vrot.slane %v10390_v41, 6 }
 0x221   : > { %8399 = vmatprep.mubr.msk.bf16.mxu0 %vm617_vm7, %v4471_v43  ;;  %v4744_v43 = vsel %vm666_vm6, %v4741_v7, %v4743_v33 }
 0x222   : > { %8172 = vmatmul.mubr.msk.bf16.gmra.mrb[8].mxu1 %vm617_vm7, %v10144_v31  ;;  %v3104_v52 = vsel %vm1415_vm9, %v3101_v37, %v3103_v42 }
 0x223   : > { %v10294_v54 = vpop.f32.mrb[48].mxu0  ;;  %8175 = vmatprep.mubr.msk.bf16.mxu1 %vm617_vm7, %v10149_v25 }
 0x224   : > { %v3844_v3 = vpop.f32.mrb[49].mxu0 }
 0x225   : > { %v8288_v46 = vpop.f32.mrb[50].mxu0  ;;  %v4747_v3 = vrot.slane %v10386_v35, 6 }
 0x226   : > { %v10299_v24 = vpop.f32.mrb[51].mxu0  ;;  %v3105_v46 = vrot.slane %v10120_v63, 1 }
 0x228   : > { %8400 = vmatmul.mubr.msk.bf16.gmra.mrb[92].mxu0 %vm617_vm7, %v4473_v27  ;;  %v3107_v27 = vrot.slane %v10144_v31, 1 }
 0x229   : > { %8405 = vmatprep.mubr.msk.bf16.mxu0 %vm617_vm7, %v4726_v51 }
 0x22a   : > { %8176 = vmatmul.mubr.msk.bf16.gmra.mrb[12].mxu1 %vm617_vm7, %v10169_v18 }
 0x22b   : > { %v10307_v11 = vpop.f32.mrb[52].mxu0  ;;  %8179 = vmatprep.mubr.msk.bf16.mxu1 %vm617_vm7, %v10173_v23 }
 0x22c   : > { %v3860_v8 = vpop.f32.mrb[53].mxu0 }
 0x22d   : > { %v8292_v21 = vpop.f32.mrb[54].mxu0  ;;  %v4750_v8 = vsel %vm666_vm6, %v4747_v3, %v4749_v62 }
 0x22e   : > { %v10311_v26 = vpop.f32.mrb[55].mxu0  ;;  %v3106_v21 = vsel %vm1415_vm9, %v3103_v42, %v3105_v46 }
 0x230   : > { %8406 = vmatmul.mubr.msk.bf16.vlgmr.msra.gmra.mrb[64].mxu0 %vm617_vm7, %v10104_v57 }
 0x231   : > { %8438 = vmatpush3.bf16.msra.mxu0 %v5004_v6  ;;  %8409 = vmatprep.mubr.msk.bf16.mxu0 %vm617_vm7, %v10107_v48  ;;  %v3108_v6 = vsel %vm1415_vm9, %v3105_v46, %v3107_v27  ;;  %v7389_v46 = vld [vmem:[%s10936_s3 + $0x1e] sm:$0x3] }
 0x232   : > { %8180 = vmatmul.mubr.msk.bf16.gmra.mrb[16].mxu1 %vm617_vm7, %v10186_v15  ;;  %9170 = vmatprep.subr.msk.bf16.mxu0 %vm666_vm6, %v10318_v4 }
 0x233   : > { %v10328_v55 = vpop.f32.mrb[56].mxu0  ;;  %8183 = vmatprep.mubr.msk.bf16.mxu1 %vm617_vm7, %v10190_v49 }
 0x234   : > { %v3876_v61 = vpop.f32.mrb[57].mxu0 }
 0x235   : > { %v8296_v34 = vpop.f32.mrb[58].mxu0  ;;  %v10402_v61 = vld [vmem:[#allocation2 + $0xb8] sm:$0xff] }
 0x236   : > { %v10332_v60 = vpop.f32.mrb[59].mxu0  ;;  %v4751_v34 = vrot.slane %v10402_v61, 6 }
 0x238   : > { %8410 = vmatmul.mubr.msk.bf16.gmra.mrb[68].mxu0 %vm617_vm7, %v10135_v12  ;;  %v10350_v12 = vld [vmem:[#allocation2 + $0x88] sm:$0xff] }
 0x239   : > { %8413 = vmatprep.mubr.msk.bf16.mxu0 %vm617_vm7, %v10138_v17  ;;  %v4739_v17 = vrot.slane %v10350_v12, 6 }
 0x23a   : > { %8184 = vmatmul.mubr.msk.bf16.gmra.mrb[20].mxu1 %vm617_vm7, %v10209_v44 }
 0x23b   : > { %v10340_v57 = vpop.f32.mrb[60].mxu0  ;;  %8187 = vmatprep.mubr.msk.bf16.mxu1 %vm617_vm7, %v10212_v38  ;;  %v4742_v36 = vsel %vm666_vm6, %v4739_v17, %v4741_v7  ;;  %v4752_v7 = vsel %vm666_vm6, %v4749_v62, %v4751_v34 }
 0x23c   : > { %v3892_v48 = vpop.f32.mrb[61].mxu0 }
 0x23d   : > { %v8300_v45 = vpop.f32.mrb[62].mxu0  ;;  %v10406_v48 = vld [vmem:[#allocation2 + $0xc0] sm:$0xff] }
 0x23e   : > { %v10344_v32 = vpop.f32.mrb[63].mxu0  ;;  %v4753_v45 = vrot.slane %v10406_v48, 6 }
 0x240   : > { %8414 = vmatmul.mubr.msk.bf16.gmra.mrb[72].mxu0 %vm617_vm7, %v10159_v39  ;;  %v3099_v39 = vrot.slane %v10091_v40, 1  ;;  %v10374_v40 = vld [vmem:[#allocation2 + $0xa0] sm:$0xff] }
 0x241   : > { %8417 = vmatprep.mubr.msk.bf16.mxu0 %vm617_vm7, %v10163_v58  ;;  %v4740_v58 = vsel %vm666_vm6, %v10152_v9, %v4739_v17  ;;  %v4745_v9 = vrot.slane %v10374_v40, 6  ;;  %v3109_v17 = vrot.slane %v10149_v25, 1 }
 0x242   : > { %8188 = vmatmul.mubr.msk.bf16.gmra.mrb[24].mxu1 %vm617_vm7, %v10225_v53  ;;  %v3100_v28 = vsel %vm1415_vm9, %v3098_v1, %v3099_v39  ;;  %v3102_v47 = vsel %vm1415_vm9, %v3099_v39, %v3101_v37  ;;  %v4754_v1 = vsel %vm666_vm6, %v4751_v34, %v4753_v45  ;;  %v4719_v39 = vld [vmem:[#allocation2 + $0xc8] sm:$0x3f] }
 0x243   : > { %8191 = vmatprep.mubr.msk.bf16.mxu1 %vm617_vm7, %v10228_v19  ;;  %v4746_v14 = vsel %vm666_vm6, %v4743_v33, %v4745_v9  ;;  %v4748_v51 = vsel %vm666_vm6, %v4745_v9, %v4747_v3  ;;  %v3113_v33 = vrot.slane %v10173_v23, 1  ;;  %v3115_v9 = vrot.slane %v10186_v15, 1  ;;  %v9249_v34 = vld [vmem:[#allocation2 + $0x68] sm:$0xff] }
 0x244   : > { %v5287_v3 = vsel %vm666_vm6, %v10318_v4, 0  ;;  %v3121_v4 = vrot.slane %v10212_v38, 1 }
 0x245   : > { %v3114_v42 = vsel %vm1415_vm9, %v3111_v13, %v3113_v33 }
 0x248   : > { %8418 = vmatmul.mubr.msk.bf16.gmra.mrb[76].mxu0 %vm617_vm7, %v4740_v58  ;;  %v3110_v58 = vsel %vm1415_vm9, %v3107_v27, %v3109_v17  ;;  %v9247_v27 = vld [vmem:[#allocation2 + $0x58] sm:$0xff] }
 0x249   : > { %8421 = vmatprep.mubr.msk.bf16.mxu0 %vm617_vm7, %v4742_v36  ;;  %v3112_v36 = vsel %vm1415_vm9, %v3109_v17, %v3111_v13  ;;  %v9250_v17 = vld [vmem:[#allocation2 + $0x70] sm:$0xff]  ;;  %v3125_v13 = vrot.slane %v10228_v19, 1 }
 0x24a   : > { %8192 = vmatmul.mubr.msk.bf16.gmra.mrb[28].mxu1 %vm617_vm7, %v10364_v56 }
 0x24b   : > { %8197 = vmatprep.mubr.msk.bf16.mxu1 %vm617_vm7, %v3100_v28  ;;  %v4755_v28 = vrot.slane %v4719_v39, 6  ;;  %v9251_v39 = vld [vmem:[#allocation2 + $0x78] sm:$0xff] }
 0x24d   : > { %v4756_v37 = vsel %vm666_vm6, %v4753_v45, %v4755_v28  ;;  %v9252_v28 = vld [vmem:[#allocation2 + $0x80] sm:$0xff] }
 0x250   : > { %8422 = vmatmul.mubr.msk.bf16.gmra.mrb[80].mxu0 %vm617_vm7, %v4744_v43  ;;  %v3116_v43 = vsel %vm1415_vm9, %v3113_v33, %v3115_v9 }
 0x251   : > { %8425 = vmatprep.mubr.msk.bf16.mxu0 %vm617_vm7, %v4746_v14  ;;  %v9246_v14 = vld [vmem:[#allocation2 + $0x50] sm:$0xff] }
 0x252   : > { %8198 = vmatmul.mubr.msk.bf16.vlgmr.msra.gmra.mrb[0].mxu1 %vm617_vm7, %v3102_v47  ;;  %v3117_v47 = vrot.slane %v10190_v49, 1 }
 0x253   : > { %8201 = vmatprep.mubr.msk.bf16.mxu1 %vm617_vm7, %v3104_v52  ;;  %v3119_v52 = vrot.slane %v10209_v44, 1 }
 0x254   : > { %v3118_v62 = vsel %vm1415_vm9, %v3115_v9, %v3117_v47 }
 0x258   : > { %8426 = vmatmul.mubr.msk.bf16.gmra.mrb[84].mxu0 %vm617_vm7, %v4748_v51  ;;  %v3120_v51 = vsel %vm1415_vm9, %v3117_v47, %v3119_v52  ;;  %v9234_v47 = vld [vmem:[%s10938_s5 + $0x10] sm:$0xff]  }
 0x259   : > { %8429 = vmatprep.mubr.msk.bf16.mxu0 %vm617_vm7, %v4750_v8  ;;  %v9248_v8 = vld [vmem:[#allocation2 + $0x60] sm:$0xff]  ;;  %8229 = vmatprep.subr.bf16.mxu1 %v9234_v47 }
 0x25a   : > { %8202 = vmatmul.mubr.msk.bf16.gmra.mrb[4].mxu1 %vm617_vm7, %v3106_v21  ;;  %v3123_v21 = vrot.slane %v10225_v53, 1 }
 0x25b   : > { %8205 = vmatprep.mubr.msk.bf16.mxu1 %vm617_vm7, %v3108_v6  ;;  %v3122_v6 = vsel %vm1415_vm9, %v3119_v52, %v3121_v4  ;;  %v9253_v52 = vld [vmem:[#allocation2 + $0xc8] sm:$0xff]  ;;  %8230 = vmatpush3.bf16.msra.mxu1 %v9234_v47 }
 0x25c   : > { %v3124_v45 = vsel %vm1415_vm9, %v3121_v4, %v3123_v21  ;;  %v5600_v4 = vsel %vm666_vm6, %v7389_v46, 0 }
 0x260   : > { %8430 = vmatmul.mubr.msk.bf16.gmra.mrb[88].mxu0 %vm617_vm7, %v4752_v7  ;;  %v3127_v7 = vrot.slane %v10364_v56, 1 }
 0x261   : > { %8433 = vmatprep.mubr.msk.bf16.mxu0 %vm617_vm7, %v4754_v1  ;;  %v3126_v1 = vsel %vm1415_vm9, %v3123_v21, %v3125_v13 }
 0x262   : > { %8206 = vmatmul.mubr.msk.bf16.gmra.mrb[8].mxu1 %vm617_vm7, %v3110_v58  ;;  %v3128_v58 = vsel %vm1415_vm9, %v3125_v13, %v3127_v7 }
 0x263   : > { %8209 = vmatprep.mubr.msk.bf16.mxu1 %vm617_vm7, %v3112_v36  ;;  %v3078_v36 = vld [vmem:[#allocation2 + $0xf0] sm:$0x1] }
 0x264   : > { %v3129_v33 = vrot.slane %v3078_v36, 1 }
 0x266   : > { %v3130_v9 = vsel %vm1415_vm9, %v3127_v7, %v3129_v33  ;;  %v5218_v7 = vrot.slane %v10350_v12, 2 }
 0x268   : > { %8434 = vmatmul.mubr.msk.bf16.gmra.mrb[92].mxu0 %vm617_vm7, %v4756_v37  ;;  %v5199_v37 = vld [vmem:[#allocation2 + $0x50] sm:$0xfc] }
 0x269   : > { %8439 = vmatprep.mubr.msk.bf16.mxu0 %vm617_vm7, %v9246_v14 }
 0x26a   : > { %8210 = vmatmul.mubr.msk.bf16.gmra.mrb[12].mxu1 %vm617_vm7, %v3114_v42  ;;  %v5205_v42 = vrot.slane %v5199_v37, 2 }
 0x26b   : > { %8213 = vmatprep.mubr.msk.bf16.mxu1 %vm617_vm7, %v3116_v43  ;;  %v5206_v43 = vrot.slane %v9247_v27, 2 }
 0x26d   : > { %v5207_v14 = vsel %vm4440_vm11, %v5205_v42, %v5206_v43 }
 0x270   : > { %8440 = vmatmul.mubr.msk.bf16.vlgmr.msra.gmra.mrb[64].mxu0 %vm617_vm7, %v9247_v27 }
 0x271   : > { %8472 = vmatpush3.bf16.msra.mxu0 %v5287_v3  ;;  %8443 = vmatprep.mubr.msk.bf16.mxu0 %vm617_vm7, %v9248_v8  ;;  %v5208_v3 = vrot.slane %v9248_v8, 2  ;;  %v5212_v8 = vrot.slane %v9250_v17, 2 }
 0x272   : > { %8214 = vmatmul.mubr.msk.bf16.gmra.mrb[16].mxu1 %vm617_vm7, %v3118_v62  ;;  %9171 = vmatprep.subr.msk.bf16.mxu0 %vm666_vm6, %v7389_v46  ;;  %v5210_v62 = vrot.slane %v9249_v34, 2  ;;  %v5216_v46 = vrot.slane %v9252_v28, 2 }
 0x273   : > { %8217 = vmatprep.mubr.msk.bf16.mxu1 %vm617_vm7, %v3120_v51  ;;  %v9235_v51 = vld [vmem:[%s10938_s5 + $0x18] sm:$0xff]   ;;  %v5209_v27 = vsel %vm4440_vm11, %v5206_v43, %v5208_v3 }
 0x274   : > { %8231 = vmatprep.subr.bf16.mxu1 %v9235_v51  ;;  %v5211_v21 = vsel %vm4440_vm11, %v5208_v3, %v5210_v62  ;;  %v5200_v3 = vld [vmem:[#allocation2 + $0xd0] sm:$0x3] }
 0x275   : > { %8232 = vmatpush3.bf16.msra.mxu1 %v9235_v51  ;;  %v5519_v51 = vrot.slane %v10120_v63, 6 }
 0x278   : > { %8444 = vmatmul.mubr.msk.bf16.gmra.mrb[68].mxu0 %vm617_vm7, %v9249_v34  ;;  %v5214_v34 = vrot.slane %v9251_v39, 2 }
 0x279   : > { %8447 = vmatprep.mubr.msk.bf16.mxu0 %vm617_vm7, %v9250_v17  ;;  %v5220_v17 = vrot.slane %v10355_v50, 2 }
 0x27a   : > { %8218 = vmatmul.mubr.msk.bf16.gmra.mrb[20].mxu1 %vm617_vm7, %v3122_v6  ;;  %v7406_v6 = vld [vmem:[%s10936_s3 + $0x20] sm:$0x3]  ;;  %v5215_v13 = vsel %vm4440_vm11, %v5212_v8, %v5214_v34 }
 0x27b   : > { %8221 = vmatprep.mubr.msk.bf16.mxu1 %vm617_vm7, %v3124_v45  ;;  %v5213_v45 = vsel %vm4440_vm11, %v5210_v62, %v5212_v8  ;;  %v5221_v36 = vsel %vm4440_vm11, %v5218_v7, %v5220_v17  ;;  %v5482_v62 = vld [vmem:[#allocation2 + $0x88] sm:$0xc0]  ;;  %v5847_v8 = vsel %vm666_vm6, %v7406_v6, 0 }
 0x280   : > { %8448 = vmatmul.mubr.msk.bf16.gmra.mrb[72].mxu0 %vm617_vm7, %v9251_v39  ;;  %v5222_v39 = vrot.slane %v10369_v22, 2 }
 0x281   : > { %8451 = vmatprep.mubr.msk.bf16.mxu0 %vm617_vm7, %v9252_v28  ;;  %v5226_v28 = vrot.slane %v10386_v35, 2 }
 0x282   : > { %8222 = vmatmul.mubr.msk.bf16.gmra.mrb[24].mxu1 %vm617_vm7, %v3126_v1  ;;  %v5217_v1 = vsel %vm4440_vm11, %v5214_v34, %v5216_v46  ;;  %v5223_v33 = vsel %vm4440_vm11, %v5220_v17, %v5222_v39 }
 0x283   : > { %8225 = vmatprep.mubr.msk.bf16.mxu1 %vm617_vm7, %v3128_v58  ;;  %v5219_v58 = vsel %vm4440_vm11, %v5216_v46, %v5218_v7  ;;  %v5527_v46 = vrot.slane %v10173_v23, 6 }
 0x288   : > { %8452 = vmatmul.mubr.msk.bf16.gmra.mrb[76].mxu0 %vm617_vm7, %v10350_v12  ;;  %v5224_v12 = vrot.slane %v10374_v40, 2 }
 0x289   : > { %8455 = vmatprep.mubr.msk.bf16.mxu0 %vm617_vm7, %v10355_v50  ;;  %v5228_v50 = vrot.slane %v10390_v41, 2 }
 0x28a   : > { %8226 = vmatmul.mubr.msk.bf16.gmra.mrb[28].mxu1 %vm617_vm7, %v3130_v9  ;;  %v5225_v9 = vsel %vm4440_vm11, %v5222_v39, %v5224_v12  ;;  %v5227_v37 = vsel %vm4440_vm11, %v5224_v12, %v5226_v28 }
 0x28b   : > { %v5229_v42 = vsel %vm4440_vm11, %v5226_v28, %v5228_v50 }
 0x290   : > { %8456 = vmatmul.mubr.msk.bf16.gmra.mrb[80].mxu0 %vm617_vm7, %v10369_v22  ;;  %v5230_v22 = vrot.slane %v10402_v61, 2 }
 0x291   : > { %8459 = vmatprep.mubr.msk.bf16.mxu0 %vm617_vm7, %v10374_v40  ;;  %v5232_v40 = vrot.slane %v10406_v48, 2 }
 0x292   : > { %v5231_v43 = vsel %vm4440_vm11, %v5228_v50, %v5230_v22 }
 0x298   : > { %8460 = vmatmul.mubr.msk.bf16.gmra.mrb[84].mxu0 %vm617_vm7, %v10386_v35  ;;  %v5234_v35 = vrot.slane %v9253_v52, 2 }
 0x299   : > { %8463 = vmatprep.mubr.msk.bf16.mxu0 %vm617_vm7, %v10390_v41  ;;  %v5236_v41 = vrot.slane %v5200_v3, 2  ;;  %v10578_v3 = vld [vmem:[#allocation2 + $0x100] sm:$0xff] }
 0x29a   : > { %v5235_v47 = vsel %vm4440_vm11, %v5232_v40, %v5234_v35 }
 0x2a0   : > { %8464 = vmatmul.mubr.msk.bf16.gmra.mrb[88].mxu0 %vm617_vm7, %v10402_v61  ;;  %v5518_v61 = vrot.slane %v5482_v62, 6 }
 0x2a1   : > { %8467 = vmatprep.mubr.msk.bf16.mxu0 %vm617_vm7, %v10406_v48  ;;  %v5521_v48 = vrot.slane %v10144_v31, 6 }
 0x2a8   : > { %8468 = vmatmul.mubr.msk.bf16.gmra.mrb[92].mxu0 %vm617_vm7, %v9253_v52  ;;  %v5523_v52 = vrot.slane %v10149_v25, 6 }
 0x2a9   : > { %8473 = vmatprep.mubr.msk.bf16.mxu0 %vm617_vm7, %v5207_v14  ;;  %v5233_v14 = vsel %vm4440_vm11, %v5230_v22, %v5232_v40 }
 0x2aa   : > { %v5524_v34 = vsel %vm666_vm6, %v5521_v48, %v5523_v52 }
 0x2b0   : > { %8474 = vmatmul.mubr.msk.bf16.vlgmr.msra.gmra.mrb[64].mxu0 %vm617_vm7, %v5209_v27  ;;  %v5237_v27 = vsel %vm4440_vm11, %v5234_v35, %v5236_v41  ;;  %v5547_v41 = vrot.slane %v10578_v3, 6 }
 0x2b1   : > { %8506 = vmatpush3.bf16.msra.mxu0 %v5600_v4  ;;  %8477 = vmatprep.mubr.msk.bf16.mxu0 %vm617_vm7, %v5211_v21  ;;  %v5520_v4 = vsel %vm666_vm6, %v5518_v61, %v5519_v51  ;;  %v5522_v21 = vsel %vm666_vm6, %v5519_v51, %v5521_v48  ;;  %v3377_v51 = vsub.s32 1, %v9827_v10 }
 0x2b2   : > { %9172 = vmatprep.subr.msk.bf16.mxu0 %vm666_vm6, %v7406_v6 }
 0x2b8   : > { %8478 = vmatmul.mubr.msk.bf16.gmra.mrb[68].mxu0 %vm617_vm7, %v5213_v45  ;;  %v10540_v45 = vld [vmem:[%s10936_s3 + $0x22] sm:$0x3] }
 0x2b9   : > { %8481 = vmatprep.mubr.msk.bf16.mxu0 %vm617_vm7, %v5215_v13  ;;  %v5525_v13 = vrot.slane %v10169_v18, 6 }
 0x2bb   : > { %v5526_v6 = vsel %vm666_vm6, %v5523_v52, %v5525_v13  ;;  %v5528_v7 = vsel %vm666_vm6, %v5525_v13, %v5527_v46  ;;  %v10592_v52 = vld [vmem:[%s10937_s4] sm:$0x7] }
 0x2c0   : > { %8482 = vmatmul.mubr.msk.bf16.gmra.mrb[72].mxu0 %vm617_vm7, %v5217_v1  ;;  %v5529_v1 = vrot.slane %v10186_v15, 6 }
 0x2c1   : > { %8485 = vmatprep.mubr.msk.bf16.mxu0 %vm617_vm7, %v5219_v58  ;;  %v5531_v58 = vrot.slane %v10190_v49, 6 }
 0x2c2   : > { %v5530_v17 = vsel %vm666_vm6, %v5527_v46, %v5529_v1 }
 0x2c3   : > { %v5532_v39 = vsel %vm666_vm6, %v5529_v1, %v5531_v58 }
 0x2c8   : > { %8486 = vmatmul.mubr.msk.bf16.gmra.mrb[76].mxu0 %vm617_vm7, %v5221_v36  ;;  %v5533_v36 = vrot.slane %v10209_v44, 6 }
 0x2c9   : > { %8489 = vmatprep.mubr.msk.bf16.mxu0 %vm617_vm7, %v5223_v33  ;;  %v5535_v33 = vrot.slane %v10212_v38, 6 }
 0x2ca   : > { %v5534_v12 = vsel %vm666_vm6, %v5531_v58, %v5533_v36 }
 0x2cb   : > { %v5536_v28 = vsel %vm666_vm6, %v5533_v36, %v5535_v33 }
 0x2d0   : > { %8490 = vmatmul.mubr.msk.bf16.gmra.mrb[80].mxu0 %vm617_vm7, %v5225_v9  ;;  %v5537_v9 = vrot.slane %v10225_v53, 6 }
 0x2d1   : > { %8493 = vmatprep.mubr.msk.bf16.mxu0 %vm617_vm7, %v5227_v37  ;;  %v5539_v37 = vrot.slane %v10228_v19, 6 }
 0x2d2   : > { %v5538_v50 = vsel %vm666_vm6, %v5535_v33, %v5537_v9 }
 0x2d3   : > { %v5540_v22 = vsel %vm666_vm6, %v5537_v9, %v5539_v37 }
 0x2d8   : > { %8494 = vmatmul.mubr.msk.bf16.gmra.mrb[84].mxu0 %vm617_vm7, %v5229_v42  ;;  %v10568_v42 = vld [vmem:[#allocation2 + $0xf0] sm:$0xff] }
 0x2d9   : > { %8497 = vmatprep.mubr.msk.bf16.mxu0 %vm617_vm7, %v5231_v43  ;;  %v5541_v43 = vrot.slane %v10364_v56, 6  ;;  %v5543_v40 = vrot.slane %v10568_v42, 6 }
 0x2db   : > { %v5542_v35 = vsel %vm666_vm6, %v5539_v37, %v5541_v43 }
 0x2e0   : > { %8498 = vmatmul.mubr.msk.bf16.gmra.mrb[88].mxu0 %vm617_vm7, %v5233_v14  ;;  %v5544_v14 = vsel %vm666_vm6, %v5541_v43, %v5543_v40  ;;  %v6160_v43 = vsel %vm666_vm6, %v10540_v45, 0 }
 0x2e1   : > { %8501 = vmatprep.mubr.msk.bf16.mxu0 %vm617_vm7, %v5235_v47  ;;  %v10576_v47 = vld [vmem:[#allocation2 + $0xf8] sm:$0xff] }
 0x2e2   : > { %v5545_v62 = vrot.slane %v10576_v47, 6 }
 0x2e4   : > { %v5546_v61 = vsel %vm666_vm6, %v5543_v40, %v5545_v62 }
 0x2e8   : > { %8502 = vmatmul.mubr.msk.bf16.gmra.mrb[92].mxu0 %vm617_vm7, %v5237_v27  ;;  %v5548_v27 = vsel %vm666_vm6, %v5545_v62, %v5547_v41 }
 0x2e9   : > { %8507 = vmatprep.mubr.msk.bf16.mxu0 %vm617_vm7, %v5520_v4  ;;  %v5498_v4 = vld [vmem:[#allocation2 + $0x108] sm:$0x3f] }
 0x2ea   : > { %v5549_v48 = vrot.slane %v5498_v4, 6 }
 0x2f0   : > { %8508 = vmatmul.mubr.msk.bf16.vlgmr.msra.gmra.mrb[64].mxu0 %vm617_vm7, %v5522_v21  ;;  %v10595_v21 = vrot.slane %v10592_v52, %v3377_v51 }
 0x2f1   : > { %8540 = vmatpush3.bf16.msra.mxu0 %v5847_v8  ;;  %8511 = vmatprep.mubr.msk.bf16.mxu0 %vm617_vm7, %v5524_v34  ;;  %v5550_v34 = vsel %vm666_vm6, %v5547_v41, %v5549_v48 }
 0x2f2   : > { %9173 = vmatprep.subr.msk.bf16.mxu0 %vm666_vm6, %v10540_v45 }
 0x2f8   : > { %8512 = vmatmul.mubr.msk.bf16.gmra.mrb[68].mxu0 %vm617_vm7, %v5526_v6 }
 0x2f9   : > { %8515 = vmatprep.mubr.msk.bf16.mxu0 %vm617_vm7, %v5528_v7 }
 0x300   : > { %8516 = vmatmul.mubr.msk.bf16.gmra.mrb[72].mxu0 %vm617_vm7, %v5530_v17 }
 0x301   : > { %8519 = vmatprep.mubr.msk.bf16.mxu0 %vm617_vm7, %v5532_v39 }
 0x308   : > { %8520 = vmatmul.mubr.msk.bf16.gmra.mrb[76].mxu0 %vm617_vm7, %v5534_v12 }
 0x309   : > { %8523 = vmatprep.mubr.msk.bf16.mxu0 %vm617_vm7, %v5536_v28 }
 0x310   : > { %8524 = vmatmul.mubr.msk.bf16.gmra.mrb[80].mxu0 %vm617_vm7, %v5538_v50 }
 0x311   : > { %8527 = vmatprep.mubr.msk.bf16.mxu0 %vm617_vm7, %v5540_v22 }
 0x318   : > { %8528 = vmatmul.mubr.msk.bf16.gmra.mrb[84].mxu0 %vm617_vm7, %v5542_v35 }
 0x319   : > { %8531 = vmatprep.mubr.msk.bf16.mxu0 %vm617_vm7, %v5544_v14 }
 0x320   : > { %8532 = vmatmul.mubr.msk.bf16.gmra.mrb[88].mxu0 %vm617_vm7, %v5546_v61 }
 0x321   : > { %8535 = vmatprep.mubr.msk.bf16.mxu0 %vm617_vm7, %v5548_v27 }
 0x325   : > { %v8199_v8 = vpop.f32.mrb[0].mxu1 }
 0x326   : > { %v3381_v13 = vadd.f32 %v8199_v8, %v10595_v21  ;;  %v3216_v46 = vpop.f32.mrb[1].mxu1 }
 0x327   : > { %v3379_v6 = vadd.f32 %v10595_v21, %v3216_v46  ;;  %v8200_v7 = vpop.f32.mrb[2].mxu1 }
 0x328   : > { %v3382_v1 = vadd.f32 %v8200_v7, %v10595_v21  ;;  %v3219_v58 = vpop.f32.mrb[3].mxu1  ;;  %8536 = vmatmul.mubr.msk.bf16.gmra.mrb[92].mxu0 %vm617_vm7, %v5550_v34  ;;  %v3413_v39 = vmax.f32 %v3381_v13, 0.0 }
 0x329   : > { %v3380_v17 = vadd.f32 %v10595_v21, %v3219_v58  ;;  %8541 = vmatprep.mubr.msk.bf16.mxu0 %vm617_vm7, %v10120_v63  ;;  %v3411_v33 = vmax.f32 %v3379_v6, 0.0 }
 0x32a   : > { %v3414_v36 = vmax.f32 %v3382_v1, 0.0 }
 0x32b   : > { %v3412_v12 = vmax.f32 %v3380_v17, 0.0 }
 0x32c   : > { %v3444_v28 = vpack.c.bf16 %v3414_v36, %v3413_v39 }
 0x32d   : > { %v3443_v9 = vpack.c.bf16 %v3412_v12, %v3411_v33  ;;  %v8203_v37 = vpop.f32.mrb[4].mxu1 }
 0x32e   : > { %v3385_v50 = vadd.f32 %v8203_v37, %v10595_v21  ;;  %v3232_v22 = vpop.f32.mrb[5].mxu1 }
 0x32f   : > { %v3383_v40 = vadd.f32 %v10595_v21, %v3232_v22  ;;  %v8204_v35 = vpop.f32.mrb[6].mxu1  ;;  %8233 = vmatprep.mubr.msk.bf16.mxu1 %vm3476_vm10, %v3443_v9 }
 0x330   : > { %v3386_v63 = vadd.f32 %v8204_v35, %v10595_v21  ;;  %v3235_v14 = vpop.f32.mrb[7].mxu1  ;;  %8234 = vmatmul.mubr.msk.bf16.vlgmr.msra.gmra.mrb[32].mxu1 %vm3476_vm10, %v3444_v28  ;;  %8542 = vmatmul.mubr.msk.bf16.vlgmr.msra.gmra.mrb[64].mxu0 %vm617_vm7, %v10144_v31  ;;  %v3417_v45 = vmax.f32 %v3385_v50, 0.0 }
 0x331   : > { %v3384_v62 = vadd.f32 %v10595_v21, %v3235_v14  ;;  %8574 = vmatpush3.bf16.msra.mxu0 %v6160_v43  ;;  %8545 = vmatprep.mubr.msk.bf16.mxu0 %vm617_vm7, %v10149_v25  ;;  %v3415_v61 = vmax.f32 %v3383_v40, 0.0 }
 0x332   : > { %v3418_v41 = vmax.f32 %v3386_v63, 0.0 }
 0x333   : > { %v3416_v51 = vmax.f32 %v3384_v62, 0.0 }
 0x334   : > { %v3446_v27 = vpack.c.bf16 %v3418_v41, %v3417_v45 }
 0x335   : > { %v3445_v4 = vpack.c.bf16 %v3416_v51, %v3415_v61  ;;  %v8207_v48 = vpop.f32.mrb[8].mxu1 }
 0x336   : > { %v3389_v8 = vadd.f32 %v8207_v48, %v10595_v21  ;;  %v3248_v34 = vpop.f32.mrb[9].mxu1 }
 0x337   : > { %v3387_v13 = vadd.f32 %v10595_v21, %v3248_v34  ;;  %v8208_v46 = vpop.f32.mrb[10].mxu1  ;;  %8237 = vmatprep.mubr.msk.bf16.mxu1 %vm3476_vm10, %v3445_v4 }
 0x338   : > { %v3390_v31 = vadd.f32 %v8208_v46, %v10595_v21  ;;  %v3251_v6 = vpop.f32.mrb[11].mxu1  ;;  %8238 = vmatmul.mubr.msk.bf16.gmra.mrb[36].mxu1 %vm3476_vm10, %v3446_v27  ;;  %8546 = vmatmul.mubr.msk.bf16.gmra.mrb[68].mxu0 %vm617_vm7, %v10169_v18  ;;  %v3421_v7 = vmax.f32 %v3389_v8, 0.0 }
 0x339   : > { %v3388_v25 = vadd.f32 %v10595_v21, %v3251_v6  ;;  %8549 = vmatprep.mubr.msk.bf16.mxu0 %vm617_vm7, %v10173_v23  ;;  %v3419_v58 = vmax.f32 %v3387_v13, 0.0 }
 0x33a   : > { %v3422_v1 = vmax.f32 %v3390_v31, 0.0 }
 0x33b   : > { %v3420_v17 = vmax.f32 %v3388_v25, 0.0 }
 0x33c   : > { %v3448_v39 = vpack.c.bf16 %v3422_v1, %v3421_v7 }
 0x33d   : > { %v3447_v36 = vpack.c.bf16 %v3420_v17, %v3419_v58  ;;  %v8211_v33 = vpop.f32.mrb[12].mxu1 }
 0x33e   : > { %v3393_v12 = vadd.f32 %v8211_v33, %v10595_v21  ;;  %v3264_v28 = vpop.f32.mrb[13].mxu1 }
 0x33f   : > { %v3391_v9 = vadd.f32 %v10595_v21, %v3264_v28  ;;  %v8212_v37 = vpop.f32.mrb[14].mxu1  ;;  %8241 = vmatprep.mubr.msk.bf16.mxu1 %vm3476_vm10, %v3447_v36 }
 0x340   : > { %v3394_v18 = vadd.f32 %v8212_v37, %v10595_v21  ;;  %v3267_v50 = vpop.f32.mrb[15].mxu1  ;;  %8242 = vmatmul.mubr.msk.bf16.gmra.mrb[40].mxu1 %vm3476_vm10, %v3448_v39  ;;  %8550 = vmatmul.mubr.msk.bf16.gmra.mrb[72].mxu0 %vm617_vm7, %v10186_v15  ;;  %v3425_v22 = vmax.f32 %v3393_v12, 0.0 }
 0x341   : > { %v3392_v23 = vadd.f32 %v10595_v21, %v3267_v50  ;;  %8553 = vmatprep.mubr.msk.bf16.mxu0 %vm617_vm7, %v10190_v49  ;;  %v3423_v40 = vmax.f32 %v3391_v9, 0.0 }
 0x342   : > { %v3426_v43 = vmax.f32 %v3394_v18, 0.0 }
 0x343   : > { %v3424_v35 = vmax.f32 %v3392_v23, 0.0 }
 0x344   : > { %v3450_v63 = vpack.c.bf16 %v3426_v43, %v3425_v22 }
 0x345   : > { %v3449_v14 = vpack.c.bf16 %v3424_v35, %v3423_v40  ;;  %v8215_v62 = vpop.f32.mrb[16].mxu1 }
 0x346   : > { %v3397_v45 = vadd.f32 %v8215_v62, %v10595_v21  ;;  %v3280_v41 = vpop.f32.mrb[17].mxu1 }
 0x347   : > { %v3395_v61 = vadd.f32 %v10595_v21, %v3280_v41  ;;  %v8216_v51 = vpop.f32.mrb[18].mxu1  ;;  %8245 = vmatprep.mubr.msk.bf16.mxu1 %vm3476_vm10, %v3449_v14 }
 0x348   : > { %v3398_v15 = vadd.f32 %v8216_v51, %v10595_v21  ;;  %v3283_v27 = vpop.f32.mrb[19].mxu1  ;;  %8246 = vmatmul.mubr.msk.bf16.gmra.mrb[44].mxu1 %vm3476_vm10, %v3450_v63  ;;  %8554 = vmatmul.mubr.msk.bf16.gmra.mrb[76].mxu0 %vm617_vm7, %v10209_v44  ;;  %v3429_v4 = vmax.f32 %v3397_v45, 0.0 }
 0x349   : > { %v3396_v49 = vadd.f32 %v10595_v21, %v3283_v27  ;;  %8557 = vmatprep.mubr.msk.bf16.mxu0 %vm617_vm7, %v10212_v38  ;;  %v3427_v8 = vmax.f32 %v3395_v61, 0.0  ;;  %v6042_v27 = vld [vmem:[#allocation2 + $0x90] sm:$0xfc] }
 0x34a   : > { %v3430_v48 = vmax.f32 %v3398_v15, 0.0 }
 0x34b   : > { %v3428_v34 = vmax.f32 %v3396_v49, 0.0  ;;  %v6043_v49 = vld [vmem:[#allocation2 + $0x98] sm:$0xff] }
 0x34c   : > { %v3452_v13 = vpack.c.bf16 %v3430_v48, %v3429_v4 }
 0x34d   : > { %v3451_v46 = vpack.c.bf16 %v3428_v34, %v3427_v8  ;;  %v8219_v31 = vpop.f32.mrb[20].mxu1 }
 0x34e   : > { %v3401_v6 = vadd.f32 %v8219_v31, %v10595_v21  ;;  %v3296_v25 = vpop.f32.mrb[21].mxu1  ;;  %v6079_v31 = vrot.slane %v6043_v49, 2  ;;  %v9236_v49 = vld [vmem:[%s10938_s5 + $0x20] sm:$0xff]  }
 0x34f   : > { %v3399_v7 = vadd.f32 %v10595_v21, %v3296_v25  ;;  %v8220_v1 = vpop.f32.mrb[22].mxu1  ;;  %8249 = vmatprep.mubr.msk.bf16.mxu1 %vm3476_vm10, %v3451_v46  ;;  %v6078_v46 = vrot.slane %v6042_v27, 2  ;;  %8607 = vmatprep.subr.bf16.mxu1 %v9236_v49 }
 0x350   : > { %v3402_v44 = vadd.f32 %v8220_v1, %v10595_v21  ;;  %v3299_v58 = vpop.f32.mrb[23].mxu1  ;;  %8250 = vmatmul.mubr.msk.bf16.gmra.mrb[48].mxu1 %vm3476_vm10, %v3452_v13  ;;  %8558 = vmatmul.mubr.msk.bf16.gmra.mrb[80].mxu0 %vm617_vm7, %v10225_v53  ;;  %v3433_v17 = vmax.f32 %v3401_v6, 0.0 }
 0x351   : > { %v3400_v38 = vadd.f32 %v10595_v21, %v3299_v58  ;;  %8561 = vmatprep.mubr.msk.bf16.mxu0 %vm617_vm7, %v10228_v19  ;;  %v3431_v36 = vmax.f32 %v3399_v7, 0.0  ;;  %v6080_v58 = vsel %vm4440_vm11, %v6078_v46, %v6079_v31  ;;  %8608 = vmatpush3.bf16.msra.mxu1 %v9236_v49 }
 0x352   : > { %v3434_v39 = vmax.f32 %v3402_v44, 0.0  ;;  %v10677_v44 = vld [vmem:[#allocation2 + $0x108] sm:$0xff] }
 0x353   : > { %v3432_v33 = vmax.f32 %v3400_v38, 0.0  ;;  %v6044_v38 = vld [vmem:[#allocation2 + $0xa0] sm:$0xff]  ;;  %v6107_v46 = vrot.slane %v10677_v44, 2 }
 0x354   : > { %v3454_v12 = vpack.c.bf16 %v3434_v39, %v3433_v17  ;;  %v6045_v17 = vld [vmem:[#allocation2 + $0xa8] sm:$0xff] }
 0x355   : > { %v3453_v28 = vpack.c.bf16 %v3432_v33, %v3431_v36  ;;  %v8223_v9 = vpop.f32.mrb[24].mxu1  ;;  %v6083_v39 = vrot.slane %v6045_v17, 2 }
 0x356   : > { %v3405_v37 = vadd.f32 %v8223_v9, %v10595_v21  ;;  %v3312_v18 = vpop.f32.mrb[25].mxu1 }
 0x357   : > { %v3403_v50 = vadd.f32 %v10595_v21, %v3312_v18  ;;  %v8224_v23 = vpop.f32.mrb[26].mxu1  ;;  %8253 = vmatprep.mubr.msk.bf16.mxu1 %vm3476_vm10, %v3453_v28  ;;  %v6047_v28 = vld [vmem:[#allocation2 + $0xb8] sm:$0xff] }
 0x358   : > { %v3406_v53 = vadd.f32 %v8224_v23, %v10595_v21  ;;  %v3315_v22 = vpop.f32.mrb[27].mxu1  ;;  %8254 = vmatmul.mubr.msk.bf16.gmra.mrb[52].mxu1 %vm3476_vm10, %v3454_v12  ;;  %8562 = vmatmul.mubr.msk.bf16.gmra.mrb[84].mxu0 %vm617_vm7, %v10364_v56  ;;  %v3437_v43 = vmax.f32 %v3405_v37, 0.0  ;;  %v6046_v12 = vld [vmem:[#allocation2 + $0xb0] sm:$0xff]  ;;  %v6087_v37 = vrot.slane %v6047_v28, 2  ;;  %v6048_v23 = vld [vmem:[#allocation2 + $0xc0] sm:$0xff] }
 0x359   : > { %v3404_v19 = vadd.f32 %v10595_v21, %v3315_v22  ;;  %8565 = vmatprep.mubr.msk.bf16.mxu0 %vm617_vm7, %v10568_v42  ;;  %v3435_v35 = vmax.f32 %v3403_v50, 0.0  ;;  %v6085_v9 = vrot.slane %v6046_v12, 2  ;;  %v6089_v22 = vrot.slane %v6048_v23, 2 }
 0x35a   : > { %v3438_v40 = vmax.f32 %v3406_v53, 0.0  ;;  %v6049_v53 = vld [vmem:[#allocation2 + $0xc8] sm:$0xff] }
 0x35b   : > { %v3436_v63 = vmax.f32 %v3404_v19, 0.0  ;;  %v6086_v18 = vsel %vm4440_vm11, %v6083_v39, %v6085_v9  ;;  %v6088_v50 = vsel %vm4440_vm11, %v6085_v9, %v6087_v37  ;;  %v6091_v19 = vrot.slane %v6049_v53, 2 }
 0x35c   : > { %v3456_v14 = vpack.c.bf16 %v3438_v40, %v3437_v43  ;;  %v6090_v43 = vsel %vm4440_vm11, %v6087_v37, %v6089_v22 }
 0x35d   : > { %v3455_v62 = vpack.c.bf16 %v3436_v63, %v3435_v35  ;;  %v8227_v45 = vpop.f32.mrb[28].mxu1  ;;  %v6092_v40 = vsel %vm4440_vm11, %v6089_v22, %v6091_v19  ;;  %v6050_v35 = vld [vmem:[#allocation2 + $0xd0] sm:$0xff]  ;;  %v6051_v63 = vld [vmem:[#allocation2 + $0xd8] sm:$0xff] }
 0x35e   : > { %v3409_v41 = vadd.f32 %v8227_v45, %v10595_v21  ;;  %v3328_v61 = vpop.f32.mrb[29].mxu1 }
 0x35f   : > { %v3407_v51 = vadd.f32 %v10595_v21, %v3328_v61  ;;  %v8228_v15 = vpop.f32.mrb[30].mxu1  ;;  %8257 = vmatprep.mubr.msk.bf16.mxu1 %vm3476_vm10, %v3455_v62  ;;  %v6095_v62 = vrot.slane %v6051_v63, 2  ;;  %v6052_v61 = vld [vmem:[#allocation2 + $0xe0] sm:$0xff] }
 0x360   : > { %v3410_v4 = vadd.f32 %v8228_v15, %v10595_v21  ;;  %v3331_v48 = vpop.f32.mrb[31].mxu1  ;;  %8258 = vmatmul.mubr.msk.bf16.gmra.mrb[56].mxu1 %vm3476_vm10, %v3456_v14  ;;  %8566 = vmatmul.mubr.msk.bf16.gmra.mrb[88].mxu0 %vm617_vm7, %v10576_v47  ;;  %v3441_v34 = vmax.f32 %v3409_v41, 0.0  ;;  %v6093_v14 = vrot.slane %v6050_v35, 2  ;;  %v6099_v15 = vrot.slane %v10364_v56, 2 }
 0x361   : > { %v3408_v8 = vadd.f32 %v10595_v21, %v3331_v48  ;;  %8569 = vmatprep.mubr.msk.bf16.mxu0 %vm617_vm7, %v10578_v3  ;;  %v3439_v6 = vmax.f32 %v3407_v51, 0.0  ;;  %v6081_v21 = vrot.slane %v6044_v38, 2  ;;  %v6097_v51 = vrot.slane %v6052_v61, 2 }
 0x362   : > { %v3442_v13 = vmax.f32 %v3410_v4, 0.0  ;;  %v6094_v45 = vsel %vm4440_vm11, %v6091_v19, %v6093_v14  ;;  %v6096_v41 = vsel %vm4440_vm11, %v6093_v14, %v6095_v62  ;;  %v6101_v48 = vrot.slane %v10568_v42, 2 }
 0x363   : > { %v3440_v25 = vmax.f32 %v3408_v8, 0.0  ;;  %v6082_v36 = vsel %vm4440_vm11, %v6079_v31, %v6081_v21  ;;  %v6084_v33 = vsel %vm4440_vm11, %v6081_v21, %v6083_v39  ;;  %v6098_v27 = vsel %vm4440_vm11, %v6095_v62, %v6097_v51 }
 0x364   : > { %v3458_v7 = vpack.c.bf16 %v3442_v13, %v3441_v34  ;;  %v6100_v4 = vsel %vm4440_vm11, %v6097_v51, %v6099_v15  ;;  %v6103_v8 = vrot.slane %v10576_v47, 2  ;;  %v6102_v56 = vsel %vm4440_vm11, %v6099_v15, %v6101_v48 }
 0x365   : > { %v3457_v1 = vpack.c.bf16 %v3440_v25, %v3439_v6  ;;  %v6105_v13 = vrot.slane %v10578_v3, 2  ;;  %v6058_v25 = vld [vmem:[#allocation2 + $0x110] sm:$0x3]  ;;  %v9237_v3 = vld [vmem:[%s10938_s5 + $0x28] sm:$0xff]  }
 0x366   : > { %v6104_v34 = vsel %vm4440_vm11, %v6101_v48, %v6103_v8  ;;  %v6109_v42 = vrot.slane %v6058_v25, 2  ;;  %8609 = vmatprep.subr.bf16.mxu1 %v9237_v3  ;;  %v6357_v48 = vsub.s32 2, %v9827_v10 }
 0x367   : > { %8261 = vmatprep.mubr.msk.bf16.mxu1 %vm3476_vm10, %v3457_v1  ;;  %v6106_v31 = vsel %vm4440_vm11, %v6103_v8, %v6105_v13  ;;  %v6108_v6 = vsel %vm4440_vm11, %v6105_v13, %v6107_v46  ;;  %8610 = vmatpush3.bf16.msra.mxu1 %v9237_v3 }
 0x368   : > { %8262 = vmatmul.mubr.msk.bf16.gmra.mrb[60].mxu1 %vm3476_vm10, %v3458_v7  ;;  %8570 = vmatmul.mubr.msk.bf16.gmra.mrb[92].mxu0 %vm617_vm7, %v10677_v44  ;;  %v6110_v47 = vsel %vm4440_vm11, %v6107_v46, %v6109_v42 }
 0x369   : > { %8575 = vmatprep.mubr.msk.bf16.mxu0 %vm617_vm7, %v6080_v58 }
 0x370   : > { %8576 = vmatmul.mubr.msk.bf16.vlgmr.msra.gmra.mrb[64].mxu0 %vm617_vm7, %v6082_v36 }
 0x371   : > { %8579 = vmatprep.mubr.msk.bf16.mxu0 %vm617_vm7, %v6084_v33 }
 0x378   : > { %8580 = vmatmul.mubr.msk.bf16.gmra.mrb[68].mxu0 %vm617_vm7, %v6086_v18 }
 0x379   : > { %8583 = vmatprep.mubr.msk.bf16.mxu0 %vm617_vm7, %v6088_v50 }
 0x380   : > { %8584 = vmatmul.mubr.msk.bf16.gmra.mrb[72].mxu0 %vm617_vm7, %v6090_v43 }
 0x381   : > { %8587 = vmatprep.mubr.msk.bf16.mxu0 %vm617_vm7, %v6092_v40 }
 0x388   : > { %8588 = vmatmul.mubr.msk.bf16.gmra.mrb[76].mxu0 %vm617_vm7, %v6094_v45 }
 0x389   : > { %8591 = vmatprep.mubr.msk.bf16.mxu0 %vm617_vm7, %v6096_v41 }
 0x390   : > { %8592 = vmatmul.mubr.msk.bf16.gmra.mrb[80].mxu0 %vm617_vm7, %v6098_v27 }
 0x391   : > { %8595 = vmatprep.mubr.msk.bf16.mxu0 %vm617_vm7, %v6100_v4 }
 0x398   : > { %8596 = vmatmul.mubr.msk.bf16.gmra.mrb[84].mxu0 %vm617_vm7, %v6102_v56 }
 0x399   : > { %8599 = vmatprep.mubr.msk.bf16.mxu0 %vm617_vm7, %v6104_v34 }
 0x3a0   : > { %8600 = vmatmul.mubr.msk.bf16.gmra.mrb[88].mxu0 %vm617_vm7, %v6106_v31 }
 0x3a1   : > { %8603 = vmatprep.mubr.msk.bf16.mxu0 %vm617_vm7, %v6108_v6 }
 0x3a8   : > { %8604 = vmatmul.mubr.msk.bf16.gmra.mrb[92].mxu0 %vm617_vm7, %v6110_v47 }
 0x403   : > { %v8235_v7 = vpop.f32.mrb[32].mxu1 }
 0x404   : > { %v10727_v1 = vadd.f32 %v10241_v2, %v8235_v7  ;;  %v3559_v44 = vpop.f32.mrb[33].mxu1 }
 0x405   : > { %v8236_v58 = vpop.f32.mrb[34].mxu1 }
 0x406   : > { %v3562_v38 = vpop.f32.mrb[35].mxu1 }
 0x407   : > { %v10730_v17 = vadd.f32 %v10245_v16, %v3562_v38 }
 0x40b   : > { %v8239_v21 = vpop.f32.mrb[36].mxu1 }
 0x40c   : > { %v10733_v39 = vadd.f32 %v10252_v29, %v8239_v21  ;;  %v3575_v36 = vpop.f32.mrb[37].mxu1 }
 0x40d   : > { %v8240_v33 = vpop.f32.mrb[38].mxu1 }
 0x40e   : > { %v3578_v12 = vpop.f32.mrb[39].mxu1 }
 0x40f   : > { %v10736_v28 = vadd.f32 %v10257_v20, %v3578_v12 }
 0x413   : > { %v8243_v9 = vpop.f32.mrb[40].mxu1 }
 0x414   : > { %v10739_v2 = vadd.f32 %v10268_v5, %v8243_v9  ;;  %v3591_v37 = vpop.f32.mrb[41].mxu1 }
 0x415   : > { %v8244_v18 = vpop.f32.mrb[42].mxu1 }
 0x416   : > { %v3594_v50 = vpop.f32.mrb[43].mxu1 }
 0x417   : > { %v10742_v16 = vadd.f32 %v10273_v0, %v3594_v50 }
 0x41b   : > { %v8247_v23 = vpop.f32.mrb[44].mxu1 }
 0x41c   : > { %v10745_v29 = vadd.f32 %v10282_v30, %v8247_v23  ;;  %v3607_v53 = vpop.f32.mrb[45].mxu1 }
 0x41d   : > { %v8248_v22 = vpop.f32.mrb[46].mxu1 }
 0x41e   : > { %v3610_v19 = vpop.f32.mrb[47].mxu1 }
 0x41f   : > { %v10748_v20 = vadd.f32 %v10287_v59, %v3610_v19 }
 0x423   : > { %v8251_v43 = vpop.f32.mrb[48].mxu1 }
 0x424   : > { %v10751_v5 = vadd.f32 %v10294_v54, %v8251_v43  ;;  %v3623_v40 = vpop.f32.mrb[49].mxu1 }
 0x425   : > { %v8252_v35 = vpop.f32.mrb[50].mxu1 }
 0x426   : > { %v3626_v63 = vpop.f32.mrb[51].mxu1 }
 0x427   : > { %v10754_v0 = vadd.f32 %v10299_v24, %v3626_v63 }
 0x42b   : > { %v8255_v14 = vpop.f32.mrb[52].mxu1 }
 0x42c   : > { %v10757_v30 = vadd.f32 %v10307_v11, %v8255_v14  ;;  %v3639_v62 = vpop.f32.mrb[53].mxu1 }
 0x42d   : > { %v8256_v45 = vpop.f32.mrb[54].mxu1 }
 0x42e   : > { %v3642_v41 = vpop.f32.mrb[55].mxu1 }
 0x42f   : > { %v10760_v59 = vadd.f32 %v10311_v26, %v3642_v41 }
 0x433   : > { %v8259_v61 = vpop.f32.mrb[56].mxu1 }
 0x434   : > { %v10763_v54 = vadd.f32 %v10328_v55, %v8259_v61  ;;  %v3655_v51 = vpop.f32.mrb[57].mxu1  ;;  %v10776_v55 = vrot.slane %v10592_v52, %v6357_v48 }
 0x435   : > { %v8260_v15 = vpop.f32.mrb[58].mxu1 }
 0x436   : > { %v3658_v27 = vpop.f32.mrb[59].mxu1 }
 0x437   : > { %v10766_v24 = vadd.f32 %v10332_v60, %v3658_v27 }
 0x43b   : > { %v8263_v49 = vpop.f32.mrb[60].mxu1 }
 0x43c   : > { %v10769_v11 = vadd.f32 %v10340_v57, %v8263_v49  ;;  %v3671_v4 = vpop.f32.mrb[61].mxu1 }
 0x43d   : > { %v8264_v8 = vpop.f32.mrb[62].mxu1 }
 0x43e   : > { %v3674_v26 = vpop.f32.mrb[63].mxu1 }
 0x43f   : > { %v10773_v56 = vadd.f32 %v10344_v32, %v3674_v26 }
 0x443   : > { %v8577_v34 = vpop.f32.mrb[64].mxu0 }
 0x444   : > { %v6361_v13 = vadd.f32 %v8577_v34, %v10776_v55  ;;  %v6196_v60 = vpop.f32.mrb[65].mxu0 }
 0x445   : > { %v6359_v46 = vadd.f32 %v10776_v55, %v6196_v60  ;;  %v8578_v31 = vpop.f32.mrb[66].mxu0 }
 0x446   : > { %v6362_v57 = vadd.f32 %v8578_v31, %v10776_v55  ;;  %v6199_v6 = vpop.f32.mrb[67].mxu0  ;;  %v6393_v25 = vmax.f32 %v6361_v13, 0.0 }
 0x447   : > { %v6360_v10 = vadd.f32 %v10776_v55, %v6199_v6  ;;  %v6391_v47 = vmax.f32 %v6359_v46, 0.0 }
 0x448   : > { %v6394_v42 = vmax.f32 %v6362_v57, 0.0 }
 0x449   : > { %v6392_v32 = vmax.f32 %v6360_v10, 0.0 }
 0x44a   : > { %v6424_v3 = vpack.c.bf16 %v6394_v42, %v6393_v25 }
 0x44b   : > { %v6423_v7 = vpack.c.bf16 %v6392_v32, %v6391_v47  ;;  %v8581_v52 = vpop.f32.mrb[68].mxu0 }
 0x44c   : > { %v6365_v44 = vadd.f32 %v8581_v52, %v10776_v55  ;;  %v6212_v58 = vpop.f32.mrb[69].mxu0 }
 0x44d   : > { %v6363_v38 = vadd.f32 %v10776_v55, %v6212_v58  ;;  %v8582_v21 = vpop.f32.mrb[70].mxu0  ;;  %8611 = vmatprep.mubr.msk.bf16.mxu1 %vm3476_vm10, %v6423_v7 }
 0x44e   : > { %v6366_v36 = vadd.f32 %v8582_v21, %v10776_v55  ;;  %v6215_v33 = vpop.f32.mrb[71].mxu0  ;;  %8612 = vmatmul.mubr.msk.bf16.vlgmr.msra.gmra.mrb[64].mxu1 %vm3476_vm10, %v6424_v3  ;;  %v6397_v9 = vmax.f32 %v6365_v44, 0.0 }
 0x44f   : > { %v6364_v12 = vadd.f32 %v10776_v55, %v6215_v33  ;;  %v6395_v18 = vmax.f32 %v6363_v38, 0.0 }
 0x450   : > { %v6398_v37 = vmax.f32 %v6366_v36, 0.0 }
 0x451   : > { %v6396_v50 = vmax.f32 %v6364_v12, 0.0 }
 0x452   : > { %v6426_v23 = vpack.c.bf16 %v6398_v37, %v6397_v9 }
 0x453   : > { %v6425_v53 = vpack.c.bf16 %v6396_v50, %v6395_v18  ;;  %v8585_v22 = vpop.f32.mrb[72].mxu0 }
 0x454   : > { %v6369_v19 = vadd.f32 %v8585_v22, %v10776_v55  ;;  %v6228_v43 = vpop.f32.mrb[73].mxu0 }
 0x455   : > { %v6367_v40 = vadd.f32 %v10776_v55, %v6228_v43  ;;  %v8586_v35 = vpop.f32.mrb[74].mxu0  ;;  %8615 = vmatprep.mubr.msk.bf16.mxu1 %vm3476_vm10, %v6425_v53 }
 0x456   : > { %v6370_v63 = vadd.f32 %v8586_v35, %v10776_v55  ;;  %v6231_v14 = vpop.f32.mrb[75].mxu0  ;;  %8616 = vmatmul.mubr.msk.bf16.gmra.mrb[68].mxu1 %vm3476_vm10, %v6426_v23  ;;  %v6401_v45 = vmax.f32 %v6369_v19, 0.0 }
 0x457   : > { %v6368_v62 = vadd.f32 %v10776_v55, %v6231_v14  ;;  %v6399_v61 = vmax.f32 %v6367_v40, 0.0 }
 0x458   : > { %v6402_v41 = vmax.f32 %v6370_v63, 0.0 }
 0x459   : > { %v6400_v51 = vmax.f32 %v6368_v62, 0.0 }
 0x45a   : > { %v6428_v15 = vpack.c.bf16 %v6402_v41, %v6401_v45 }
 0x45b   : > { %v6427_v27 = vpack.c.bf16 %v6400_v51, %v6399_v61  ;;  %v8589_v49 = vpop.f32.mrb[76].mxu0 }
 0x45c   : > { %v6373_v4 = vadd.f32 %v8589_v49, %v10776_v55  ;;  %v6244_v48 = vpop.f32.mrb[77].mxu0 }
 0x45d   : > { %v6371_v8 = vadd.f32 %v10776_v55, %v6244_v48  ;;  %v8590_v26 = vpop.f32.mrb[78].mxu0  ;;  %8619 = vmatprep.mubr.msk.bf16.mxu1 %vm3476_vm10, %v6427_v27 }
 0x45e   : > { %v6374_v34 = vadd.f32 %v8590_v26, %v10776_v55  ;;  %v6247_v13 = vpop.f32.mrb[79].mxu0  ;;  %8620 = vmatmul.mubr.msk.bf16.gmra.mrb[72].mxu1 %vm3476_vm10, %v6428_v15  ;;  %v6405_v46 = vmax.f32 %v6373_v4, 0.0 }
 0x45f   : > { %v6372_v60 = vadd.f32 %v10776_v55, %v6247_v13  ;;  %v6403_v57 = vmax.f32 %v6371_v8, 0.0 }
 0x460   : > { %v6406_v31 = vmax.f32 %v6374_v34, 0.0 }
 0x461   : > { %v6404_v6 = vmax.f32 %v6372_v60, 0.0 }
 0x462   : > { %v6430_v10 = vpack.c.bf16 %v6406_v31, %v6405_v46 }
 0x463   : > { %v6429_v25 = vpack.c.bf16 %v6404_v6, %v6403_v57  ;;  %v8593_v42 = vpop.f32.mrb[80].mxu0 }
 0x464   : > { %v6377_v47 = vadd.f32 %v8593_v42, %v10776_v55  ;;  %v6260_v32 = vpop.f32.mrb[81].mxu0 }
 0x465   : > { %v6375_v3 = vadd.f32 %v10776_v55, %v6260_v32  ;;  %v8594_v7 = vpop.f32.mrb[82].mxu0  ;;  %8623 = vmatprep.mubr.msk.bf16.mxu1 %vm3476_vm10, %v6429_v25 }
 0x466   : > { %v6378_v52 = vadd.f32 %v8594_v7, %v10776_v55  ;;  %v6263_v44 = vpop.f32.mrb[83].mxu0  ;;  %8624 = vmatmul.mubr.msk.bf16.gmra.mrb[76].mxu1 %vm3476_vm10, %v6430_v10  ;;  %v6409_v38 = vmax.f32 %v6377_v47, 0.0 }
 0x467   : > { %v6376_v58 = vadd.f32 %v10776_v55, %v6263_v44  ;;  %v6407_v36 = vmax.f32 %v6375_v3, 0.0 }
 0x468   : > { %v6410_v21 = vmax.f32 %v6378_v52, 0.0 }
 0x469   : > { %v6408_v33 = vmax.f32 %v6376_v58, 0.0 }
 0x46a   : > { %v6432_v12 = vpack.c.bf16 %v6410_v21, %v6409_v38 }
 0x46b   : > { %v6431_v9 = vpack.c.bf16 %v6408_v33, %v6407_v36  ;;  %v8597_v37 = vpop.f32.mrb[84].mxu0  ;;  %v10831_v36 = vld [vmem:[%s348_s14] ss:$0 sm:$0xff] }
 0x46c   : > { %v6381_v18 = vadd.f32 %v8597_v37, %v10776_v55  ;;  %v6276_v50 = vpop.f32.mrb[85].mxu0 }
 0x46d   : > { %v6379_v23 = vadd.f32 %v10776_v55, %v6276_v50  ;;  %v8598_v53 = vpop.f32.mrb[86].mxu0  ;;  %8627 = vmatprep.mubr.msk.bf16.mxu1 %vm3476_vm10, %v6431_v9 }
 0x46e   : > { %v6382_v22 = vadd.f32 %v8598_v53, %v10776_v55  ;;  %v6279_v19 = vpop.f32.mrb[87].mxu0  ;;  %8628 = vmatmul.mubr.msk.bf16.gmra.mrb[80].mxu1 %vm3476_vm10, %v6432_v12  ;;  %v6413_v40 = vmax.f32 %v6381_v18, 0.0  ;;  %v10837_v12 = vld [vmem:[%s10939_s6] ss:$0 sm:$0xff] }
 0x46f   : > { %v6380_v43 = vadd.f32 %v10776_v55, %v6279_v19  ;;  %v6411_v63 = vmax.f32 %v6379_v23, 0.0 }
 0x470   : > { %v6414_v35 = vmax.f32 %v6382_v22, 0.0 }
 0x471   : > { %v6412_v14 = vmax.f32 %v6380_v43, 0.0 }
 0x472   : > { %v6434_v62 = vpack.c.bf16 %v6414_v35, %v6413_v40 }
 0x473   : > { %v6433_v45 = vpack.c.bf16 %v6412_v14, %v6411_v63  ;;  %v8601_v41 = vpop.f32.mrb[88].mxu0 }
 0x474   : > { %v6385_v61 = vadd.f32 %v8601_v41, %v10776_v55  ;;  %v6292_v51 = vpop.f32.mrb[89].mxu0 }
 0x475   : > { %v6383_v15 = vadd.f32 %v10776_v55, %v6292_v51  ;;  %v8602_v27 = vpop.f32.mrb[90].mxu0  ;;  %8631 = vmatprep.mubr.msk.bf16.mxu1 %vm3476_vm10, %v6433_v45 }
 0x476   : > { %v6386_v49 = vadd.f32 %v8602_v27, %v10776_v55  ;;  %v6295_v4 = vpop.f32.mrb[91].mxu0  ;;  %8632 = vmatmul.mubr.msk.bf16.gmra.mrb[84].mxu1 %vm3476_vm10, %v6434_v62  ;;  %v6417_v8 = vmax.f32 %v6385_v61, 0.0 }
 0x477   : > { %v6384_v48 = vadd.f32 %v10776_v55, %v6295_v4  ;;  %v6415_v34 = vmax.f32 %v6383_v15, 0.0 }
 0x478   : > { %v6418_v26 = vmax.f32 %v6386_v49, 0.0 }
 0x479   : > { %v6416_v13 = vmax.f32 %v6384_v48, 0.0 }
 0x47a   : > { %v6436_v60 = vpack.c.bf16 %v6418_v26, %v6417_v8 }
 0x47b   : > { %v6435_v46 = vpack.c.bf16 %v6416_v13, %v6415_v34  ;;  %v8605_v31 = vpop.f32.mrb[92].mxu0 }
 0x47c   : > { %v6389_v57 = vadd.f32 %v8605_v31, %v10776_v55  ;;  %v6308_v6 = vpop.f32.mrb[93].mxu0 }
 0x47d   : > { %v6387_v10 = vadd.f32 %v10776_v55, %v6308_v6  ;;  %v8606_v25 = vpop.f32.mrb[94].mxu0  ;;  %8635 = vmatprep.mubr.msk.bf16.mxu1 %vm3476_vm10, %v6435_v46 }
 0x47e   : > { %v6390_v42 = vadd.f32 %v8606_v25, %v10776_v55  ;;  %v6311_v47 = vpop.f32.mrb[95].mxu0  ;;  %8636 = vmatmul.mubr.msk.bf16.gmra.mrb[88].mxu1 %vm3476_vm10, %v6436_v60  ;;  %v6421_v3 = vmax.f32 %v6389_v57, 0.0 }
 0x47f   : > { %v6388_v32 = vadd.f32 %v10776_v55, %v6311_v47  ;;  %v6419_v52 = vmax.f32 %v6387_v10, 0.0 }
 0x480   : > { %v6422_v7 = vmax.f32 %v6390_v42, 0.0 }
 0x481   : > { %v6420_v44 = vmax.f32 %v6388_v32, 0.0 }
 0x482   : > { %v6438_v58 = vpack.c.bf16 %v6422_v7, %v6421_v3 }
 0x483   : > { %v6437_v38 = vpack.c.bf16 %v6420_v44, %v6419_v52 }
 0x485   : > { %8639 = vmatprep.mubr.msk.bf16.mxu1 %vm3476_vm10, %v6437_v38 }
 0x486   : > { %8640 = vmatmul.mubr.msk.bf16.gmra.mrb[92].mxu1 %vm3476_vm10, %v6438_v58 }
 0x521   : > { %v8613_v21 = vpop.f32.mrb[64].mxu1 }
 0x522   : > { %v6667_v33 = vadd.f32 %v8613_v21, %v10727_v1  ;;  %v6538_v55 = vpop.f32.mrb[65].mxu1 }
 0x523   : > { %v8614_v9 = vpop.f32.mrb[66].mxu1 }
 0x524   : > { %v6706_v37 = vadd.f32 %v10831_v36, %v6667_v33  ;;  %v6541_v18 = vpop.f32.mrb[67].mxu1 }
 0x525   : > { %v6666_v50 = vadd.f32 %v6541_v18, %v10730_v17 }
 0x526   : > { %v6745_v23 = vadd.f32 %v10837_v12, %v6706_v37 }
 0x527   : > { %v6705_v53 = vadd.f32 %v10831_v36, %v6666_v50 }
 0x528   : > { %v6777_v22 = vmax.f32 %v6745_v23, 0.0 }
 0x529   : > { %v6744_v1 = vadd.f32 %v10837_v12, %v6705_v53  ;;  %v8617_v19 = vpop.f32.mrb[68].mxu1 }
 0x52a   : > { %v7497_v43 = vpack.c.bf16 %v6777_v22, %v6777_v22  ;;  %v6671_v40 = vadd.f32 %v8617_v19, %v10733_v39  ;;  %v6554_v35 = vpop.f32.mrb[69].mxu1 }
 0x52b   : > { %v6776_v63 = vmax.f32 %v6744_v1, 0.0  ;;  %v8618_v14 = vpop.f32.mrb[70].mxu1 }
 0x52c   : > { %6833 = vst.msk [vmem:[%s9387_s12 + $0x4] sm:$0xf] %vm6831_vm12, %v7497_v43  ;;  %v6710_v17 = vadd.f32 %v10831_v36, %v6671_v40  ;;  %v6557_v62 = vpop.f32.mrb[71].mxu1 }
 0x52d   : > { %v7496_v45 = vpack.c.bf16 %v6776_v63, %v6776_v63  ;;  %v6670_v41 = vadd.f32 %v6557_v62, %v10736_v28 }
 0x52e   : > { %v6749_v61 = vadd.f32 %v10837_v12, %v6710_v17 }
 0x52f   : > { %6832 = vst.msk [vmem:[%s9387_s12] sm:$0xf] %vm6831_vm12, %v7496_v45  ;;  %v6709_v51 = vadd.f32 %v10831_v36, %v6670_v41 }
 0x530   : > { %v6781_v39 = vmax.f32 %v6749_v61, 0.0 }
 0x531   : > { %v6748_v15 = vadd.f32 %v10837_v12, %v6709_v51  ;;  %v8621_v27 = vpop.f32.mrb[72].mxu1 }
 0x532   : > { %v7499_v49 = vpack.c.bf16 %v6781_v39, %v6781_v39  ;;  %v6675_v4 = vadd.f32 %v8621_v27, %v10739_v2  ;;  %v6570_v48 = vpop.f32.mrb[73].mxu1 }
 0x533   : > { %v6780_v8 = vmax.f32 %v6748_v15, 0.0  ;;  %v8622_v26 = vpop.f32.mrb[74].mxu1 }
 0x534   : > { %7469 = vst.msk [vmem:[%s9387_s12 + $0xc] sm:$0xf] %vm6831_vm12, %v7499_v49  ;;  %v6714_v28 = vadd.f32 %v10831_v36, %v6675_v4  ;;  %v6573_v34 = vpop.f32.mrb[75].mxu1 }
 0x535   : > { %v7498_v13 = vpack.c.bf16 %v6780_v8, %v6780_v8  ;;  %v6674_v60 = vadd.f32 %v6573_v34, %v10742_v16 }
 0x536   : > { %v6753_v46 = vadd.f32 %v10837_v12, %v6714_v28 }
 0x537   : > { %7468 = vst.msk [vmem:[%s9387_s12 + $0x8] sm:$0xf] %vm6831_vm12, %v7498_v13  ;;  %v6713_v31 = vadd.f32 %v10831_v36, %v6674_v60 }
 0x538   : > { %v6785_v2 = vmax.f32 %v6753_v46, 0.0 }
 0x539   : > { %v6752_v57 = vadd.f32 %v10837_v12, %v6713_v31  ;;  %v8625_v6 = vpop.f32.mrb[76].mxu1 }
 0x53a   : > { %v7501_v10 = vpack.c.bf16 %v6785_v2, %v6785_v2  ;;  %v6679_v25 = vadd.f32 %v8625_v6, %v10745_v29  ;;  %v6586_v42 = vpop.f32.mrb[77].mxu1 }
 0x53b   : > { %v6784_v47 = vmax.f32 %v6752_v57, 0.0  ;;  %v8626_v32 = vpop.f32.mrb[78].mxu1 }
 0x53c   : > { %7473 = vst.msk [vmem:[%s9387_s12 + $0x14] sm:$0xf] %vm6831_vm12, %v7501_v10  ;;  %v6718_v16 = vadd.f32 %v10831_v36, %v6679_v25  ;;  %v6589_v3 = vpop.f32.mrb[79].mxu1 }
 0x53d   : > { %v7500_v7 = vpack.c.bf16 %v6784_v47, %v6784_v47  ;;  %v6678_v52 = vadd.f32 %v6589_v3, %v10748_v20 }
 0x53e   : > { %v6757_v44 = vadd.f32 %v10837_v12, %v6718_v16 }
 0x53f   : > { %7472 = vst.msk [vmem:[%s9387_s12 + $0x10] sm:$0xf] %vm6831_vm12, %v7500_v7  ;;  %v6717_v58 = vadd.f32 %v10831_v36, %v6678_v52 }
 0x540   : > { %v6789_v29 = vmax.f32 %v6757_v44, 0.0 }
 0x541   : > { %v6756_v38 = vadd.f32 %v10837_v12, %v6717_v58  ;;  %v8629_v21 = vpop.f32.mrb[80].mxu1 }
 0x542   : > { %v7503_v33 = vpack.c.bf16 %v6789_v29, %v6789_v29  ;;  %v6683_v55 = vadd.f32 %v8629_v21, %v10751_v5  ;;  %v6602_v9 = vpop.f32.mrb[81].mxu1 }
 0x543   : > { %v6788_v37 = vmax.f32 %v6756_v38, 0.0  ;;  %v8630_v18 = vpop.f32.mrb[82].mxu1 }
 0x544   : > { %7477 = vst.msk [vmem:[%s9387_s12 + $0x1c] sm:$0xf] %vm6831_vm12, %v7503_v33  ;;  %v6722_v20 = vadd.f32 %v10831_v36, %v6683_v55  ;;  %v6605_v50 = vpop.f32.mrb[83].mxu1 }
 0x545   : > { %v7502_v23 = vpack.c.bf16 %v6788_v37, %v6788_v37  ;;  %v6682_v53 = vadd.f32 %v6605_v50, %v10754_v0 }
 0x546   : > { %v6761_v22 = vadd.f32 %v10837_v12, %v6722_v20 }
 0x547   : > { %7476 = vst.msk [vmem:[%s9387_s12 + $0x18] sm:$0xf] %vm6831_vm12, %v7502_v23  ;;  %v6721_v1 = vadd.f32 %v10831_v36, %v6682_v53 }
 0x548   : > { %v6793_v5 = vmax.f32 %v6761_v22, 0.0 }
 0x549   : > { %v6760_v19 = vadd.f32 %v10837_v12, %v6721_v1  ;;  %v8633_v43 = vpop.f32.mrb[84].mxu1 }
 0x54a   : > { %v7505_v40 = vpack.c.bf16 %v6793_v5, %v6793_v5  ;;  %v6687_v35 = vadd.f32 %v8633_v43, %v10757_v30  ;;  %v6618_v63 = vpop.f32.mrb[85].mxu1 }
 0x54b   : > { %v6792_v14 = vmax.f32 %v6760_v19, 0.0  ;;  %v8634_v17 = vpop.f32.mrb[86].mxu1 }
 0x54c   : > { %7481 = vst.msk [vmem:[%s9387_s12 + $0x24] sm:$0xf] %vm6831_vm12, %v7505_v40  ;;  %v6726_v0 = vadd.f32 %v10831_v36, %v6687_v35  ;;  %v6621_v62 = vpop.f32.mrb[87].mxu1 }
 0x54d   : > { %v7504_v45 = vpack.c.bf16 %v6792_v14, %v6792_v14  ;;  %v6686_v41 = vadd.f32 %v6621_v62, %v10760_v59 }
 0x54e   : > { %v6765_v61 = vadd.f32 %v10837_v12, %v6726_v0 }
 0x54f   : > { %7480 = vst.msk [vmem:[%s9387_s12 + $0x20] sm:$0xf] %vm6831_vm12, %v7504_v45  ;;  %v6725_v51 = vadd.f32 %v10831_v36, %v6686_v41 }
 0x550   : > { %v6797_v30 = vmax.f32 %v6765_v61, 0.0 }
 0x551   : > { %v6764_v39 = vadd.f32 %v10837_v12, %v6725_v51  ;;  %v8637_v15 = vpop.f32.mrb[88].mxu1 }
 0x552   : > { %v7507_v27 = vpack.c.bf16 %v6797_v30, %v6797_v30  ;;  %v6691_v49 = vadd.f32 %v8637_v15, %v10763_v54  ;;  %v6634_v4 = vpop.f32.mrb[89].mxu1 }
 0x553   : > { %v6796_v48 = vmax.f32 %v6764_v39, 0.0  ;;  %v8638_v8 = vpop.f32.mrb[90].mxu1 }
 0x554   : > { %7485 = vst.msk [vmem:[%s9387_s12 + $0x2c] sm:$0xf] %vm6831_vm12, %v7507_v27  ;;  %v6730_v59 = vadd.f32 %v10831_v36, %v6691_v49  ;;  %v6637_v26 = vpop.f32.mrb[91].mxu1 }
 0x555   : > { %v7506_v28 = vpack.c.bf16 %v6796_v48, %v6796_v48  ;;  %v6690_v34 = vadd.f32 %v6637_v26, %v10766_v24 }
 0x556   : > { %v6769_v13 = vadd.f32 %v10837_v12, %v6730_v59 }
 0x557   : > { %7484 = vst.msk [vmem:[%s9387_s12 + $0x28] sm:$0xf] %vm6831_vm12, %v7506_v28  ;;  %v6729_v60 = vadd.f32 %v10831_v36, %v6690_v34 }
 0x558   : > { %v6801_v54 = vmax.f32 %v6769_v13, 0.0 }
 0x559   : > { %v6768_v46 = vadd.f32 %v10837_v12, %v6729_v60  ;;  %v8641_v31 = vpop.f32.mrb[92].mxu1 }
 0x55a   : > { %v7509_v2 = vpack.c.bf16 %v6801_v54, %v6801_v54  ;;  %v6695_v57 = vadd.f32 %v8641_v31, %v10769_v11  ;;  %v6650_v6 = vpop.f32.mrb[93].mxu1 }
 0x55b   : > { %v6800_v10 = vmax.f32 %v6768_v46, 0.0  ;;  %v8642_v25 = vpop.f32.mrb[94].mxu1 }
 0x55c   : > { %7489 = vst.msk [vmem:[%s9387_s12 + $0x34] sm:$0xf] %vm6831_vm12, %v7509_v2  ;;  %v6734_v24 = vadd.f32 %v10831_v36, %v6695_v57  ;;  %v6653_v42 = vpop.f32.mrb[95].mxu1 }
 0x55d   : > { %v7508_v47 = vpack.c.bf16 %v6800_v10, %v6800_v10  ;;  %v6694_v32 = vadd.f32 %v6653_v42, %v10773_v56 }
 0x55e   : > { %v6773_v16 = vadd.f32 %v10837_v12, %v6734_v24 }
 0x55f   : > { %7488 = vst.msk [vmem:[%s9387_s12 + $0x30] sm:$0xf] %vm6831_vm12, %v7508_v47  ;;  %v6733_v3 = vadd.f32 %v10831_v36, %v6694_v32 }
 0x560   : > { %v6805_v11 = vmax.f32 %v6773_v16, 0.0 }
 0x561   : > { %v6772_v7 = vadd.f32 %v10837_v12, %v6733_v3 }
 0x562   : > { %v7511_v52 = vpack.c.bf16 %v6805_v11, %v6805_v11 }
 0x563   : > { %v6804_v44 = vmax.f32 %v6772_v7, 0.0 }
 0x564   : > { %7493 = vst.msk [vmem:[%s9387_s12 + $0x3c] sm:$0xf] %vm6831_vm12, %v7511_v52 }
 0x565   : > { %v7510_v58 = vpack.c.bf16 %v6804_v44, %v6804_v44 }
 0x567   : > { %7492 = vst.msk [vmem:[%s9387_s12 + $0x38] sm:$0xf] %vm6831_vm12, %v7510_v58 }
 0x568 PF: > { %s17_s28 = sadd.s32 1, %s9293_s28   ;;  %s10943_s14 = sld [smem:[#allocation3_spill]] }
 0x569   : > { %p14_p0 = scmp.ge.s32.totalorder %s17_s28, 8   ;;  %s10944_s15 = sld [smem:[#allocation4_spill]] }
 0x56a   : > { %s10945_s24 = smov %s9285_s26  ;;  %s10946_s25 = smov %s9289_s27 }
 0x56b   :  { %16 = sbr.rel (!%p14_p0) target bundleno = 3 (0x3), region = 134 }
 0x56e   : > { %s10947_s26 = smov %s10943_s14 }
 0x56f   : > { %s10948_s27 = smov %s10944_s15 }

</bundles_post_ra>
